<compile_context>
chip_gen: v5e
topology: v5e:2x2
jax: 0.10.0
libtpu: 0.0.40
codegen_flags: <defaults>
</compile_context>

<pallas_src>
import jax
import jax.numpy as jnp
from jax import lax
from jax.experimental import pallas as pl
from jax.experimental.pallas import tpu as pltpu


def _round_up(x, m):
    return ((x + m - 1) // m) * m


def decoder_kernel(x_ref, wih_ref, whh_ref, b_ref, wfc_ref, bfc_ref,
                   out_ref, xg_sc, hs_sc, h_sc, c_sc):
    S, Bp, Ep = x_ref.shape
    Hp = h_sc.shape[-1]
    Vp = out_ref.shape[-1]

    # --- 1. Batched input projection (+ bias) for ALL timesteps: one MXU pass.
    x_all = x_ref[...].reshape(S * Bp, Ep).astype(jnp.bfloat16)
    xg = jnp.dot(x_all, wih_ref[...], preferred_element_type=jnp.float32)
    xg_sc[...] = (xg + b_ref[...]).reshape(S, Bp, 4 * Hp)

    # --- 2. Sequential recurrence: only the small (Bp,Hp)@(Hp,4Hp) matmul per step.
    h_sc[...] = jnp.zeros_like(h_sc)
    c_sc[...] = jnp.zeros_like(c_sc)

    def step(s, carry):
        h_prev = h_sc[...]
        c_prev = c_sc[...]
        gates = xg_sc[s] + jnp.dot(h_prev.astype(jnp.bfloat16), whh_ref[...],
                                   preferred_element_type=jnp.float32)
        # PyTorch LSTMCell gate order: i, f, g, o (each gate slice is lane-aligned, Hp % 128 == 0).
        i_g = jax.nn.sigmoid(gates[:, 0 * Hp:1 * Hp])
        f_g = jax.nn.sigmoid(gates[:, 1 * Hp:2 * Hp])
        g_g = jnp.tanh(gates[:, 2 * Hp:3 * Hp])
        o_g = jax.nn.sigmoid(gates[:, 3 * Hp:4 * Hp])
        c_new = f_g * c_prev + i_g * g_g
        h_new = o_g * jnp.tanh(c_new)
        h_sc[...] = h_new
        c_sc[...] = c_new
        hs_sc[s] = h_new
        return carry

    lax.fori_loop(0, S, step, 0, unroll=True)

    # --- 3. Batched FC over all S*Bp hidden states (dominant matmul): one MXU pass.
    # TODO(synk): nn.Dropout on hidden_state is identity in eval mode; train-mode dropout
    # (and the per-vocab-tile parallel grid split for v7x's 2 TensorCores) not implemented.
    h_all = hs_sc[...].reshape(S * Bp, Hp).astype(jnp.bfloat16)
    logits = jnp.dot(h_all, wfc_ref[...], preferred_element_type=jnp.float32) + bfc_ref[...]
    out_ref[...] = logits.reshape(S, Bp, Vp).astype(out_ref.dtype)


def pack_params(raw, Ep, Hp, Vp):
    """Pad weights per gate block (zeros) and cast matmul weights to bf16."""
    E = raw["w_ih"].shape[1]
    H = raw["w_hh"].shape[1]
    V = raw["w_fc"].shape[0]
    w_ih_t = raw["w_ih"].T                   # (E, 4H)
    w_hh_t = raw["w_hh"].T                   # (H, 4H)
    bias = raw["b_ih"] + raw["b_hh"]         # (4H,)

    wih_p = jnp.zeros((Ep, 4 * Hp), jnp.float32)
    whh_p = jnp.zeros((Hp, 4 * Hp), jnp.float32)
    b_p = jnp.zeros((1, 4 * Hp), jnp.float32)
    for g in range(4):
        wih_p = wih_p.at[:E, g * Hp:g * Hp + H].set(w_ih_t[:, g * H:(g + 1) * H])
        whh_p = whh_p.at[:H, g * Hp:g * Hp + H].set(w_hh_t[:, g * H:(g + 1) * H])
        b_p = b_p.at[0, g * Hp:g * Hp + H].set(bias[g * H:(g + 1) * H])

    wfc_p = jnp.zeros((Hp, Vp), jnp.float32).at[:H, :V].set(raw["w_fc"].T)
    bfc_p = jnp.zeros((1, Vp), jnp.float32).at[0, :V].set(raw["b_fc"])

    return {
        "w_ih_t": wih_p.astype(jnp.bfloat16),
        "w_hh_t": whh_p.astype(jnp.bfloat16),
        "bias": b_p,                          # f32
        "w_fc_t": wfc_p.astype(jnp.bfloat16),
        "b_fc": bfc_p,                        # f32
    }


def decoder_rnn_cell_forward(features, captions, raw_params):
    """features: (B, E) f32, captions: (B, S) int32. Returns preds (B, S, V) f32."""
    B, E = features.shape
    S = captions.shape[1]
    V = raw_params["w_fc"].shape[0]
    H = raw_params["w_hh"].shape[1]

    Bp = _round_up(B, 8)
    Ep = _round_up(E, 128)
    Hp = _round_up(H, 128)
    Vp = _round_up(V, 128)

    kp = pack_params(raw_params, Ep, Hp, Vp)

    # Embedding lookup + step-input assembly (glue; E << V so this traffic is negligible).
    emb = jnp.take(raw_params["embed"], captions, axis=0)                 # (B, S, E)
    x = jnp.concatenate([features[:, None, :], emb[:, 1:, :]], axis=1)    # (B, S, E)
    x = jnp.transpose(x, (1, 0, 2))                                       # (S, B, E)
    x = jnp.pad(x, ((0, 0), (0, Bp - B), (0, Ep - E)))                    # (S, Bp, Ep)

    out_sbv = pl.pallas_call(
        decoder_kernel,
        out_shape=jax.ShapeDtypeStruct((S, Bp, Vp), jnp.float32),
        grid=(1,),
        in_specs=[
            pl.BlockSpec((S, Bp, Ep), lambda i: (0, 0, 0)),
            pl.BlockSpec((Ep, 4 * Hp), lambda i: (0, 0)),
            pl.BlockSpec((Hp, 4 * Hp), lambda i: (0, 0)),
            pl.BlockSpec((1, 4 * Hp), lambda i: (0, 0)),
            pl.BlockSpec((Hp, Vp), lambda i: (0, 0)),
            pl.BlockSpec((1, Vp), lambda i: (0, 0)),
        ],
        out_specs=pl.BlockSpec((S, Bp, Vp), lambda i: (0, 0, 0)),
        scratch_shapes=[
            pltpu.VMEM((S, Bp, 4 * Hp), jnp.float32),   # precomputed input gates
            pltpu.VMEM((S, Bp, Hp), jnp.float32),       # all hidden states (for batched FC)
            pltpu.VMEM((Bp, Hp), jnp.float32),          # h carry
            pltpu.VMEM((Bp, Hp), jnp.float32),          # c carry
        ],
        compiler_params=pltpu.CompilerParams(
            dimension_semantics=("arbitrary",)),
        # NOTE: at production shapes (H~512, V~10k) set vmem_limit_bytes and tile V
        # (parallel grid axis) to stay under v7x's 64 MiB VMEM and use both TCs.
    )(x, kp["w_ih_t"], kp["w_hh_t"], kp["bias"], kp["w_fc_t"], kp["b_fc"])

    # Strip padding and go to PyTorch (B, S, V) layout in one fused glue op.
    return jnp.transpose(out_sbv[:, :B, :V], (1, 0, 2))


def init_params(key, embed_size, hidden_size, vocab_size):
    ks = jax.random.split(key, 7)
    scale = 0.1
    return {
        "embed": scale * jax.random.normal(ks[0], (vocab_size, embed_size), jnp.float32),
        "w_ih": scale * jax.random.normal(ks[1], (4 * hidden_size, embed_size), jnp.float32),
        "w_hh": scale * jax.random.normal(ks[2], (4 * hidden_size, hidden_size), jnp.float32),
        "b_ih": scale * jax.random.normal(ks[3], (4 * hidden_size,), jnp.float32),
        "b_hh": scale * jax.random.normal(ks[4], (4 * hidden_size,), jnp.float32),
        "w_fc": scale * jax.random.normal(ks[5], (vocab_size, hidden_size), jnp.float32),
        "b_fc": scale * jax.random.normal(ks[6], (vocab_size,), jnp.float32),
    }


def reference_forward(features, captions, raw):
    """Pure-JAX f32 reference (same math as the PyTorch module, eval mode)."""
    B, E = features.shape
    S = captions.shape[1]
    H = raw["w_hh"].shape[1]
    w_ih_t = raw["w_ih"].T
    w_hh_t = raw["w_hh"].T
    bias = (raw["b_ih"] + raw["b_hh"])[None, :]
    embedding = jnp.take(raw["embed"], captions, axis=0)
    h = jnp.zeros((B, H), jnp.float32)
    c = jnp.zeros((B, H), jnp.float32)
    preds = []
    for s in range(S):
        x = features if s == 0 else embedding[:, s, :]
        gates = x @ w_ih_t + h @ w_hh_t + bias
        i_g = jax.nn.sigmoid(gates[:, 0 * H:1 * H])
        f_g = jax.nn.sigmoid(gates[:, 1 * H:2 * H])
        g_g = jnp.tanh(gates[:, 2 * H:3 * H])
        o_g = jax.nn.sigmoid(gates[:, 3 * H:4 * H])
        c = f_g * c + i_g * g_g
        h = o_g * jnp.tanh(c)
        preds.append(h @ raw["w_fc"].T + raw["b_fc"][None, :])
    return jnp.stack(preds, axis=1)


if __name__ == "__main__":
    batch = 4
    embed_size = 32
    hidden_size = 32
    vocab_size = 64
    seq_len = 8

    key = jax.random.PRNGKey(0)
    k_feat, k_cap, k_param = jax.random.split(key, 3)

    features = jax.random.normal(k_feat, (batch, embed_size), jnp.float32)
    captions = jax.random.randint(k_cap, (batch, seq_len), 0, vocab_size, jnp.int32)
    params = init_params(k_param, embed_size, hidden_size, vocab_size)

    preds = decoder_rnn_cell_forward(features, captions, params)
    preds = jax.block_until_ready(preds)

    ref = reference_forward(features, captions, params)
    assert preds.shape == (batch, seq_len, vocab_size)
    # bf16 matmuls vs f32 reference -> relaxed tolerance.
    assert jnp.allclose(preds, ref, atol=2e-2, rtol=2e-2), float(jnp.max(jnp.abs(preds - ref)))

    print("KERNEL_OK")
</pallas_src>

<mosaic_0001>
module attributes {stable_mosaic.version = 11 : i64} {
  func.func @decoder_kernel(%arg0: i32, %arg1: memref<8x8x128xf32, #tpu.memory_space<vmem>>, %arg2: memref<128x512xbf16, #tpu.memory_space<vmem>>, %arg3: memref<128x512xbf16, #tpu.memory_space<vmem>>, %arg4: memref<1x512xf32, #tpu.memory_space<vmem>>, %arg5: memref<128x128xbf16, #tpu.memory_space<vmem>>, %arg6: memref<1x128xf32, #tpu.memory_space<vmem>>, %arg7: memref<8x8x128xf32, #tpu.memory_space<vmem>>, %arg8: memref<8x8x512xf32, #tpu.memory_space<vmem>>, %arg9: memref<8x8x128xf32, #tpu.memory_space<vmem>>, %arg10: memref<8x128xf32, #tpu.memory_space<vmem>>, %arg11: memref<8x128xf32, #tpu.memory_space<vmem>>) attributes {dimension_semantics = [#tpu.dimension_semantics<arbitrary>], iteration_bounds = array<i64: 1>, scalar_prefetch = 0 : i64, scratch_operands = 4 : i64, tpu.core_type = #tpu.core_type<tc>, window_params = [{pipeline_mode = #tpu.pipeline_mode<synchronous>, transform_indices = @transform_0, window_bounds = array<i64: 8, 8, 128>}, {pipeline_mode = #tpu.pipeline_mode<synchronous>, transform_indices = @transform_1, window_bounds = array<i64: 128, 512>}, {pipeline_mode = #tpu.pipeline_mode<synchronous>, transform_indices = @transform_2, window_bounds = array<i64: 128, 512>}, {pipeline_mode = #tpu.pipeline_mode<synchronous>, transform_indices = @transform_3, window_bounds = array<i64: 1, 512>}, {pipeline_mode = #tpu.pipeline_mode<synchronous>, transform_indices = @transform_4, window_bounds = array<i64: 128, 128>}, {pipeline_mode = #tpu.pipeline_mode<synchronous>, transform_indices = @transform_5, window_bounds = array<i64: 1, 128>}, {pipeline_mode = #tpu.pipeline_mode<synchronous>, transform_indices = @transform_6, window_bounds = array<i64: 8, 8, 128>}]} {
    %c0 = arith.constant 0 : index
    %c0_0 = arith.constant 0 : index
    %c0_1 = arith.constant 0 : index
    %0 = vector.load %arg1[%c0, %c0_0, %c0_1] : memref<8x8x128xf32, #tpu.memory_space<vmem>>, vector<8x8x128xf32>
    %1 = vector.shape_cast %0 : vector<8x8x128xf32> to vector<64x128xf32>
    %2 = arith.truncf %1 : vector<64x128xf32> to vector<64x128xbf16>
    %c0_2 = arith.constant 0 : index
    %c0_3 = arith.constant 0 : index
    %3 = vector.load %arg2[%c0_2, %c0_3] : memref<128x512xbf16, #tpu.memory_space<vmem>>, vector<128x512xbf16>
    %cst = arith.constant dense<0.000000e+00> : vector<64x512xf32>
    %4 = tpu.matmul %2, %3, %cst {dimension_numbers = #tpu.dot_dimension_numbers<[1], [0], [0], [1], [0, 0, 1, 1], [], []>} : vector<64x128xbf16>, vector<128x512xbf16>, vector<64x512xf32> -> vector<64x512xf32>
    %c0_4 = arith.constant 0 : index
    %c0_5 = arith.constant 0 : index
    %5 = vector.load %arg4[%c0_4, %c0_5] : memref<1x512xf32, #tpu.memory_space<vmem>>, vector<1x512xf32>
    %6 = vector.broadcast %5 : vector<1x512xf32> to vector<64x512xf32>
    %7 = arith.addf %4, %6 : vector<64x512xf32>
    %8 = vector.shape_cast %7 : vector<64x512xf32> to vector<8x8x512xf32>
    %c0_6 = arith.constant 0 : index
    %c0_7 = arith.constant 0 : index
    %c0_8 = arith.constant 0 : index
    %9 = vector.load %arg8[%c0_6, %c0_7, %c0_8] : memref<8x8x512xf32, #tpu.memory_space<vmem>>, vector<8x8x512xf32>
    tpu.vector_store %arg8[%c0_6, %c0_7, %c0_8], %8 {strides = array<i32>} : memref<8x8x512xf32, #tpu.memory_space<vmem>>, vector<8x8x512xf32>,
    %cst_9 = arith.constant 0.000000e+00 : f32
    %10 = vector.broadcast %cst_9 : f32 to vector<8x128xf32>
    %c0_10 = arith.constant 0 : index
    %c0_11 = arith.constant 0 : index
    %11 = vector.load %arg10[%c0_10, %c0_11] : memref<8x128xf32, #tpu.memory_space<vmem>>, vector<8x128xf32>
    tpu.vector_store %arg10[%c0_10, %c0_11], %10 {strides = array<i32>} : memref<8x128xf32, #tpu.memory_space<vmem>>, vector<8x128xf32>,
    %cst_12 = arith.constant 0.000000e+00 : f32
    %12 = vector.broadcast %cst_12 : f32 to vector<8x128xf32>
    %c0_13 = arith.constant 0 : index
    %c0_14 = arith.constant 0 : index
    %13 = vector.load %arg11[%c0_13, %c0_14] : memref<8x128xf32, #tpu.memory_space<vmem>>, vector<8x128xf32>
    tpu.vector_store %arg11[%c0_13, %c0_14], %12 {strides = array<i32>} : memref<8x128xf32, #tpu.memory_space<vmem>>, vector<8x128xf32>,
    %c0_i32 = arith.constant 0 : i32
    %c0_15 = arith.constant 0 : index
    %c0_16 = arith.constant 0 : index
    %14 = vector.load %arg10[%c0_15, %c0_16] : memref<8x128xf32, #tpu.memory_space<vmem>>, vector<8x128xf32>
    %c0_17 = arith.constant 0 : index
    %c0_18 = arith.constant 0 : index
    %15 = vector.load %arg11[%c0_17, %c0_18] : memref<8x128xf32, #tpu.memory_space<vmem>>, vector<8x128xf32>
    %16 = arith.index_cast %c0_i32 : i32 to index
    %c0_19 = arith.constant 0 : index
    %c0_20 = arith.constant 0 : index
    %17 = vector.load %arg8[%16, %c0_19, %c0_20] : memref<8x8x512xf32, #tpu.memory_space<vmem>>, vector<1x8x512xf32>
    %18 = vector.shape_cast %17 : vector<1x8x512xf32> to vector<8x512xf32>
    %19 = arith.truncf %14 : vector<8x128xf32> to vector<8x128xbf16>
    %c0_21 = arith.constant 0 : index
    %c0_22 = arith.constant 0 : index
    %20 = vector.load %arg3[%c0_21, %c0_22] : memref<128x512xbf16, #tpu.memory_space<vmem>>, vector<128x512xbf16>
    %cst_23 = arith.constant dense<0.000000e+00> : vector<8x512xf32>
    %21 = tpu.matmul %19, %20, %cst_23 {dimension_numbers = #tpu.dot_dimension_numbers<[1], [0], [0], [1], [0, 0, 1, 1], [], []>} : vector<8x128xbf16>, vector<128x512xbf16>, vector<8x512xf32> -> vector<8x512xf32>
    %22 = arith.addf %18, %21 : vector<8x512xf32>
    %23 = vector.extract_strided_slice %22 {offsets = [0, 0], sizes = [8, 128], strides = [1, 1]} : vector<8x512xf32> to vector<8x128xf32>
    %24 = arith.negf %23 : vector<8x128xf32>
    %25 = math.exp %24 : vector<8x128xf32>
    %cst_24 = arith.constant 1.000000e+00 : f32
    %26 = vector.broadcast %cst_24 : f32 to vector<8x128xf32>
    %27 = arith.addf %26, %25 : vector<8x128xf32>
    %28 = arith.divf %26, %27 : vector<8x128xf32>
    %29 = vector.extract_strided_slice %22 {offsets = [0, 128], sizes = [8, 128], strides = [1, 1]} : vector<8x512xf32> to vector<8x128xf32>
    %30 = arith.negf %29 : vector<8x128xf32>
    %31 = math.exp %30 : vector<8x128xf32>
    %cst_25 = arith.constant 1.000000e+00 : f32
    %32 = vector.broadcast %cst_25 : f32 to vector<8x128xf32>
    %33 = arith.addf %32, %31 : vector<8x128xf32>
    %34 = arith.divf %32, %33 : vector<8x128xf32>
    %35 = vector.extract_strided_slice %22 {offsets = [0, 256], sizes = [8, 128], strides = [1, 1]} : vector<8x512xf32> to vector<8x128xf32>
    %36 = math.tanh %35 : vector<8x128xf32>
    %37 = vector.extract_strided_slice %22 {offsets = [0, 384], sizes = [8, 128], strides = [1, 1]} : vector<8x512xf32> to vector<8x128xf32>
    %38 = arith.negf %37 : vector<8x128xf32>
    %39 = math.exp %38 : vector<8x128xf32>
    %cst_26 = arith.constant 1.000000e+00 : f32
    %40 = vector.broadcast %cst_26 : f32 to vector<8x128xf32>
    %41 = arith.addf %40, %39 : vector<8x128xf32>
    %42 = arith.divf %40, %41 : vector<8x128xf32>
    %43 = arith.mulf %34, %15 : vector<8x128xf32>
    %44 = arith.mulf %28, %36 : vector<8x128xf32>
    %45 = arith.addf %43, %44 : vector<8x128xf32>
    %46 = math.tanh %45 : vector<8x128xf32>
    %47 = arith.mulf %42, %46 : vector<8x128xf32>
    %c0_27 = arith.constant 0 : index
    %c0_28 = arith.constant 0 : index
    %48 = vector.load %arg10[%c0_27, %c0_28] : memref<8x128xf32, #tpu.memory_space<vmem>>, vector<8x128xf32>
    tpu.vector_store %arg10[%c0_27, %c0_28], %47 {strides = array<i32>} : memref<8x128xf32, #tpu.memory_space<vmem>>, vector<8x128xf32>,
    %c0_29 = arith.constant 0 : index
    %c0_30 = arith.constant 0 : index
    %49 = vector.load %arg11[%c0_29, %c0_30] : memref<8x128xf32, #tpu.memory_space<vmem>>, vector<8x128xf32>
    tpu.vector_store %arg11[%c0_29, %c0_30], %45 {strides = array<i32>} : memref<8x128xf32, #tpu.memory_space<vmem>>, vector<8x128xf32>,
    %50 = arith.index_cast %c0_i32 : i32 to index
    %c0_31 = arith.constant 0 : index
    %c0_32 = arith.constant 0 : index
    %51 = vector.load %arg9[%50, %c0_31, %c0_32] : memref<8x8x128xf32, #tpu.memory_space<vmem>>, vector<1x8x128xf32>
    %52 = vector.shape_cast %51 : vector<1x8x128xf32> to vector<8x128xf32>
    %53 = vector.shape_cast %47 : vector<8x128xf32> to vector<1x8x128xf32>
    tpu.vector_store %arg9[%50, %c0_31, %c0_32], %53 {strides = array<i32>} : memref<8x8x128xf32, #tpu.memory_space<vmem>>, vector<1x8x128xf32>,
    %c1_i32 = arith.constant 1 : i32
    %c0_33 = arith.constant 0 : index
    %c0_34 = arith.constant 0 : index
    %54 = vector.load %arg10[%c0_33, %c0_34] : memref<8x128xf32, #tpu.memory_space<vmem>>, vector<8x128xf32>
    %c0_35 = arith.constant 0 : index
    %c0_36 = arith.constant 0 : index
    %55 = vector.load %arg11[%c0_35, %c0_36] : memref<8x128xf32, #tpu.memory_space<vmem>>, vector<8x128xf32>
    %56 = arith.index_cast %c1_i32 : i32 to index
    %c0_37 = arith.constant 0 : index
    %c0_38 = arith.constant 0 : index
    %57 = vector.load %arg8[%56, %c0_37, %c0_38] : memref<8x8x512xf32, #tpu.memory_space<vmem>>, vector<1x8x512xf32>
    %58 = vector.shape_cast %57 : vector<1x8x512xf32> to vector<8x512xf32>
    %59 = arith.truncf %54 : vector<8x128xf32> to vector<8x128xbf16>
    %c0_39 = arith.constant 0 : index
    %c0_40 = arith.constant 0 : index
    %60 = vector.load %arg3[%c0_39, %c0_40] : memref<128x512xbf16, #tpu.memory_space<vmem>>, vector<128x512xbf16>
    %cst_41 = arith.constant dense<0.000000e+00> : vector<8x512xf32>
    %61 = tpu.matmul %59, %60, %cst_41 {dimension_numbers = #tpu.dot_dimension_numbers<[1], [0], [0], [1], [0, 0, 1, 1], [], []>} : vector<8x128xbf16>, vector<128x512xbf16>, vector<8x512xf32> -> vector<8x512xf32>
    %62 = arith.addf %58, %61 : vector<8x512xf32>
    %63 = vector.extract_strided_slice %62 {offsets = [0, 0], sizes = [8, 128], strides = [1, 1]} : vector<8x512xf32> to vector<8x128xf32>
    %64 = arith.negf %63 : vector<8x128xf32>
    %65 = math.exp %64 : vector<8x128xf32>
    %cst_42 = arith.constant 1.000000e+00 : f32
    %66 = vector.broadcast %cst_42 : f32 to vector<8x128xf32>
    %67 = arith.addf %66, %65 : vector<8x128xf32>
    %68 = arith.divf %66, %67 : vector<8x128xf32>
    %69 = vector.extract_strided_slice %62 {offsets = [0, 128], sizes = [8, 128], strides = [1, 1]} : vector<8x512xf32> to vector<8x128xf32>
    %70 = arith.negf %69 : vector<8x128xf32>
    %71 = math.exp %70 : vector<8x128xf32>
    %cst_43 = arith.constant 1.000000e+00 : f32
    %72 = vector.broadcast %cst_43 : f32 to vector<8x128xf32>
    %73 = arith.addf %72, %71 : vector<8x128xf32>
    %74 = arith.divf %72, %73 : vector<8x128xf32>
    %75 = vector.extract_strided_slice %62 {offsets = [0, 256], sizes = [8, 128], strides = [1, 1]} : vector<8x512xf32> to vector<8x128xf32>
    %76 = math.tanh %75 : vector<8x128xf32>
    %77 = vector.extract_strided_slice %62 {offsets = [0, 384], sizes = [8, 128], strides = [1, 1]} : vector<8x512xf32> to vector<8x128xf32>
    %78 = arith.negf %77 : vector<8x128xf32>
    %79 = math.exp %78 : vector<8x128xf32>
    %cst_44 = arith.constant 1.000000e+00 : f32
    %80 = vector.broadcast %cst_44 : f32 to vector<8x128xf32>
    %81 = arith.addf %80, %79 : vector<8x128xf32>
    %82 = arith.divf %80, %81 : vector<8x128xf32>
    %83 = arith.mulf %74, %55 : vector<8x128xf32>
    %84 = arith.mulf %68, %76 : vector<8x128xf32>
    %85 = arith.addf %83, %84 : vector<8x128xf32>
    %86 = math.tanh %85 : vector<8x128xf32>
    %87 = arith.mulf %82, %86 : vector<8x128xf32>
    %c0_45 = arith.constant 0 : index
    %c0_46 = arith.constant 0 : index
    %88 = vector.load %arg10[%c0_45, %c0_46] : memref<8x128xf32, #tpu.memory_space<vmem>>, vector<8x128xf32>
    tpu.vector_store %arg10[%c0_45, %c0_46], %87 {strides = array<i32>} : memref<8x128xf32, #tpu.memory_space<vmem>>, vector<8x128xf32>,
    %c0_47 = arith.constant 0 : index
    %c0_48 = arith.constant 0 : index
    %89 = vector.load %arg11[%c0_47, %c0_48] : memref<8x128xf32, #tpu.memory_space<vmem>>, vector<8x128xf32>
    tpu.vector_store %arg11[%c0_47, %c0_48], %85 {strides = array<i32>} : memref<8x128xf32, #tpu.memory_space<vmem>>, vector<8x128xf32>,
    %90 = arith.index_cast %c1_i32 : i32 to index
    %c0_49 = arith.constant 0 : index
    %c0_50 = arith.constant 0 : index
    %91 = vector.load %arg9[%90, %c0_49, %c0_50] : memref<8x8x128xf32, #tpu.memory_space<vmem>>, vector<1x8x128xf32>
    %92 = vector.shape_cast %91 : vector<1x8x128xf32> to vector<8x128xf32>
    %93 = vector.shape_cast %87 : vector<8x128xf32> to vector<1x8x128xf32>
    tpu.vector_store %arg9[%90, %c0_49, %c0_50], %93 {strides = array<i32>} : memref<8x8x128xf32, #tpu.memory_space<vmem>>, vector<1x8x128xf32>,
    %c2_i32 = arith.constant 2 : i32
    %c0_51 = arith.constant 0 : index
    %c0_52 = arith.constant 0 : index
    %94 = vector.load %arg10[%c0_51, %c0_52] : memref<8x128xf32, #tpu.memory_space<vmem>>, vector<8x128xf32>
    %c0_53 = arith.constant 0 : index
    %c0_54 = arith.constant 0 : index
    %95 = vector.load %arg11[%c0_53, %c0_54] : memref<8x128xf32, #tpu.memory_space<vmem>>, vector<8x128xf32>
    %96 = arith.index_cast %c2_i32 : i32 to index
    %c0_55 = arith.constant 0 : index
    %c0_56 = arith.constant 0 : index
    %97 = vector.load %arg8[%96, %c0_55, %c0_56] : memref<8x8x512xf32, #tpu.memory_space<vmem>>, vector<1x8x512xf32>
    %98 = vector.shape_cast %97 : vector<1x8x512xf32> to vector<8x512xf32>
    %99 = arith.truncf %94 : vector<8x128xf32> to vector<8x128xbf16>
    %c0_57 = arith.constant 0 : index
    %c0_58 = arith.constant 0 : index
    %100 = vector.load %arg3[%c0_57, %c0_58] : memref<128x512xbf16, #tpu.memory_space<vmem>>, vector<128x512xbf16>
    %cst_59 = arith.constant dense<0.000000e+00> : vector<8x512xf32>
    %101 = tpu.matmul %99, %100, %cst_59 {dimension_numbers = #tpu.dot_dimension_numbers<[1], [0], [0], [1], [0, 0, 1, 1], [], []>} : vector<8x128xbf16>, vector<128x512xbf16>, vector<8x512xf32> -> vector<8x512xf32>
    %102 = arith.addf %98, %101 : vector<8x512xf32>
    %103 = vector.extract_strided_slice %102 {offsets = [0, 0], sizes = [8, 128], strides = [1, 1]} : vector<8x512xf32> to vector<8x128xf32>
    %104 = arith.negf %103 : vector<8x128xf32>
    %105 = math.exp %104 : vector<8x128xf32>
    %cst_60 = arith.constant 1.000000e+00 : f32
    %106 = vector.broadcast %cst_60 : f32 to vector<8x128xf32>
    %107 = arith.addf %106, %105 : vector<8x128xf32>
    %108 = arith.divf %106, %107 : vector<8x128xf32>
    %109 = vector.extract_strided_slice %102 {offsets = [0, 128], sizes = [8, 128], strides = [1, 1]} : vector<8x512xf32> to vector<8x128xf32>
    %110 = arith.negf %109 : vector<8x128xf32>
    %111 = math.exp %110 : vector<8x128xf32>
    %cst_61 = arith.constant 1.000000e+00 : f32
    %112 = vector.broadcast %cst_61 : f32 to vector<8x128xf32>
    %113 = arith.addf %112, %111 : vector<8x128xf32>
    %114 = arith.divf %112, %113 : vector<8x128xf32>
    %115 = vector.extract_strided_slice %102 {offsets = [0, 256], sizes = [8, 128], strides = [1, 1]} : vector<8x512xf32> to vector<8x128xf32>
    %116 = math.tanh %115 : vector<8x128xf32>
    %117 = vector.extract_strided_slice %102 {offsets = [0, 384], sizes = [8, 128], strides = [1, 1]} : vector<8x512xf32> to vector<8x128xf32>
    %118 = arith.negf %117 : vector<8x128xf32>
    %119 = math.exp %118 : vector<8x128xf32>
    %cst_62 = arith.constant 1.000000e+00 : f32
    %120 = vector.broadcast %cst_62 : f32 to vector<8x128xf32>
    %121 = arith.addf %120, %119 : vector<8x128xf32>
    %122 = arith.divf %120, %121 : vector<8x128xf32>
    %123 = arith.mulf %114, %95 : vector<8x128xf32>
    %124 = arith.mulf %108, %116 : vector<8x128xf32>
    %125 = arith.addf %123, %124 : vector<8x128xf32>
    %126 = math.tanh %125 : vector<8x128xf32>
    %127 = arith.mulf %122, %126 : vector<8x128xf32>
    %c0_63 = arith.constant 0 : index
    %c0_64 = arith.constant 0 : index
    %128 = vector.load %arg10[%c0_63, %c0_64] : memref<8x128xf32, #tpu.memory_space<vmem>>, vector<8x128xf32>
    tpu.vector_store %arg10[%c0_63, %c0_64], %127 {strides = array<i32>} : memref<8x128xf32, #tpu.memory_space<vmem>>, vector<8x128xf32>,
    %c0_65 = arith.constant 0 : index
    %c0_66 = arith.constant 0 : index
    %129 = vector.load %arg11[%c0_65, %c0_66] : memref<8x128xf32, #tpu.memory_space<vmem>>, vector<8x128xf32>
    tpu.vector_store %arg11[%c0_65, %c0_66], %125 {strides = array<i32>} : memref<8x128xf32, #tpu.memory_space<vmem>>, vector<8x128xf32>,
    %130 = arith.index_cast %c2_i32 : i32 to index
    %c0_67 = arith.constant 0 : index
    %c0_68 = arith.constant 0 : index
    %131 = vector.load %arg9[%130, %c0_67, %c0_68] : memref<8x8x128xf32, #tpu.memory_space<vmem>>, vector<1x8x128xf32>
    %132 = vector.shape_cast %131 : vector<1x8x128xf32> to vector<8x128xf32>
    %133 = vector.shape_cast %127 : vector<8x128xf32> to vector<1x8x128xf32>
    tpu.vector_store %arg9[%130, %c0_67, %c0_68], %133 {strides = array<i32>} : memref<8x8x128xf32, #tpu.memory_space<vmem>>, vector<1x8x128xf32>,
    %c3_i32 = arith.constant 3 : i32
    %c0_69 = arith.constant 0 : index
    %c0_70 = arith.constant 0 : index
    %134 = vector.load %arg10[%c0_69, %c0_70] : memref<8x128xf32, #tpu.memory_space<vmem>>, vector<8x128xf32>
    %c0_71 = arith.constant 0 : index
    %c0_72 = arith.constant 0 : index
    %135 = vector.load %arg11[%c0_71, %c0_72] : memref<8x128xf32, #tpu.memory_space<vmem>>, vector<8x128xf32>
    %136 = arith.index_cast %c3_i32 : i32 to index
    %c0_73 = arith.constant 0 : index
    %c0_74 = arith.constant 0 : index
    %137 = vector.load %arg8[%136, %c0_73, %c0_74] : memref<8x8x512xf32, #tpu.memory_space<vmem>>, vector<1x8x512xf32>
    %138 = vector.shape_cast %137 : vector<1x8x512xf32> to vector<8x512xf32>
    %139 = arith.truncf %134 : vector<8x128xf32> to vector<8x128xbf16>
    %c0_75 = arith.constant 0 : index
    %c0_76 = arith.constant 0 : index
    %140 = vector.load %arg3[%c0_75, %c0_76] : memref<128x512xbf16, #tpu.memory_space<vmem>>, vector<128x512xbf16>
    %cst_77 = arith.constant dense<0.000000e+00> : vector<8x512xf32>
    %141 = tpu.matmul %139, %140, %cst_77 {dimension_numbers = #tpu.dot_dimension_numbers<[1], [0], [0], [1], [0, 0, 1, 1], [], []>} : vector<8x128xbf16>, vector<128x512xbf16>, vector<8x512xf32> -> vector<8x512xf32>
    %142 = arith.addf %138, %141 : vector<8x512xf32>
    %143 = vector.extract_strided_slice %142 {offsets = [0, 0], sizes = [8, 128], strides = [1, 1]} : vector<8x512xf32> to vector<8x128xf32>
    %144 = arith.negf %143 : vector<8x128xf32>
    %145 = math.exp %144 : vector<8x128xf32>
    %cst_78 = arith.constant 1.000000e+00 : f32
    %146 = vector.broadcast %cst_78 : f32 to vector<8x128xf32>
    %147 = arith.addf %146, %145 : vector<8x128xf32>
    %148 = arith.divf %146, %147 : vector<8x128xf32>
    %149 = vector.extract_strided_slice %142 {offsets = [0, 128], sizes = [8, 128], strides = [1, 1]} : vector<8x512xf32> to vector<8x128xf32>
    %150 = arith.negf %149 : vector<8x128xf32>
    %151 = math.exp %150 : vector<8x128xf32>
    %cst_79 = arith.constant 1.000000e+00 : f32
    %152 = vector.broadcast %cst_79 : f32 to vector<8x128xf32>
    %153 = arith.addf %152, %151 : vector<8x128xf32>
    %154 = arith.divf %152, %153 : vector<8x128xf32>
    %155 = vector.extract_strided_slice %142 {offsets = [0, 256], sizes = [8, 128], strides = [1, 1]} : vector<8x512xf32> to vector<8x128xf32>
    %156 = math.tanh %155 : vector<8x128xf32>
    %157 = vector.extract_strided_slice %142 {offsets = [0, 384], sizes = [8, 128], strides = [1, 1]} : vector<8x512xf32> to vector<8x128xf32>
    %158 = arith.negf %157 : vector<8x128xf32>
    %159 = math.exp %158 : vector<8x128xf32>
    %cst_80 = arith.constant 1.000000e+00 : f32
    %160 = vector.broadcast %cst_80 : f32 to vector<8x128xf32>
    %161 = arith.addf %160, %159 : vector<8x128xf32>
    %162 = arith.divf %160, %161 : vector<8x128xf32>
    %163 = arith.mulf %154, %135 : vector<8x128xf32>
    %164 = arith.mulf %148, %156 : vector<8x128xf32>
    %165 = arith.addf %163, %164 : vector<8x128xf32>
    %166 = math.tanh %165 : vector<8x128xf32>
    %167 = arith.mulf %162, %166 : vector<8x128xf32>
    %c0_81 = arith.constant 0 : index
    %c0_82 = arith.constant 0 : index
    %168 = vector.load %arg10[%c0_81, %c0_82] : memref<8x128xf32, #tpu.memory_space<vmem>>, vector<8x128xf32>
    tpu.vector_store %arg10[%c0_81, %c0_82], %167 {strides = array<i32>} : memref<8x128xf32, #tpu.memory_space<vmem>>, vector<8x128xf32>,
    %c0_83 = arith.constant 0 : index
    %c0_84 = arith.constant 0 : index
    %169 = vector.load %arg11[%c0_83, %c0_84] : memref<8x128xf32, #tpu.memory_space<vmem>>, vector<8x128xf32>
    tpu.vector_store %arg11[%c0_83, %c0_84], %165 {strides = array<i32>} : memref<8x128xf32, #tpu.memory_space<vmem>>, vector<8x128xf32>,
    %170 = arith.index_cast %c3_i32 : i32 to index
    %c0_85 = arith.constant 0 : index
    %c0_86 = arith.constant 0 : index
    %171 = vector.load %arg9[%170, %c0_85, %c0_86] : memref<8x8x128xf32, #tpu.memory_space<vmem>>, vector<1x8x128xf32>
    %172 = vector.shape_cast %171 : vector<1x8x128xf32> to vector<8x128xf32>
    %173 = vector.shape_cast %167 : vector<8x128xf32> to vector<1x8x128xf32>
    tpu.vector_store %arg9[%170, %c0_85, %c0_86], %173 {strides = array<i32>} : memref<8x8x128xf32, #tpu.memory_space<vmem>>, vector<1x8x128xf32>,
    %c4_i32 = arith.constant 4 : i32
    %c0_87 = arith.constant 0 : index
    %c0_88 = arith.constant 0 : index
    %174 = vector.load %arg10[%c0_87, %c0_88] : memref<8x128xf32, #tpu.memory_space<vmem>>, vector<8x128xf32>
    %c0_89 = arith.constant 0 : index
    %c0_90 = arith.constant 0 : index
    %175 = vector.load %arg11[%c0_89, %c0_90] : memref<8x128xf32, #tpu.memory_space<vmem>>, vector<8x128xf32>
    %176 = arith.index_cast %c4_i32 : i32 to index
    %c0_91 = arith.constant 0 : index
    %c0_92 = arith.constant 0 : index
    %177 = vector.load %arg8[%176, %c0_91, %c0_92] : memref<8x8x512xf32, #tpu.memory_space<vmem>>, vector<1x8x512xf32>
    %178 = vector.shape_cast %177 : vector<1x8x512xf32> to vector<8x512xf32>
    %179 = arith.truncf %174 : vector<8x128xf32> to vector<8x128xbf16>
    %c0_93 = arith.constant 0 : index
    %c0_94 = arith.constant 0 : index
    %180 = vector.load %arg3[%c0_93, %c0_94] : memref<128x512xbf16, #tpu.memory_space<vmem>>, vector<128x512xbf16>
    %cst_95 = arith.constant dense<0.000000e+00> : vector<8x512xf32>
    %181 = tpu.matmul %179, %180, %cst_95 {dimension_numbers = #tpu.dot_dimension_numbers<[1], [0], [0], [1], [0, 0, 1, 1], [], []>} : vector<8x128xbf16>, vector<128x512xbf16>, vector<8x512xf32> -> vector<8x512xf32>
    %182 = arith.addf %178, %181 : vector<8x512xf32>
    %183 = vector.extract_strided_slice %182 {offsets = [0, 0], sizes = [8, 128], strides = [1, 1]} : vector<8x512xf32> to vector<8x128xf32>
    %184 = arith.negf %183 : vector<8x128xf32>
    %185 = math.exp %184 : vector<8x128xf32>
    %cst_96 = arith.constant 1.000000e+00 : f32
    %186 = vector.broadcast %cst_96 : f32 to vector<8x128xf32>
    %187 = arith.addf %186, %185 : vector<8x128xf32>
    %188 = arith.divf %186, %187 : vector<8x128xf32>
    %189 = vector.extract_strided_slice %182 {offsets = [0, 128], sizes = [8, 128], strides = [1, 1]} : vector<8x512xf32> to vector<8x128xf32>
    %190 = arith.negf %189 : vector<8x128xf32>
    %191 = math.exp %190 : vector<8x128xf32>
    %cst_97 = arith.constant 1.000000e+00 : f32
    %192 = vector.broadcast %cst_97 : f32 to vector<8x128xf32>
    %193 = arith.addf %192, %191 : vector<8x128xf32>
    %194 = arith.divf %192, %193 : vector<8x128xf32>
    %195 = vector.extract_strided_slice %182 {offsets = [0, 256], sizes = [8, 128], strides = [1, 1]} : vector<8x512xf32> to vector<8x128xf32>
    %196 = math.tanh %195 : vector<8x128xf32>
    %197 = vector.extract_strided_slice %182 {offsets = [0, 384], sizes = [8, 128], strides = [1, 1]} : vector<8x512xf32> to vector<8x128xf32>
    %198 = arith.negf %197 : vector<8x128xf32>
    %199 = math.exp %198 : vector<8x128xf32>
    %cst_98 = arith.constant 1.000000e+00 : f32
    %200 = vector.broadcast %cst_98 : f32 to vector<8x128xf32>
    %201 = arith.addf %200, %199 : vector<8x128xf32>
    %202 = arith.divf %200, %201 : vector<8x128xf32>
    %203 = arith.mulf %194, %175 : vector<8x128xf32>
    %204 = arith.mulf %188, %196 : vector<8x128xf32>
    %205 = arith.addf %203, %204 : vector<8x128xf32>
    %206 = math.tanh %205 : vector<8x128xf32>
    %207 = arith.mulf %202, %206 : vector<8x128xf32>
    %c0_99 = arith.constant 0 : index
    %c0_100 = arith.constant 0 : index
    %208 = vector.load %arg10[%c0_99, %c0_100] : memref<8x128xf32, #tpu.memory_space<vmem>>, vector<8x128xf32>
    tpu.vector_store %arg10[%c0_99, %c0_100], %207 {strides = array<i32>} : memref<8x128xf32, #tpu.memory_space<vmem>>, vector<8x128xf32>,
    %c0_101 = arith.constant 0 : index
    %c0_102 = arith.constant 0 : index
    %209 = vector.load %arg11[%c0_101, %c0_102] : memref<8x128xf32, #tpu.memory_space<vmem>>, vector<8x128xf32>
    tpu.vector_store %arg11[%c0_101, %c0_102], %205 {strides = array<i32>} : memref<8x128xf32, #tpu.memory_space<vmem>>, vector<8x128xf32>,
    %210 = arith.index_cast %c4_i32 : i32 to index
    %c0_103 = arith.constant 0 : index
    %c0_104 = arith.constant 0 : index
    %211 = vector.load %arg9[%210, %c0_103, %c0_104] : memref<8x8x128xf32, #tpu.memory_space<vmem>>, vector<1x8x128xf32>
    %212 = vector.shape_cast %211 : vector<1x8x128xf32> to vector<8x128xf32>
    %213 = vector.shape_cast %207 : vector<8x128xf32> to vector<1x8x128xf32>
    tpu.vector_store %arg9[%210, %c0_103, %c0_104], %213 {strides = array<i32>} : memref<8x8x128xf32, #tpu.memory_space<vmem>>, vector<1x8x128xf32>,
    %c5_i32 = arith.constant 5 : i32
    %c0_105 = arith.constant 0 : index
    %c0_106 = arith.constant 0 : index
    %214 = vector.load %arg10[%c0_105, %c0_106] : memref<8x128xf32, #tpu.memory_space<vmem>>, vector<8x128xf32>
    %c0_107 = arith.constant 0 : index
    %c0_108 = arith.constant 0 : index
    %215 = vector.load %arg11[%c0_107, %c0_108] : memref<8x128xf32, #tpu.memory_space<vmem>>, vector<8x128xf32>
    %216 = arith.index_cast %c5_i32 : i32 to index
    %c0_109 = arith.constant 0 : index
    %c0_110 = arith.constant 0 : index
    %217 = vector.load %arg8[%216, %c0_109, %c0_110] : memref<8x8x512xf32, #tpu.memory_space<vmem>>, vector<1x8x512xf32>
    %218 = vector.shape_cast %217 : vector<1x8x512xf32> to vector<8x512xf32>
    %219 = arith.truncf %214 : vector<8x128xf32> to vector<8x128xbf16>
    %c0_111 = arith.constant 0 : index
    %c0_112 = arith.constant 0 : index
    %220 = vector.load %arg3[%c0_111, %c0_112] : memref<128x512xbf16, #tpu.memory_space<vmem>>, vector<128x512xbf16>
    %cst_113 = arith.constant dense<0.000000e+00> : vector<8x512xf32>
    %221 = tpu.matmul %219, %220, %cst_113 {dimension_numbers = #tpu.dot_dimension_numbers<[1], [0], [0], [1], [0, 0, 1, 1], [], []>} : vector<8x128xbf16>, vector<128x512xbf16>, vector<8x512xf32> -> vector<8x512xf32>
    %222 = arith.addf %218, %221 : vector<8x512xf32>
    %223 = vector.extract_strided_slice %222 {offsets = [0, 0], sizes = [8, 128], strides = [1, 1]} : vector<8x512xf32> to vector<8x128xf32>
    %224 = arith.negf %223 : vector<8x128xf32>
    %225 = math.exp %224 : vector<8x128xf32>
    %cst_114 = arith.constant 1.000000e+00 : f32
    %226 = vector.broadcast %cst_114 : f32 to vector<8x128xf32>
    %227 = arith.addf %226, %225 : vector<8x128xf32>
    %228 = arith.divf %226, %227 : vector<8x128xf32>
    %229 = vector.extract_strided_slice %222 {offsets = [0, 128], sizes = [8, 128], strides = [1, 1]} : vector<8x512xf32> to vector<8x128xf32>
    %230 = arith.negf %229 : vector<8x128xf32>
    %231 = math.exp %230 : vector<8x128xf32>
    %cst_115 = arith.constant 1.000000e+00 : f32
    %232 = vector.broadcast %cst_115 : f32 to vector<8x128xf32>
    %233 = arith.addf %232, %231 : vector<8x128xf32>
    %234 = arith.divf %232, %233 : vector<8x128xf32>
    %235 = vector.extract_strided_slice %222 {offsets = [0, 256], sizes = [8, 128], strides = [1, 1]} : vector<8x512xf32> to vector<8x128xf32>
    %236 = math.tanh %235 : vector<8x128xf32>
    %237 = vector.extract_strided_slice %222 {offsets = [0, 384], sizes = [8, 128], strides = [1, 1]} : vector<8x512xf32> to vector<8x128xf32>
    %238 = arith.negf %237 : vector<8x128xf32>
    %239 = math.exp %238 : vector<8x128xf32>
    %cst_116 = arith.constant 1.000000e+00 : f32
    %240 = vector.broadcast %cst_116 : f32 to vector<8x128xf32>
    %241 = arith.addf %240, %239 : vector<8x128xf32>
    %242 = arith.divf %240, %241 : vector<8x128xf32>
    %243 = arith.mulf %234, %215 : vector<8x128xf32>
    %244 = arith.mulf %228, %236 : vector<8x128xf32>
    %245 = arith.addf %243, %244 : vector<8x128xf32>
    %246 = math.tanh %245 : vector<8x128xf32>
    %247 = arith.mulf %242, %246 : vector<8x128xf32>
    %c0_117 = arith.constant 0 : index
    %c0_118 = arith.constant 0 : index
    %248 = vector.load %arg10[%c0_117, %c0_118] : memref<8x128xf32, #tpu.memory_space<vmem>>, vector<8x128xf32>
    tpu.vector_store %arg10[%c0_117, %c0_118], %247 {strides = array<i32>} : memref<8x128xf32, #tpu.memory_space<vmem>>, vector<8x128xf32>,
    %c0_119 = arith.constant 0 : index
    %c0_120 = arith.constant 0 : index
    %249 = vector.load %arg11[%c0_119, %c0_120] : memref<8x128xf32, #tpu.memory_space<vmem>>, vector<8x128xf32>
    tpu.vector_store %arg11[%c0_119, %c0_120], %245 {strides = array<i32>} : memref<8x128xf32, #tpu.memory_space<vmem>>, vector<8x128xf32>,
    %250 = arith.index_cast %c5_i32 : i32 to index
    %c0_121 = arith.constant 0 : index
    %c0_122 = arith.constant 0 : index
    %251 = vector.load %arg9[%250, %c0_121, %c0_122] : memref<8x8x128xf32, #tpu.memory_space<vmem>>, vector<1x8x128xf32>
    %252 = vector.shape_cast %251 : vector<1x8x128xf32> to vector<8x128xf32>
    %253 = vector.shape_cast %247 : vector<8x128xf32> to vector<1x8x128xf32>
    tpu.vector_store %arg9[%250, %c0_121, %c0_122], %253 {strides = array<i32>} : memref<8x8x128xf32, #tpu.memory_space<vmem>>, vector<1x8x128xf32>,
    %c6_i32 = arith.constant 6 : i32
    %c0_123 = arith.constant 0 : index
    %c0_124 = arith.constant 0 : index
    %254 = vector.load %arg10[%c0_123, %c0_124] : memref<8x128xf32, #tpu.memory_space<vmem>>, vector<8x128xf32>
    %c0_125 = arith.constant 0 : index
    %c0_126 = arith.constant 0 : index
    %255 = vector.load %arg11[%c0_125, %c0_126] : memref<8x128xf32, #tpu.memory_space<vmem>>, vector<8x128xf32>
    %256 = arith.index_cast %c6_i32 : i32 to index
    %c0_127 = arith.constant 0 : index
    %c0_128 = arith.constant 0 : index
    %257 = vector.load %arg8[%256, %c0_127, %c0_128] : memref<8x8x512xf32, #tpu.memory_space<vmem>>, vector<1x8x512xf32>
    %258 = vector.shape_cast %257 : vector<1x8x512xf32> to vector<8x512xf32>
    %259 = arith.truncf %254 : vector<8x128xf32> to vector<8x128xbf16>
    %c0_129 = arith.constant 0 : index
    %c0_130 = arith.constant 0 : index
    %260 = vector.load %arg3[%c0_129, %c0_130] : memref<128x512xbf16, #tpu.memory_space<vmem>>, vector<128x512xbf16>
    %cst_131 = arith.constant dense<0.000000e+00> : vector<8x512xf32>
    %261 = tpu.matmul %259, %260, %cst_131 {dimension_numbers = #tpu.dot_dimension_numbers<[1], [0], [0], [1], [0, 0, 1, 1], [], []>} : vector<8x128xbf16>, vector<128x512xbf16>, vector<8x512xf32> -> vector<8x512xf32>
    %262 = arith.addf %258, %261 : vector<8x512xf32>
    %263 = vector.extract_strided_slice %262 {offsets = [0, 0], sizes = [8, 128], strides = [1, 1]} : vector<8x512xf32> to vector<8x128xf32>
    %264 = arith.negf %263 : vector<8x128xf32>
    %265 = math.exp %264 : vector<8x128xf32>
    %cst_132 = arith.constant 1.000000e+00 : f32
    %266 = vector.broadcast %cst_132 : f32 to vector<8x128xf32>
    %267 = arith.addf %266, %265 : vector<8x128xf32>
    %268 = arith.divf %266, %267 : vector<8x128xf32>
    %269 = vector.extract_strided_slice %262 {offsets = [0, 128], sizes = [8, 128], strides = [1, 1]} : vector<8x512xf32> to vector<8x128xf32>
    %270 = arith.negf %269 : vector<8x128xf32>
    %271 = math.exp %270 : vector<8x128xf32>
    %cst_133 = arith.constant 1.000000e+00 : f32
    %272 = vector.broadcast %cst_133 : f32 to vector<8x128xf32>
    %273 = arith.addf %272, %271 : vector<8x128xf32>
    %274 = arith.divf %272, %273 : vector<8x128xf32>
    %275 = vector.extract_strided_slice %262 {offsets = [0, 256], sizes = [8, 128], strides = [1, 1]} : vector<8x512xf32> to vector<8x128xf32>
    %276 = math.tanh %275 : vector<8x128xf32>
    %277 = vector.extract_strided_slice %262 {offsets = [0, 384], sizes = [8, 128], strides = [1, 1]} : vector<8x512xf32> to vector<8x128xf32>
    %278 = arith.negf %277 : vector<8x128xf32>
    %279 = math.exp %278 : vector<8x128xf32>
    %cst_134 = arith.constant 1.000000e+00 : f32
    %280 = vector.broadcast %cst_134 : f32 to vector<8x128xf32>
    %281 = arith.addf %280, %279 : vector<8x128xf32>
    %282 = arith.divf %280, %281 : vector<8x128xf32>
    %283 = arith.mulf %274, %255 : vector<8x128xf32>
    %284 = arith.mulf %268, %276 : vector<8x128xf32>
    %285 = arith.addf %283, %284 : vector<8x128xf32>
    %286 = math.tanh %285 : vector<8x128xf32>
    %287 = arith.mulf %282, %286 : vector<8x128xf32>
    %c0_135 = arith.constant 0 : index
    %c0_136 = arith.constant 0 : index
    %288 = vector.load %arg10[%c0_135, %c0_136] : memref<8x128xf32, #tpu.memory_space<vmem>>, vector<8x128xf32>
    tpu.vector_store %arg10[%c0_135, %c0_136], %287 {strides = array<i32>} : memref<8x128xf32, #tpu.memory_space<vmem>>, vector<8x128xf32>,
    %c0_137 = arith.constant 0 : index
    %c0_138 = arith.constant 0 : index
    %289 = vector.load %arg11[%c0_137, %c0_138] : memref<8x128xf32, #tpu.memory_space<vmem>>, vector<8x128xf32>
    tpu.vector_store %arg11[%c0_137, %c0_138], %285 {strides = array<i32>} : memref<8x128xf32, #tpu.memory_space<vmem>>, vector<8x128xf32>,
    %290 = arith.index_cast %c6_i32 : i32 to index
    %c0_139 = arith.constant 0 : index
    %c0_140 = arith.constant 0 : index
    %291 = vector.load %arg9[%290, %c0_139, %c0_140] : memref<8x8x128xf32, #tpu.memory_space<vmem>>, vector<1x8x128xf32>
    %292 = vector.shape_cast %291 : vector<1x8x128xf32> to vector<8x128xf32>
    %293 = vector.shape_cast %287 : vector<8x128xf32> to vector<1x8x128xf32>
    tpu.vector_store %arg9[%290, %c0_139, %c0_140], %293 {strides = array<i32>} : memref<8x8x128xf32, #tpu.memory_space<vmem>>, vector<1x8x128xf32>,
    %c7_i32 = arith.constant 7 : i32
    %c0_141 = arith.constant 0 : index
    %c0_142 = arith.constant 0 : index
    %294 = vector.load %arg10[%c0_141, %c0_142] : memref<8x128xf32, #tpu.memory_space<vmem>>, vector<8x128xf32>
    %c0_143 = arith.constant 0 : index
    %c0_144 = arith.constant 0 : index
    %295 = vector.load %arg11[%c0_143, %c0_144] : memref<8x128xf32, #tpu.memory_space<vmem>>, vector<8x128xf32>
    %296 = arith.index_cast %c7_i32 : i32 to index
    %c0_145 = arith.constant 0 : index
    %c0_146 = arith.constant 0 : index
    %297 = vector.load %arg8[%296, %c0_145, %c0_146] : memref<8x8x512xf32, #tpu.memory_space<vmem>>, vector<1x8x512xf32>
    %298 = vector.shape_cast %297 : vector<1x8x512xf32> to vector<8x512xf32>
    %299 = arith.truncf %294 : vector<8x128xf32> to vector<8x128xbf16>
    %c0_147 = arith.constant 0 : index
    %c0_148 = arith.constant 0 : index
    %300 = vector.load %arg3[%c0_147, %c0_148] : memref<128x512xbf16, #tpu.memory_space<vmem>>, vector<128x512xbf16>
    %cst_149 = arith.constant dense<0.000000e+00> : vector<8x512xf32>
    %301 = tpu.matmul %299, %300, %cst_149 {dimension_numbers = #tpu.dot_dimension_numbers<[1], [0], [0], [1], [0, 0, 1, 1], [], []>} : vector<8x128xbf16>, vector<128x512xbf16>, vector<8x512xf32> -> vector<8x512xf32>
    %302 = arith.addf %298, %301 : vector<8x512xf32>
    %303 = vector.extract_strided_slice %302 {offsets = [0, 0], sizes = [8, 128], strides = [1, 1]} : vector<8x512xf32> to vector<8x128xf32>
    %304 = arith.negf %303 : vector<8x128xf32>
    %305 = math.exp %304 : vector<8x128xf32>
    %cst_150 = arith.constant 1.000000e+00 : f32
    %306 = vector.broadcast %cst_150 : f32 to vector<8x128xf32>
    %307 = arith.addf %306, %305 : vector<8x128xf32>
    %308 = arith.divf %306, %307 : vector<8x128xf32>
    %309 = vector.extract_strided_slice %302 {offsets = [0, 128], sizes = [8, 128], strides = [1, 1]} : vector<8x512xf32> to vector<8x128xf32>
    %310 = arith.negf %309 : vector<8x128xf32>
    %311 = math.exp %310 : vector<8x128xf32>
    %cst_151 = arith.constant 1.000000e+00 : f32
    %312 = vector.broadcast %cst_151 : f32 to vector<8x128xf32>
    %313 = arith.addf %312, %311 : vector<8x128xf32>
    %314 = arith.divf %312, %313 : vector<8x128xf32>
    %315 = vector.extract_strided_slice %302 {offsets = [0, 256], sizes = [8, 128], strides = [1, 1]} : vector<8x512xf32> to vector<8x128xf32>
    %316 = math.tanh %315 : vector<8x128xf32>
    %317 = vector.extract_strided_slice %302 {offsets = [0, 384], sizes = [8, 128], strides = [1, 1]} : vector<8x512xf32> to vector<8x128xf32>
    %318 = arith.negf %317 : vector<8x128xf32>
    %319 = math.exp %318 : vector<8x128xf32>
    %cst_152 = arith.constant 1.000000e+00 : f32
    %320 = vector.broadcast %cst_152 : f32 to vector<8x128xf32>
    %321 = arith.addf %320, %319 : vector<8x128xf32>
    %322 = arith.divf %320, %321 : vector<8x128xf32>
    %323 = arith.mulf %314, %295 : vector<8x128xf32>
    %324 = arith.mulf %308, %316 : vector<8x128xf32>
    %325 = arith.addf %323, %324 : vector<8x128xf32>
    %326 = math.tanh %325 : vector<8x128xf32>
    %327 = arith.mulf %322, %326 : vector<8x128xf32>
    %c0_153 = arith.constant 0 : index
    %c0_154 = arith.constant 0 : index
    %328 = vector.load %arg10[%c0_153, %c0_154] : memref<8x128xf32, #tpu.memory_space<vmem>>, vector<8x128xf32>
    tpu.vector_store %arg10[%c0_153, %c0_154], %327 {strides = array<i32>} : memref<8x128xf32, #tpu.memory_space<vmem>>, vector<8x128xf32>,
    %c0_155 = arith.constant 0 : index
    %c0_156 = arith.constant 0 : index
    %329 = vector.load %arg11[%c0_155, %c0_156] : memref<8x128xf32, #tpu.memory_space<vmem>>, vector<8x128xf32>
    tpu.vector_store %arg11[%c0_155, %c0_156], %325 {strides = array<i32>} : memref<8x128xf32, #tpu.memory_space<vmem>>, vector<8x128xf32>,
    %330 = arith.index_cast %c7_i32 : i32 to index
    %c0_157 = arith.constant 0 : index
    %c0_158 = arith.constant 0 : index
    %331 = vector.load %arg9[%330, %c0_157, %c0_158] : memref<8x8x128xf32, #tpu.memory_space<vmem>>, vector<1x8x128xf32>
    %332 = vector.shape_cast %331 : vector<1x8x128xf32> to vector<8x128xf32>
    %333 = vector.shape_cast %327 : vector<8x128xf32> to vector<1x8x128xf32>
    tpu.vector_store %arg9[%330, %c0_157, %c0_158], %333 {strides = array<i32>} : memref<8x8x128xf32, #tpu.memory_space<vmem>>, vector<1x8x128xf32>,
    %c8_i32 = arith.constant 8 : i32
    %c0_159 = arith.constant 0 : index
    %c0_160 = arith.constant 0 : index
    %c0_161 = arith.constant 0 : index
    %334 = vector.load %arg9[%c0_159, %c0_160, %c0_161] : memref<8x8x128xf32, #tpu.memory_space<vmem>>, vector<8x8x128xf32>
    %335 = vector.shape_cast %334 : vector<8x8x128xf32> to vector<64x128xf32>
    %336 = arith.truncf %335 : vector<64x128xf32> to vector<64x128xbf16>
    %c0_162 = arith.constant 0 : index
    %c0_163 = arith.constant 0 : index
    %337 = vector.load %arg5[%c0_162, %c0_163] : memref<128x128xbf16, #tpu.memory_space<vmem>>, vector<128x128xbf16>
    %cst_164 = arith.constant dense<0.000000e+00> : vector<64x128xf32>
    %338 = tpu.matmul %336, %337, %cst_164 {dimension_numbers = #tpu.dot_dimension_numbers<[1], [0], [0], [1], [0, 0, 1, 1], [], []>} : vector<64x128xbf16>, vector<128x128xbf16>, vector<64x128xf32> -> vector<64x128xf32>
    %c0_165 = arith.constant 0 : index
    %c0_166 = arith.constant 0 : index
    %339 = vector.load %arg6[%c0_165, %c0_166] : memref<1x128xf32, #tpu.memory_space<vmem>>, vector<1x128xf32>
    %340 = vector.broadcast %339 : vector<1x128xf32> to vector<64x128xf32>
    %341 = arith.addf %338, %340 : vector<64x128xf32>
    %342 = vector.shape_cast %341 : vector<64x128xf32> to vector<8x8x128xf32>
    %c0_167 = arith.constant 0 : index
    %c0_168 = arith.constant 0 : index
    %c0_169 = arith.constant 0 : index
    %343 = vector.load %arg7[%c0_167, %c0_168, %c0_169] : memref<8x8x128xf32, #tpu.memory_space<vmem>>, vector<8x8x128xf32>
    tpu.vector_store %arg7[%c0_167, %c0_168, %c0_169], %342 {strides = array<i32>} : memref<8x8x128xf32, #tpu.memory_space<vmem>>, vector<8x8x128xf32>,
    return
  }
  func.func @transform_0(%arg0: i32) -> (i32, i32, i32) {
    %c0_i32 = arith.constant 0 : i32
    %c0_i32_0 = arith.constant 0 : i32
    %c0_i32_1 = arith.constant 0 : i32
    %c0_i32_2 = arith.constant 0 : i32
    return %c0_i32, %c0_i32_0, %c0_i32_1 : i32, i32, i32
  }
  func.func @transform_1(%arg0: i32) -> (i32, i32) {
    %c0_i32 = arith.constant 0 : i32
    %c0_i32_0 = arith.constant 0 : i32
    %c0_i32_1 = arith.constant 0 : i32
    return %c0_i32, %c0_i32_0 : i32, i32
  }
  func.func @transform_2(%arg0: i32) -> (i32, i32) {
    %c0_i32 = arith.constant 0 : i32
    %c0_i32_0 = arith.constant 0 : i32
    %c0_i32_1 = arith.constant 0 : i32
    return %c0_i32, %c0_i32_0 : i32, i32
  }
  func.func @transform_3(%arg0: i32) -> (i32, i32) {
    %c0_i32 = arith.constant 0 : i32
    %c0_i32_0 = arith.constant 0 : i32
    %c0_i32_1 = arith.constant 0 : i32
    return %c0_i32, %c0_i32_0 : i32, i32
  }
  func.func @transform_4(%arg0: i32) -> (i32, i32) {
    %c0_i32 = arith.constant 0 : i32
    %c0_i32_0 = arith.constant 0 : i32
    %c0_i32_1 = arith.constant 0 : i32
    return %c0_i32, %c0_i32_0 : i32, i32
  }
  func.func @transform_5(%arg0: i32) -> (i32, i32) {
    %c0_i32 = arith.constant 0 : i32
    %c0_i32_0 = arith.constant 0 : i32
    %c0_i32_1 = arith.constant 0 : i32
    return %c0_i32, %c0_i32_0 : i32, i32
  }
  func.func @transform_6(%arg0: i32) -> (i32, i32, i32) {
    %c0_i32 = arith.constant 0 : i32
    %c0_i32_0 = arith.constant 0 : i32
    %c0_i32_1 = arith.constant 0 : i32
    %c0_i32_2 = arith.constant 0 : i32
    return %c0_i32, %c0_i32_0, %c0_i32_1 : i32, i32, i32
  }
}

</mosaic_0001>

<bundles_post_ra>
// kernel: tpu_custom_call.1
= control target key start
LH: loop header
LB: loop body
LE: loop exit
PB: predicated region body
PF: predicated region fallthrough
CT: control target
= control target key end

     0   :  { %11 = vsyncpa [#allocation7], 0  ;;  %s5315_s0 = inlined_call_operand.hbm [shape: f32[8,8,128], index: 0, kind: input, shape index: {}]   ;;  %s5316_s1 = inlined_call_operand.hbm [shape: bf16[128,512], index: 1, kind: input, shape index: {}]   ;;  %s5317_s2 = inlined_call_operand.hbm [shape: bf16[128,512], index: 2, kind: input, shape index: {}]   ;;  %s5318_s3 = inlined_call_operand.hbm [shape: f32[1,512], index: 3, kind: input, shape index: {}]   ;;  %s5319_s4 = inlined_call_operand.hbm [shape: bf16[128,128], index: 4, kind: input, shape index: {}]   ;;  %s5320_s5 = inlined_call_operand.vmem [shape: f32[1,128], index: 5, kind: input, shape index: {}]   ;;  %s5321_s6 = inlined_call_operand.hbm [shape: f32[8,8,128], index: 6, kind: output, shape index: {}]  }
   0x1   :  { %12 = vsyncpa [#allocation10], 0 }
   0x2   :  { %13 = vsyncpa [#allocation13], 0  ;;  %s32_s23 = sshll.u32 %s5316_s1, 4  ;;  %s33_s23 = int_to_ptr.hbm [resolvable:$true] %s32_s23 }
   0x3   :  { %14 = vsyncpa [#allocation8], 0  ;;  %s4990_s24 = smov [#allocation9]   ;;  %s59_s28 = sshll.u32 %s5318_s3, 4  ;;  %s60_s28 = int_to_ptr.hbm [resolvable:$true] %s59_s28 }
   0x4   :  { %s34_s25 = sshll.u32 %s4990_s24, 4  ;;  %s4991_s29 = smov 256   ;;  %s35_s25 = int_to_ptr.vmem [resolvable:$true] %s34_s25 }
   0x5   :  { %s4992_s30 = smov 16   ;;  %s4993_s7 = smov [#allocation12]  }
   0x6   :  { %40 = dma.hbm_to_vmem [thread:$0]  %s33_s23, 4096, %s35_s25, [#allocation10], %s4991_s29, %s4991_s29, %s4992_s30  }
   0x7   :  { %s61_s8 = sshll.u32 %s4993_s7, 4  ;;  %s19_s11 = sshll.u32 %s5315_s0, 4  ;;  %s62_s8 = int_to_ptr.vmem [resolvable:$true] %s61_s8  ;;  %s20_s11 = int_to_ptr.hbm [resolvable:$true] %s19_s11 }
   0x8   :  { %64 = dma.hbm_to_vmem [thread:$0]  %s60_s28, 64, %s62_s8, [#allocation13]  }
   0x9   :  { %s4994_s1 = smov [#allocation6]   ;;  %s45_s3 = sshll.u32 %s5317_s2, 4  ;;  %s46_s3 = int_to_ptr.hbm [resolvable:$true] %s45_s3 }
   0xa   :  { %s21_s12 = sshll.u32 %s4994_s1, 4  ;;  %s4995_s15 = smov 128   ;;  %s22_s12 = int_to_ptr.vmem [resolvable:$true] %s21_s12 }
   0xb   :  { %s4996_s16 = smov 8   ;;  %s4997_s17 = smov [#allocation11]  }
   0xc   :  { %27 = dma.hbm_to_vmem [thread:$0]  %s20_s11, 1024, %s22_s12, [#allocation7], %s4995_s15, %s4995_s15, %s4996_s16  }
   0xd   :  { %s47_s18 = sshll.u32 %s4997_s17, 4  ;;  %s69_s20 = sshll.u32 %s5319_s4, 4  ;;  %s48_s18 = int_to_ptr.vmem [resolvable:$true] %s47_s18  ;;  %s70_s20 = int_to_ptr.hbm [resolvable:$true] %s69_s20 }
   0xe   :  { %53 = dma.hbm_to_vmem [thread:$0]  %s46_s3, 4096, %s48_s18, [#allocation10], %s4991_s29, %s4991_s29, %s4992_s30  }
   0xf   :  { %s4998_s21 = smov [#allocation14]   ;;  %s4999_s2 = smov 64  }
  0x10   :  { %s71_s22 = sshll.u32 %s4998_s21, 4  ;;  %s5000_s23 = smov 4   ;;  %s72_s22 = int_to_ptr.vmem [resolvable:$true] %s71_s22 }
  0x11   :  { %77 = dma.hbm_to_vmem [thread:$0]  %s70_s20, 1024, %s72_s22, [#allocation13], %s4999_s2, %s4999_s2, %s5000_s23  }
  0x12   :  { %4982 = dma.done.wait [#allocation7], 1024  }
  0x13   :  { %4983 = vsyncadd [#allocation7], 4294966272 }
  0x14   :  { %4984 = dma.done.wait [#allocation10], 8192  }
  0x15   :  { %4985 = vsyncadd [#allocation10], 4294959104 }
  0x16   :  { %4986 = dma.done.wait [#allocation13], 1088  }
  0x17   :  { %4987 = vsyncadd [#allocation13], 4294966208  ;;  %v3298_v0 = vld [vmem:[#allocation9 + $0xe0] sm:$0xf]  ;;  %v4422_v1 = vld [vmem:[#allocation9 + $0xec] sm:$0xf0] }
  0x18   :  { %v4421_v2 = vld [vmem:[#allocation9 + $0xec] sm:$0xf]  ;;  %v3299_v3 = vor.u32 %v4422_v1, %v3298_v0  ;;  %v3308_v4 = vld [vmem:[#allocation9 + $0xf8] sm:$0xf0]  ;;  %v3426_v5 = vld [vmem:[#allocation11 + $0xe0] sm:$0xf] }
  0x19   :  { %v4454_v6 = vld [vmem:[#allocation11 + $0xec] sm:$0xf0]  ;;  %v3311_v7 = vor.u32 %v4421_v2, %v3308_v4  ;;  %v3282_v9 = vld [vmem:[#allocation9 + $0xc0] sm:$0xf]  ;;  %v4417_v11 = vld [vmem:[#allocation9 + $0xcc] sm:$0xf] }
  0x1a   :  { %v3427_v8 = vor.u32 %v4454_v6, %v3426_v5  ;;  %v4418_v10 = vld [vmem:[#allocation9 + $0xcc] sm:$0xf0]  ;;  %314 = vmatpush.bf16.msra.mxu1 %v3299_v3  ;;  %4688 = vmatpush.bf16.msra.mxu2 %v3299_v3  ;;  %v3292_v13 = vld [vmem:[#allocation9 + $0xd8] sm:$0xf0]  ;;  %v3410_v14 = vld [vmem:[#allocation11 + $0xc0] sm:$0xf] }
  0x1b   :  { %v3283_v12 = vor.u32 %v4418_v10, %v3282_v9  ;;  %v4450_v15 = vld [vmem:[#allocation11 + $0xcc] sm:$0xf0]  ;;  %401 = vmatpush.bf16.msra.mxu3 %v3311_v7  ;;  %v3295_v16 = vor.u32 %v4417_v11, %v3292_v13  ;;  %v3266_v18 = vld [vmem:[#allocation9 + $0xa0] sm:$0xf]  ;;  %v4413_v20 = vld [vmem:[#allocation9 + $0xac] sm:$0xf] }
  0x1c   :  { %663 = vmatpush.bf16.msra.mxu0 %v3427_v8  ;;  %v3411_v17 = vor.u32 %v4450_v15, %v3410_v14  ;;  %v4414_v19 = vld [vmem:[#allocation9 + $0xac] sm:$0xf0]  ;;  %v3276_v21 = vld [vmem:[#allocation9 + $0xb8] sm:$0xf0]  ;;  %v3394_v22 = vld [vmem:[#allocation11 + $0xa0] sm:$0xf] }
  0x1d   :  { %v4446_v23 = vld [vmem:[#allocation11 + $0xac] sm:$0xf0]  ;;  %v3267_v24 = vor.u32 %v4414_v19, %v3266_v18  ;;  %v3279_v25 = vor.u32 %v4413_v20, %v3276_v21  ;;  %v3250_v27 = vld [vmem:[#allocation9 + $0x80] sm:$0xf]  ;;  %v4409_v29 = vld [vmem:[#allocation9 + $0x8c] sm:$0xf] }
  0x1e   :  { %315 = vmatpush.bf16.msra.mxu1 %v3283_v12  ;;  %4689 = vmatpush.bf16.msra.mxu2 %v3283_v12  ;;  %v3395_v26 = vor.u32 %v4446_v23, %v3394_v22  ;;  %v4410_v28 = vld [vmem:[#allocation9 + $0x8c] sm:$0xf0]  ;;  %v3260_v30 = vld [vmem:[#allocation9 + $0x98] sm:$0xf0]  ;;  %v3378_v31 = vld [vmem:[#allocation11 + $0x80] sm:$0xf] }
  0x1f   :  { %402 = vmatpush.bf16.msra.mxu3 %v3295_v16  ;;  %v4442_v32 = vld [vmem:[#allocation11 + $0x8c] sm:$0xf0]  ;;  %v3251_v33 = vor.u32 %v4410_v28, %v3250_v27  ;;  %v3263_v34 = vor.u32 %v4409_v29, %v3260_v30  ;;  %v3234_v36 = vld [vmem:[#allocation9 + $0x60] sm:$0xf]  ;;  %v4405_v38 = vld [vmem:[#allocation9 + $0x6c] sm:$0xf] }
  0x20   :  { %664 = vmatpush.bf16.msra.mxu0 %v3411_v17  ;;  %v3379_v35 = vor.u32 %v4442_v32, %v3378_v31  ;;  %v4406_v37 = vld [vmem:[#allocation9 + $0x6c] sm:$0xf0]  ;;  %v3244_v39 = vld [vmem:[#allocation9 + $0x78] sm:$0xf0]  ;;  %v3362_v40 = vld [vmem:[#allocation11 + $0x60] sm:$0xf] }
  0x21   :  { %v4438_v41 = vld [vmem:[#allocation11 + $0x6c] sm:$0xf0]  ;;  %v3235_v42 = vor.u32 %v4406_v37, %v3234_v36  ;;  %v3247_v43 = vor.u32 %v4405_v38, %v3244_v39  ;;  %v3218_v45 = vld [vmem:[#allocation9 + $0x40] sm:$0xf]  ;;  %v4401_v47 = vld [vmem:[#allocation9 + $0x4c] sm:$0xf] }
  0x22   :  { %316 = vmatpush.bf16.msra.mxu1 %v3267_v24  ;;  %4690 = vmatpush.bf16.msra.mxu2 %v3267_v24  ;;  %v3363_v44 = vor.u32 %v4438_v41, %v3362_v40  ;;  %v4402_v46 = vld [vmem:[#allocation9 + $0x4c] sm:$0xf0]  ;;  %v3228_v48 = vld [vmem:[#allocation9 + $0x58] sm:$0xf0]  ;;  %v3346_v49 = vld [vmem:[#allocation11 + $0x40] sm:$0xf] }
  0x23   :  { %403 = vmatpush.bf16.msra.mxu3 %v3279_v25  ;;  %v4434_v50 = vld [vmem:[#allocation11 + $0x4c] sm:$0xf0]  ;;  %v3219_v51 = vor.u32 %v4402_v46, %v3218_v45  ;;  %v3231_v52 = vor.u32 %v4401_v47, %v3228_v48  ;;  %v3202_v54 = vld [vmem:[#allocation9 + $0x20] sm:$0xf]  ;;  %v4397_v56 = vld [vmem:[#allocation9 + $0x2c] sm:$0xf] }
  0x24   :  { %665 = vmatpush.bf16.msra.mxu0 %v3395_v26  ;;  %v3347_v53 = vor.u32 %v4434_v50, %v3346_v49  ;;  %v4398_v55 = vld [vmem:[#allocation9 + $0x2c] sm:$0xf0]  ;;  %v3212_v57 = vld [vmem:[#allocation9 + $0x38] sm:$0xf0]  ;;  %v3330_v58 = vld [vmem:[#allocation11 + $0x20] sm:$0xf] }
  0x25   :  { %v4430_v59 = vld [vmem:[#allocation11 + $0x2c] sm:$0xf0]  ;;  %v3203_v60 = vor.u32 %v4398_v55, %v3202_v54  ;;  %v3186_v61 = vld [vmem:[#allocation9] sm:$0xf]  ;;  %v3215_v63 = vor.u32 %v4397_v56, %v3212_v57  ;;  %v4393_v1 = vld [vmem:[#allocation9 + $0xc] sm:$0xf] }
  0x26   :  { %317 = vmatpush.bf16.msra.mxu1 %v3251_v33  ;;  %4691 = vmatpush.bf16.msra.mxu2 %v3251_v33  ;;  %v4394_v62 = vld [vmem:[#allocation9 + $0xc] sm:$0xf0]  ;;  %v3331_v0 = vor.u32 %v4430_v59, %v3330_v58  ;;  %v3196_v2 = vld [vmem:[#allocation9 + $0x18] sm:$0xf0]  ;;  %v3314_v3 = vld [vmem:[#allocation11] sm:$0xf] }
  0x27   :  { %404 = vmatpush.bf16.msra.mxu3 %v3263_v34  ;;  %v4426_v4 = vld [vmem:[#allocation11 + $0xc] sm:$0xf0]  ;;  %v100_v5 = vld [vmem:[#allocation6] sm:$0xff]  ;;  %v3300_v7 = vld [vmem:[#allocation9 + $0xf0] sm:$0xf0]  ;;  %v3187_v10 = vor.u32 %v4394_v62, %v3186_v61  ;;  %v3199_v14 = vor.u32 %v4393_v1, %v3196_v2  ;;  %v5001_v33 = vmov 0.0|0.0  }
  0x28   :  { %666 = vmatpush.bf16.msra.mxu0 %v3379_v35  ;;  %v4420_v6 = vld [vmem:[#allocation9 + $0xe4] sm:$0xf]  ;;  %v3306_v8 = vld [vmem:[#allocation9 + $0xe8] sm:$0xf]  ;;  %v4423_v9 = vld [vmem:[#allocation9 + $0xf4] sm:$0xf0]  ;;  %v3315_v15 = vor.u32 %v4426_v4, %v3314_v3 }
  0x29   :  { %v101_v11 = vld [vmem:[#allocation6 + $0x8] sm:$0xff]  ;;  %v104_v12 = vld [vmem:[#allocation6 + $0x20] sm:$0xff]  ;;  %v3303_v16 = vor.u32 %v4420_v6, %v3300_v7  ;;  %v3307_v17 = vor.u32 %v4423_v9, %v3306_v8  ;;  %v3284_v21 = vld [vmem:[#allocation9 + $0xd0] sm:$0xf0]  ;;  %s3169_s28 = sshll.u32 %s5321_s6, 4  ;;  %s3170_s28 = int_to_ptr.hbm [resolvable:$true] %s3169_s28 }
  0x2a   :  { %318 = vmatpush.bf16.msra.mxu1 %v3235_v42  ;;  %4692 = vmatpush.bf16.msra.mxu2 %v3235_v42  ;;  %v105_v13 = vld [vmem:[#allocation6 + $0x28] sm:$0xff]  ;;  %v4416_v18 = vld [vmem:[#allocation9 + $0xc4] sm:$0xf]  ;;  %v5056_v19 = vpack.c.bf16 %v101_v11, %v100_v5  ;;  %v4419_v23 = vld [vmem:[#allocation9 + $0xd4] sm:$0xf0] }
  0x2b   :  { %405 = vmatpush.bf16.msra.mxu3 %v3247_v43  ;;  %v5058_v20 = vpack.c.bf16 %v105_v13, %v104_v12  ;;  %v3290_v22 = vld [vmem:[#allocation9 + $0xc8] sm:$0xf]  ;;  %v3287_v24 = vor.u32 %v4416_v18, %v3284_v21  ;;  %v4412_v26 = vld [vmem:[#allocation9 + $0xa4] sm:$0xf]  ;;  %v4453_v27 = vld [vmem:[#allocation11 + $0xec] sm:$0xf] }
  0x2c   :  { %667 = vmatpush.bf16.msra.mxu0 %v3363_v44  ;;  %v3291_v25 = vor.u32 %v4419_v23, %v3290_v22  ;;  %v3436_v28 = vld [vmem:[#allocation11 + $0xf8] sm:$0xf0]  ;;  %v3268_v29 = vld [vmem:[#allocation9 + $0xb0] sm:$0xf0]  ;;  %v3274_v30 = vld [vmem:[#allocation9 + $0xa8] sm:$0xf] }
  0x2d   :  { %v4415_v31 = vld [vmem:[#allocation9 + $0xb4] sm:$0xf0]  ;;  %v3439_v32 = vor.u32 %v4453_v27, %v3436_v28  ;;  %v4449_v34 = vld [vmem:[#allocation11 + $0xcc] sm:$0xf]  ;;  %v3420_v35 = vld [vmem:[#allocation11 + $0xd8] sm:$0xf0]  ;;  %v3271_v36 = vor.u32 %v4412_v26, %v3268_v29 }
  0x2e   :  { %319 = vmatpush.bf16.msra.mxu1 %v3219_v51  ;;  %4693 = vmatpush.bf16.msra.mxu2 %v3219_v51  ;;  %v3275_v37 = vor.u32 %v4415_v31, %v3274_v30  ;;  %v4408_v38 = vld [vmem:[#allocation9 + $0x84] sm:$0xf]  ;;  %v3423_v39 = vor.u32 %v4449_v34, %v3420_v35  ;;  %v4445_v40 = vld [vmem:[#allocation11 + $0xac] sm:$0xf]  ;;  %v3404_v41 = vld [vmem:[#allocation11 + $0xb8] sm:$0xf0] }
  0x2f   :  { %406 = vmatpush.bf16.msra.mxu3 %v3231_v52  ;;  %v3252_v42 = vld [vmem:[#allocation9 + $0x90] sm:$0xf0]  ;;  %v3258_v43 = vld [vmem:[#allocation9 + $0x88] sm:$0xf]  ;;  %v4411_v44 = vld [vmem:[#allocation9 + $0x94] sm:$0xf0]  ;;  %v3407_v45 = vor.u32 %v4445_v40, %v3404_v41 }
  0x30   :  { %668 = vmatpush.bf16.msra.mxu0 %v3347_v53  ;;  %v3255_v46 = vor.u32 %v4408_v38, %v3252_v42  ;;  %v3259_v47 = vor.u32 %v4411_v44, %v3258_v43  ;;  %v102_v48 = vld [vmem:[#allocation6 + $0x10] sm:$0xff]  ;;  %v4404_v49 = vld [vmem:[#allocation9 + $0x64] sm:$0xf]  ;;  %v4441_v50 = vld [vmem:[#allocation11 + $0x8c] sm:$0xf] }
  0x31   :  { %v3388_v51 = vld [vmem:[#allocation11 + $0x98] sm:$0xf0]  ;;  %v3236_v52 = vld [vmem:[#allocation9 + $0x70] sm:$0xf0]  ;;  %v3242_v53 = vld [vmem:[#allocation9 + $0x68] sm:$0xf] }
  0x32   :  { %320 = vmatpush.bf16.msra.mxu1 %v3203_v60  ;;  %4694 = vmatpush.bf16.msra.mxu2 %v3203_v60  ;;  %v4407_v54 = vld [vmem:[#allocation9 + $0x74] sm:$0xf0]  ;;  %v106_v56 = vld [vmem:[#allocation6 + $0x30] sm:$0xff]  ;;  %v3391_v58 = vor.u32 %v4441_v50, %v3388_v51  ;;  %v3239_v59 = vor.u32 %v4404_v49, %v3236_v52  ;;  %v4400_v61 = vld [vmem:[#allocation9 + $0x44] sm:$0xf] }
  0x33   :  { %407 = vmatpush.bf16.msra.mxu3 %v3215_v63  ;;  %v103_v55 = vld [vmem:[#allocation6 + $0x18] sm:$0xff]  ;;  %v3243_v60 = vor.u32 %v4407_v54, %v3242_v53  ;;  %v3226_v1 = vld [vmem:[#allocation9 + $0x48] sm:$0xf]  ;;  %v4396_v5 = vld [vmem:[#allocation9 + $0x24] sm:$0xf] }
  0x34   :  { %669 = vmatpush.bf16.msra.mxu0 %v3331_v0  ;;  %v107_v57 = vld [vmem:[#allocation6 + $0x38] sm:$0xff]  ;;  %v5064_v62 = vpack.c.bf16 %v103_v55, %v102_v48  ;;  %v3220_v0 = vld [vmem:[#allocation9 + $0x50] sm:$0xf0]  ;;  %v4437_v6 = vld [vmem:[#allocation11 + $0x6c] sm:$0xf] }
  0x35   :  { %v5066_v63 = vpack.c.bf16 %v107_v57, %v106_v56  ;;  %v4403_v2 = vld [vmem:[#allocation9 + $0x54] sm:$0xf0]  ;;  %v3223_v3 = vor.u32 %v4400_v61, %v3220_v0  ;;  %v3372_v7 = vld [vmem:[#allocation11 + $0x78] sm:$0xf0]  ;;  %v3204_v8 = vld [vmem:[#allocation9 + $0x30] sm:$0xf0] }
  0x36   :  { %321 = vmatpush.bf16.msra.mxu1 %v3187_v10  ;;  %4695 = vmatpush.bf16.msra.mxu2 %v3187_v10  ;;  %v3227_v4 = vor.u32 %v4403_v2, %v3226_v1  ;;  %v3210_v9 = vld [vmem:[#allocation9 + $0x28] sm:$0xf]  ;;  %v4399_v10 = vld [vmem:[#allocation9 + $0x34] sm:$0xf0]  ;;  %v3375_v11 = vor.u32 %v4437_v6, %v3372_v7  ;;  %v4433_v12 = vld [vmem:[#allocation11 + $0x4c] sm:$0xf] }
  0x37   :  { %408 = vmatpush.bf16.msra.mxu3 %v3199_v14  ;;  %v4392_v13 = vld [vmem:[#allocation9 + $0x4] sm:$0xf]  ;;  %v3356_v14 = vld [vmem:[#allocation11 + $0x58] sm:$0xf0]  ;;  %v3194_v18 = vld [vmem:[#allocation9 + $0x8] sm:$0xf] }
  0x38   :  { %670 = vmatpush.bf16.msra.mxu0 %v3315_v15  ;;  %v3207_v15 = vor.u32 %v4396_v5, %v3204_v8  ;;  %v3359_v21 = vor.u32 %v4433_v12, %v3356_v14  ;;  %v4429_v22 = vld [vmem:[#allocation11 + $0x2c] sm:$0xf]  ;;  %v4395_v23 = vld [vmem:[#allocation9 + $0x14] sm:$0xf0]  ;;  %v3428_v26 = vld [vmem:[#allocation11 + $0xf0] sm:$0xf0] }
  0x39   :  { %322 = vmatmul.bf16.vlgmr.msra.gmra.mxu1 %v5056_v19  ;;  %332 = vmatmul.bf16.vlgmr.msra.gmra.mxu2 %v5058_v20  ;;  %v3434_v27 = vld [vmem:[#allocation11 + $0xe8] sm:$0xf]  ;;  %v4455_v28 = vld [vmem:[#allocation11 + $0xf4] sm:$0xf0]  ;;  %v3195_v31 = vor.u32 %v4395_v23, %v3194_v18  ;;  %v3324_v34 = vld [vmem:[#allocation11 + $0x18] sm:$0xf0] }
  0x3a   :  { %343 = vmatpush.bf16.msrb.mxu1 %v3303_v16  ;;  %372 = vmatpush.bf16.msrb.mxu2 %v3307_v17  ;;  %v3211_v16 = vor.u32 %v4399_v10, %v3210_v9  ;;  %v3188_v17 = vld [vmem:[#allocation9 + $0x10] sm:$0xf0]  ;;  %v3418_v40 = vld [vmem:[#allocation11 + $0xc8] sm:$0xf]  ;;  %v4451_v41 = vld [vmem:[#allocation11 + $0xd4] sm:$0xf0] }
  0x3b   :  { %409 = vmatmul.bf16.vlgmr.msra.gmra.mxu3 %v5056_v19  ;;  %671 = vmatmul.bf16.vlgmr.msra.gmra.mxu0 %v5001_v33  ;;  %v3191_v30 = vor.u32 %v4392_v13, %v3188_v17  ;;  %v3412_v38 = vld [vmem:[#allocation11 + $0xd0] sm:$0xf0]  ;;  %v4444_v43 = vld [vmem:[#allocation11 + $0xa4] sm:$0xf]  ;;  %v3386_v52 = vld [vmem:[#allocation11 + $0x88] sm:$0xf] }
  0x3c   :  { %702 = vmatpush.bf16.msrb.mxu3 %v3439_v32  ;;  %v4425_v32 = vld [vmem:[#allocation11 + $0xc] sm:$0xf]  ;;  %v3396_v44 = vld [vmem:[#allocation11 + $0xb0] sm:$0xf0]  ;;  %v4440_v49 = vld [vmem:[#allocation11 + $0x84] sm:$0xf] }
  0x3d   :  { %v3399_v48 = vor.u32 %v4444_v43, %v3396_v44  ;;  %v3380_v50 = vld [vmem:[#allocation11 + $0x90] sm:$0xf0]  ;;  %v4443_v53 = vld [vmem:[#allocation11 + $0x94] sm:$0xf0]  ;;  %v4436_v55 = vld [vmem:[#allocation11 + $0x64] sm:$0xf] }
  0x3e   :  { %344 = vmatpush.bf16.msrb.mxu1 %v3287_v24  ;;  %373 = vmatpush.bf16.msrb.mxu2 %v3291_v25  ;;  %v4452_v24 = vld [vmem:[#allocation11 + $0xe4] sm:$0xf]  ;;  %v3340_v25 = vld [vmem:[#allocation11 + $0x38] sm:$0xf0]  ;;  %v3383_v54 = vor.u32 %v4440_v49, %v3380_v50  ;;  %v3364_v56 = vld [vmem:[#allocation11 + $0x70] sm:$0xf0]  ;;  %v3387_v57 = vor.u32 %v4443_v53, %v3386_v52 }
  0x3f   :  { %v3343_v29 = vor.u32 %v4429_v22, %v3340_v25  ;;  %v3431_v35 = vor.u32 %v4452_v24, %v3428_v26  ;;  %v3348_v61 = vld [vmem:[#allocation11 + $0x50] sm:$0xf0]  ;;  %v4428_v2 = vld [vmem:[#allocation11 + $0x24] sm:$0xf]  ;;  %v4435_v6 = vld [vmem:[#allocation11 + $0x54] sm:$0xf0] }
  0x40   :  { %703 = vmatpush.bf16.msrb.mxu3 %v3423_v39  ;;  %v3327_v39 = vor.u32 %v4425_v32, %v3324_v34  ;;  %v4424_v7 = vld [vmem:[#allocation11 + $0x4] sm:$0xf]  ;;  %v3316_v9 = vld [vmem:[#allocation11 + $0x10] sm:$0xf0]  ;;  %v3338_v10 = vld [vmem:[#allocation11 + $0x28] sm:$0xf] }
  0x41   :  { %v3319_v13 = vor.u32 %v4424_v7, %v3316_v9  ;;  %v3322_v14 = vld [vmem:[#allocation11 + $0x8] sm:$0xf] }
  0x42   :  { %345 = vmatpush.bf16.msrb.mxu1 %v3271_v36  ;;  %374 = vmatpush.bf16.msrb.mxu2 %v3275_v37  ;;  %v3435_v36 = vor.u32 %v4455_v28, %v3434_v27  ;;  %v4448_v37 = vld [vmem:[#allocation11 + $0xc4] sm:$0xf] }
  0x43   :  { %v3415_v42 = vor.u32 %v4448_v37, %v3412_v38 }
  0x44   :  { %704 = vmatpush.bf16.msrb.mxu3 %v3407_v45  ;;  %v3419_v45 = vor.u32 %v4451_v41, %v3418_v40 }
  0x46   :  { %346 = vmatpush.bf16.msrb.mxu1 %v3255_v46  ;;  %375 = vmatpush.bf16.msrb.mxu2 %v3259_v47  ;;  %v3402_v46 = vld [vmem:[#allocation11 + $0xa8] sm:$0xf]  ;;  %v4447_v47 = vld [vmem:[#allocation11 + $0xb4] sm:$0xf0] }
  0x47   :  { %v3403_v51 = vor.u32 %v4447_v47, %v3402_v46 }
  0x48   :  { %705 = vmatpush.bf16.msrb.mxu3 %v3391_v58  ;;  %v3370_v58 = vld [vmem:[#allocation11 + $0x68] sm:$0xf] }
  0x49   :  { %327 = vmatmul.bf16.gmra.mxu1 %v5064_v62  ;;  %337 = vmatmul.bf16.gmra.mxu2 %v5066_v63 }
  0x4a   :  { %347 = vmatpush.bf16.msrb.mxu1 %v3239_v59  ;;  %376 = vmatpush.bf16.msrb.mxu2 %v3243_v60  ;;  %v4439_v59 = vld [vmem:[#allocation11 + $0x74] sm:$0xf0]  ;;  %v4432_v60 = vld [vmem:[#allocation11 + $0x44] sm:$0xf] }
  0x4b   :  { %414 = vmatmul.bf16.gmra.mxu3 %v5064_v62  ;;  %v3371_v0 = vor.u32 %v4439_v59, %v3370_v58  ;;  %v3351_v1 = vor.u32 %v4432_v60, %v3348_v61 }
  0x4c   :  { %706 = vmatpush.bf16.msrb.mxu3 %v3375_v11  ;;  %v4431_v11 = vld [vmem:[#allocation11 + $0x34] sm:$0xf0] }
  0x4d   :  { %v3339_v12 = vor.u32 %v4431_v11, %v3338_v10  ;;  %v3557_v11 = vld [vmem:[#allocation11 + $0xe0] sm:$0xf] }
  0x4e   :  { %348 = vmatpush.bf16.msrb.mxu1 %v3223_v3  ;;  %377 = vmatpush.bf16.msrb.mxu2 %v3227_v4  ;;  %v3332_v3 = vld [vmem:[#allocation11 + $0x30] sm:$0xf0]  ;;  %v3354_v4 = vld [vmem:[#allocation11 + $0x48] sm:$0xf] }
  0x4f   :  { %v3335_v5 = vor.u32 %v4428_v2, %v3332_v3  ;;  %v3355_v8 = vor.u32 %v4435_v6, %v3354_v4 }
  0x50   :  { %707 = vmatpush.bf16.msrb.mxu3 %v3359_v21 }
  0x52   :  { %349 = vmatpush.bf16.msrb.mxu1 %v3207_v15  ;;  %378 = vmatpush.bf16.msrb.mxu2 %v3211_v16  ;;  %v4427_v15 = vld [vmem:[#allocation11 + $0x14] sm:$0xf0]  ;;  %v144_v16 = vld [vmem:[#allocation12] sm:$0xf] }
  0x53   :  { %v5084_v17 = vperm.slane %v144_v16, 0  ;;  %v5094_v27 = vperm.slane %v144_v16, 3  ;;  %v5121_v43 = vperm.slane %v144_v16, 1 }
  0x54   :  { %708 = vmatpush.bf16.msrb.mxu3 %v3343_v29 }
  0x56   :  { %350 = vmatpush.bf16.msrb.mxu1 %v3191_v30  ;;  %379 = vmatpush.bf16.msrb.mxu2 %v3195_v31 }
  0x58   :  { %709 = vmatpush.bf16.msrb.mxu3 %v3327_v39 }
  0x59   :  { %351 = vmatmul.bf16.vlgmr.msrb.gmra.mxu1 %v5056_v19  ;;  %380 = vmatmul.bf16.vlgmr.msrb.gmra.mxu2 %v5056_v19  ;;  %v3367_v19 = vor.u32 %v4436_v55, %v3364_v56 }
  0x5a   :  { %676 = vmatpush.bf16.msra.mxu1 %v3431_v35  ;;  %689 = vmatpush.bf16.msra.mxu2 %v3435_v36 }
  0x5b   :  { %419 = vmatmul.bf16.gmra.mxu3 %v5058_v20 }
  0x5e   :  { %677 = vmatpush.bf16.msra.mxu1 %v3415_v42  ;;  %690 = vmatpush.bf16.msra.mxu2 %v3419_v45 }
  0x62   :  { %678 = vmatpush.bf16.msra.mxu1 %v3399_v48  ;;  %691 = vmatpush.bf16.msra.mxu2 %v3403_v51  ;;  %v5129_v48 = vperm.slane %v144_v16, 2  ;;  %v3565_v16 = vld [vmem:[#allocation11 + $0xe8] sm:$0xf] }
  0x66   :  { %679 = vmatpush.bf16.msra.mxu1 %v3383_v54  ;;  %692 = vmatpush.bf16.msra.mxu2 %v3387_v57 }
  0x69   :  { %356 = vmatmul.bf16.gmra.mxu1 %v5064_v62  ;;  %385 = vmatmul.bf16.gmra.mxu2 %v5064_v62  ;;  %v3323_v62 = vor.u32 %v4427_v15, %v3322_v14 }
  0x6a   :  { %680 = vmatpush.bf16.msra.mxu1 %v3367_v19  ;;  %693 = vmatpush.bf16.msra.mxu2 %v3371_v0 }
  0x6b   :  { %424 = vmatmul.bf16.gmra.mxu3 %v5066_v63 }
  0x6e   :  { %681 = vmatpush.bf16.msra.mxu1 %v3351_v1  ;;  %694 = vmatpush.bf16.msra.mxu2 %v3355_v8 }
  0x72   :  { %682 = vmatpush.bf16.msra.mxu1 %v3335_v5  ;;  %695 = vmatpush.bf16.msra.mxu2 %v3339_v12  ;;  %v4486_v12 = vld [vmem:[#allocation11 + $0xec] sm:$0xf0] }
  0x73   :  { %v3558_v15 = vor.u32 %v4486_v12, %v3557_v11 }
  0x75   :  { %985 = vmatpush.bf16.msrb.mxu0 %v3558_v15  ;;  %v3533_v15 = vld [vmem:[#allocation11 + $0xa8] sm:$0xf] }
  0x76   :  { %683 = vmatpush.bf16.msra.mxu1 %v3319_v13  ;;  %696 = vmatpush.bf16.msra.mxu2 %v3323_v62  ;;  %v4484_v13 = vld [vmem:[#allocation11 + $0xe4] sm:$0xf]  ;;  %v3559_v62 = vld [vmem:[#allocation11 + $0xf0] sm:$0xf0] }
  0x79   :  { %361 = vmatmul.bf16.gmra.mxu1 %v5058_v20  ;;  %390 = vmatmul.bf16.gmra.mxu2 %v5058_v20 }
  0x7b   :  { %710 = vmatmul.bf16.vlgmr.msrb.gmra.mxu3 %v5001_v33 }
  0x89   :  { %366 = vmatmul.bf16.gmra.mxu1 %v5066_v63  ;;  %395 = vmatmul.bf16.gmra.mxu2 %v5066_v63 }
  0x99   :  { %684 = vmatmul.bf16.vlgmr.msra.gmra.mxu1 %v5001_v33  ;;  %697 = vmatmul.bf16.vlgmr.msra.gmra.mxu2 %v5001_v33 }
  0xb6   :  { %v323_v18 = vpop.f32.mrf.mxu1 }
  0xb7   :  { %v324_v21 = vadd.f32 %v323_v18, %v5084_v17  ;;  %v4487_v18 = vld [vmem:[#allocation11 + $0xf4] sm:$0xf0] }
  0xb8   :  { %v672_v22 = vpop.f32.mrf.mxu0 }
  0xb9   :  { %v715_v23 = vadd.f32 %v672_v22, %v324_v21 }
  0xbb   :  { %v3440_v4 = vmul.f32 -1.442695, %v715_v23 }
  0xbc   :  { %v333_v24 = vpop.f32.mrf.mxu2 }
  0xbd   :  { %v5088_v20 = vadd.f32 %v333_v24, %v5084_v17  ;;  %4710 = vpow2.f32 %v3440_v4  ;;  %v3562_v24 = vor.u32 %v4484_v13, %v3559_v62  ;;  %v4479_v62 = vld [vmem:[#allocation11 + $0xb4] sm:$0xf0] }
  0xbe   :  { %v5090_v25 = vpop.f32.mrf.mxu3  ;;  %v5092_v26 = vpop.f32.mrf.mxu1 }
  0xbf   :  { %998 = vmatpush.bf16.msrb.mxu1 %v3562_v24  ;;  %v411_v11 = vadd.f32 %v5090_v25, %v5094_v27  ;;  %v4477_v24 = vld [vmem:[#allocation11 + $0xac] sm:$0xf] }
  0xc0   :  { %v674_v63 = vpop.f32.mrf.mxu0 }
  0xc1   :  { %v3566_v63 = vor.u32 %v4487_v18, %v3565_v16 }
  0xc3   :  { %v4711_v10 = vpop.eup %4710  ;;  %1011 = vmatpush.bf16.msrb.mxu2 %v3566_v63  ;;  %v3535_v63 = vld [vmem:[#allocation11 + $0xb8] sm:$0xf0] }
  0xc4   :  { %v5096_v33 = vpop.f32.mrf.mxu2  ;;  %v5164_v21 = vadd.f32 1.0, %v4711_v10  ;;  %v4476_v10 = vld [vmem:[#allocation11 + $0xa4] sm:$0xf] }
  0xc6   :  { %v412_v28 = vpop.f32.mrf.mxu3  ;;  %v328_v30 = vpop.f32.mrf.mxu1  ;;  %4712 = vrcp.f32 %v5164_v21  ;;  %vm728_vm1 = vweird.f32 %v5164_v21 }
  0xc7   :  { %v5099_v29 = vadd.f32 %v412_v28, %v5094_v27  ;;  %v5102_v31 = vadd.f32 %v328_v30, %v5084_v17  ;;  %v4485_v28 = vld [vmem:[#allocation11 + $0xec] sm:$0xf]  ;;  %v3567_v30 = vld [vmem:[#allocation11 + $0xf8] sm:$0xf0] }
  0xcc   :  { %v338_v32 = vpop.f32.mrf.mxu2 }
  0xcd   :  { %v5105_v34 = vadd.f32 %v338_v32, %v5084_v17 }
  0xce   :  { %v415_v35 = vpop.f32.mrf.mxu3  ;;  %v5110_v37 = vpop.f32.mrf.mxu1 }
  0xcf   :  { %v5108_v36 = vadd.f32 %v415_v35, %v5094_v27  ;;  %v3570_v35 = vor.u32 %v4485_v28, %v3567_v30 }
  0xd1   :  { %1024 = vmatpush.bf16.msra.mxu3 %v3570_v35  ;;  %v5178_v35 = vpop.eup %4712 }
  0xd2   :  { %vm729_vm0 = vweird.f32 %v5178_v35 }
  0xd3   :  { %vm730_vm2 = vmor %vm728_vm1, %vm729_vm0 }
  0xd4   :  { %v5112_v38 = vpop.f32.mrf.mxu2 }
  0xd6   :  { %v417_v39 = vpop.f32.mrf.mxu3  ;;  %v5117_v41 = vpop.f32.mrf.mxu1 }
  0xd7   :  { %v5115_v40 = vadd.f32 %v417_v39, %v5094_v27 }
  0xdc   :  { %v5119_v42 = vpop.f32.mrf.mxu2 }
  0xde   :  { %v420_v44 = vpop.f32.mrf.mxu3  ;;  %v354_v46 = vpop.f32.mrf.mxu1 }
  0xdf   :  { %v5124_v45 = vadd.f32 %v420_v44, %v5094_v27  ;;  %v5127_v47 = vadd.f32 %v354_v46, %v5121_v43  ;;  %v3541_v44 = vld [vmem:[#allocation11 + $0xc0] sm:$0xf]  ;;  %v4482_v46 = vld [vmem:[#allocation11 + $0xcc] sm:$0xf0] }
  0xe4   :  { %v383_v49 = vpop.f32.mrf.mxu2 }
  0xe5   :  { %v5132_v50 = vadd.f32 %v383_v49, %v5129_v48  ;;  %v4480_v49 = vld [vmem:[#allocation11 + $0xc4] sm:$0xf] }
  0xe6   :  { %v422_v51 = vpop.f32.mrf.mxu3  ;;  %v357_v53 = vpop.f32.mrf.mxu1 }
  0xe7   :  { %v5135_v52 = vadd.f32 %v422_v51, %v5094_v27  ;;  %v5138_v54 = vadd.f32 %v357_v53, %v5121_v43  ;;  %v3542_v51 = vor.u32 %v4482_v46, %v3541_v44  ;;  %v3543_v53 = vld [vmem:[#allocation11 + $0xd0] sm:$0xf0]  ;;  %v4474_v44 = vld [vmem:[#allocation11 + $0x8c] sm:$0xf0]  ;;  %v4472_v46 = vld [vmem:[#allocation11 + $0x84] sm:$0xf] }
  0xe9   :  { %986 = vmatpush.bf16.msrb.mxu0 %v3542_v51  ;;  %v3511_v51 = vld [vmem:[#allocation11 + $0x90] sm:$0xf0] }
  0xec   :  { %v386_v55 = vpop.f32.mrf.mxu2 }
  0xed   :  { %v5141_v56 = vadd.f32 %v386_v55, %v5129_v48  ;;  %v3549_v55 = vld [vmem:[#allocation11 + $0xc8] sm:$0xf] }
  0xee   :  { %v425_v57 = vpop.f32.mrf.mxu3  ;;  %v359_v59 = vpop.f32.mrf.mxu1 }
  0xef   :  { %v5144_v58 = vadd.f32 %v425_v57, %v5094_v27  ;;  %v5147_v19 = vadd.f32 %v359_v59, %v5121_v43  ;;  %v4483_v57 = vld [vmem:[#allocation11 + $0xd4] sm:$0xf0]  ;;  %v3546_v59 = vor.u32 %v4480_v49, %v3543_v53  ;;  %v3517_v53 = vld [vmem:[#allocation11 + $0x88] sm:$0xf] }
  0xf1   :  { %999 = vmatpush.bf16.msrb.mxu1 %v3546_v59  ;;  %v4473_v59 = vld [vmem:[#allocation11 + $0x8c] sm:$0xf] }
  0xf4   :  { %v388_v60 = vpop.f32.mrf.mxu2 }
  0xf5   :  { %v5150_v61 = vadd.f32 %v388_v60, %v5129_v48  ;;  %v3550_v60 = vor.u32 %v4483_v57, %v3549_v55  ;;  %v4475_v55 = vld [vmem:[#allocation11 + $0x94] sm:$0xf0]  ;;  %v3514_v57 = vor.u32 %v4472_v46, %v3511_v51  ;;  %v3477_v46 = vld [vmem:[#allocation11 + $0x40] sm:$0xf]  ;;  %v4464_v51 = vld [vmem:[#allocation11 + $0x44] sm:$0xf] }
  0xf6   :  { %v427_v0 = vpop.f32.mrf.mxu3  ;;  %v362_v2 = vpop.f32.mrf.mxu1 }
  0xf7   :  { %v5153_v1 = vadd.f32 %v427_v0, %v5094_v27  ;;  %v5156_v3 = vadd.f32 %v362_v2, %v5121_v43  ;;  %v4481_v0 = vld [vmem:[#allocation11 + $0xcc] sm:$0xf]  ;;  %v3551_v2 = vld [vmem:[#allocation11 + $0xd8] sm:$0xf0]  ;;  %1012 = vmatpush.bf16.msrb.mxu2 %v3550_v60  ;;  %v3509_v27 = vld [vmem:[#allocation11 + $0x80] sm:$0xf] }
  0xf8   :  { %v3554_v4 = vor.u32 %v4481_v0, %v3551_v2  ;;  %v3510_v49 = vor.u32 %v4474_v44, %v3509_v27  ;;  %v3519_v60 = vld [vmem:[#allocation11 + $0x98] sm:$0xf0]  ;;  %v724_v0 = vmul.f32 %v5178_v35, %v5164_v21 }
  0xfa   :  { %1025 = vmatpush.bf16.msra.mxu3 %v3554_v4  ;;  %v3522_v4 = vor.u32 %v4473_v59, %v3519_v60  ;;  %v4465_v60 = vld [vmem:[#allocation11 + $0x4c] sm:$0xf] }
  0xfc   :  { %v391_v5 = vpop.f32.mrf.mxu2 }
  0xfd   :  { %v5159_v6 = vadd.f32 %v391_v5, %v5129_v48  ;;  %v3525_v5 = vld [vmem:[#allocation11 + $0xa0] sm:$0xf] }
  0xfe   :  { %v711_v7 = vpop.f32.mrf.mxu3  ;;  %v364_v8 = vpop.f32.mrf.mxu1 }
  0xff   :  { %v5162_v9 = vadd.f32 %v364_v8, %v5121_v43  ;;  %v4478_v8 = vld [vmem:[#allocation11 + $0xac] sm:$0xf0]  ;;  %v718_v28 = vadd.f32 %v711_v7, %v411_v11  ;;  %v3518_v7 = vor.u32 %v4475_v55, %v3517_v53  ;;  %v3485_v53 = vld [vmem:[#allocation11 + $0x48] sm:$0xf]  ;;  %v4467_v55 = vld [vmem:[#allocation11 + $0x54] sm:$0xf0] }
 0x100   :  { %v3526_v13 = vor.u32 %v4478_v8, %v3525_v5  ;;  %v3493_v5 = vld [vmem:[#allocation11 + $0x60] sm:$0xf]  ;;  %v4470_v8 = vld [vmem:[#allocation11 + $0x6c] sm:$0xf0]  ;;  %v3486_v59 = vor.u32 %v4467_v55, %v3485_v53  ;;  %v4459_v53 = vld [vmem:[#allocation11 + $0x14] sm:$0xf0] }
 0x101   :  { %v3442_v2 = vmul.f32 -1.442695, %v718_v28  ;;  %v725_v28 = vsub.f32 1.0, %v724_v0  ;;  %v3487_v0 = vld [vmem:[#allocation11 + $0x58] sm:$0xf0] }
 0x102   :  { %987 = vmatpush.bf16.msrb.mxu0 %v3526_v13  ;;  %v3495_v13 = vld [vmem:[#allocation11 + $0x70] sm:$0xf0]  ;;  %v4457_v55 = vld [vmem:[#allocation11 + $0xc] sm:$0xf] }
 0x103   :  { %4714 = vpow2.f32 %v3442_v2  ;;  %v726_v2 = vmul.f32 %v5178_v35, %v725_v28  ;;  %v4461_v28 = vld [vmem:[#allocation11 + $0x2c] sm:$0xf] }
 0x104   :  { %v393_v14 = vpop.f32.mrf.mxu2 }
 0x105   :  { %v5167_v22 = vadd.f32 %v393_v14, %v5129_v48  ;;  %v3527_v14 = vld [vmem:[#allocation11 + $0xb0] sm:$0xf0] }
 0x106   :  { %v713_v23 = vpop.f32.mrf.mxu3  ;;  %v367_v32 = vpop.f32.mrf.mxu1  ;;  %v3530_v18 = vor.u32 %v4476_v10, %v3527_v14  ;;  %988 = vmatpush.bf16.msrb.mxu0 %v3510_v49  ;;  %v4468_v10 = vld [vmem:[#allocation11 + $0x64] sm:$0xf]  ;;  %v3501_v14 = vld [vmem:[#allocation11 + $0x68] sm:$0xf]  ;;  %v4466_v49 = vld [vmem:[#allocation11 + $0x4c] sm:$0xf0] }
 0x107   :  { %v5170_v39 = vadd.f32 %v367_v32, %v5121_v43  ;;  %v3534_v23 = vor.u32 %v4479_v62, %v3533_v15  ;;  %v3538_v32 = vor.u32 %v4477_v24, %v3535_v63  ;;  %v353_v15 = vadd.f32 %v5117_v41, %v5121_v43  ;;  %v4469_v24 = vld [vmem:[#allocation11 + $0x6c] sm:$0xf]  ;;  %v3503_v63 = vld [vmem:[#allocation11 + $0x78] sm:$0xf0] }
 0x108   :  { %1000 = vmatpush.bf16.msrb.mxu1 %v3530_v18  ;;  %v3498_v18 = vor.u32 %v4468_v10, %v3495_v13  ;;  %v3506_v27 = vor.u32 %v4469_v24, %v3503_v63  ;;  %v3478_v41 = vor.u32 %v4466_v49, %v3477_v46  ;;  %v4460_v10 = vld [vmem:[#allocation11 + $0x24] sm:$0xf]  ;;  %v3463_v13 = vld [vmem:[#allocation11 + $0x30] sm:$0xf0]  ;;  %v4458_v46 = vld [vmem:[#allocation11 + $0xc] sm:$0xf0] }
 0x109   :  { %1013 = vmatpush.bf16.msrb.mxu2 %v3534_v23  ;;  %1026 = vmatpush.bf16.msra.mxu3 %v3538_v32  ;;  %v4471_v23 = vld [vmem:[#allocation11 + $0x74] sm:$0xf0]  ;;  %v3466_v24 = vor.u32 %v4460_v10, %v3463_v13  ;;  %v4456_v49 = vld [vmem:[#allocation11 + $0x4] sm:$0xf] }
 0x10a   :  { %v3502_v32 = vor.u32 %v4471_v23, %v3501_v14  ;;  %v3469_v14 = vld [vmem:[#allocation11 + $0x28] sm:$0xf] }
 0x10c   :  { %v396_v12 = vpop.f32.mrf.mxu2  ;;  %1001 = vmatpush.bf16.msrb.mxu1 %v3514_v57 }
 0x10d   :  { %v5176_v16 = vadd.f32 %v396_v12, %v5129_v48  ;;  %1014 = vmatpush.bf16.msrb.mxu2 %v3518_v7  ;;  %1027 = vmatpush.bf16.msra.mxu3 %v3522_v4  ;;  %v3494_v12 = vor.u32 %v4470_v8, %v3493_v5  ;;  %v3490_v4 = vor.u32 %v4465_v60, %v3487_v0  ;;  %v3461_v5 = vld [vmem:[#allocation11 + $0x20] sm:$0xf]  ;;  %v4462_v8 = vld [vmem:[#allocation11 + $0x2c] sm:$0xf0]  ;;  %v3455_v60 = vld [vmem:[#allocation11 + $0x18] sm:$0xf0] }
 0x10e   :  { %v369_v30 = vpop.f32.mrf.mxu1  ;;  %v732_v0 = vand.u32 2147483647, %v5164_v21 }
 0x10f   :  { %v5181_v25 = vadd.f32 %v369_v30, %v5121_v43  ;;  %989 = vmatpush.bf16.msrb.mxu0 %v3494_v12  ;;  %v3479_v43 = vld [vmem:[#allocation11 + $0x50] sm:$0xf0]  ;;  %v3462_v12 = vor.u32 %v4462_v8, %v3461_v5 }
 0x110   :  { %1002 = vmatpush.bf16.msrb.mxu1 %v3498_v18  ;;  %v3482_v7 = vor.u32 %v4464_v51, %v3479_v43  ;;  %v4715_v18 = vpop.eup %4714  ;;  %v3453_v43 = vld [vmem:[#allocation11 + $0x8] sm:$0xf]  ;;  %vm733_vm3 = vcmp.eq.f32.partialorder %v732_v0, 8.507059e+37 }
 0x111   :  { %1015 = vmatpush.bf16.msrb.mxu2 %v3502_v32  ;;  %1028 = vmatpush.bf16.msra.mxu3 %v3506_v27  ;;  %v3445_v32 = vld [vmem:[#allocation11] sm:$0xf] }
 0x113   :  { %990 = vmatpush.bf16.msrb.mxu0 %v3478_v41  ;;  %v3446_v41 = vor.u32 %v4458_v46, %v3445_v32 }
 0x114   :  { %v398_v11 = vpop.f32.mrf.mxu2  ;;  %1003 = vmatpush.bf16.msrb.mxu1 %v3482_v7  ;;  %v734_v7 = vand.u32 2147483648, %v5164_v21 }
 0x115   :  { %v5188_v62 = vadd.f32 %v398_v11, %v5129_v48  ;;  %v382_v11 = vadd.f32 %v5119_v42, %v5129_v48  ;;  %1016 = vmatpush.bf16.msrb.mxu2 %v3486_v59  ;;  %1029 = vmatpush.bf16.msra.mxu3 %v3490_v4  ;;  %v3447_v42 = vld [vmem:[#allocation11 + $0x10] sm:$0xf0]  ;;  %v727_v48 = vadd.f32 %v5178_v35, %v726_v2 }
 0x116   :  { %v685_v30 = vpop.f32.mrf.mxu1  ;;  %v3450_v59 = vor.u32 %v4456_v49, %v3447_v42  ;;  %v3454_v2 = vor.u32 %v4459_v53, %v3453_v43  ;;  %v3458_v4 = vor.u32 %v4457_v55, %v3455_v60 }
 0x117   :  { %v716_v44 = vadd.f32 %v685_v30, %v353_v15  ;;  %v4463_v15 = vld [vmem:[#allocation11 + $0x34] sm:$0xf0]  ;;  %v3471_v30 = vld [vmem:[#allocation11 + $0x38] sm:$0xf0]  ;;  %991 = vmatpush.bf16.msrb.mxu0 %v3462_v12  ;;  %v731_v10 = vsel %vm730_vm2, %v5178_v35, %v727_v48 }
 0x118   :  { %v3470_v63 = vor.u32 %v4463_v15, %v3469_v14  ;;  %1004 = vmatpush.bf16.msrb.mxu1 %v3466_v24 }
 0x119   :  { %v3441_v57 = vmul.f32 -1.442695, %v716_v44  ;;  %v3474_v44 = vor.u32 %v4461_v28, %v3471_v30 }
 0x11a   :  { %1017 = vmatpush.bf16.msrb.mxu2 %v3470_v63 }
 0x11b   :  { %4716 = vpow2.f32 %v3441_v57  ;;  %v761_v57 = vadd.f32 1.0, %v4715_v18  ;;  %1030 = vmatpush.bf16.msra.mxu3 %v3474_v44  ;;  %992 = vmatpush.bf16.msrb.mxu0 %v3446_v41 }
 0x11c   :  { %v698_v23 = vpop.f32.mrf.mxu2  ;;  %1005 = vmatpush.bf16.msrb.mxu1 %v3450_v59 }
 0x11d   :  { %v717_v27 = vadd.f32 %v698_v23, %v382_v11  ;;  %v735_v11 = vor.u32 1.1754944e-38, %v734_v7  ;;  %v773_v43 = vand.u32 2147483648, %v761_v57  ;;  %vm767_vm9 = vweird.f32 %v761_v57 }
 0x11e   :  { %v687_v51 = vpop.f32.mrf.mxu1  ;;  %1018 = vmatpush.bf16.msrb.mxu2 %v3454_v2  ;;  %v771_v53 = vand.u32 2147483647, %v761_v57 }
 0x11f   :  { %4718 = vtanh.f32 %v717_v27  ;;  %1031 = vmatpush.bf16.msra.mxu3 %v3458_v4  ;;  %v736_v13 = vsel %vm733_vm3, %v735_v11, %v731_v10  ;;  %v774_v7 = vor.u32 1.1754944e-38, %v773_v43  ;;  %v3688_v4 = vld [vmem:[#allocation11 + $0xe0] sm:$0xf]  ;;  %v3696_v11 = vld [vmem:[#allocation11 + $0xe8] sm:$0xf] }
 0x120   :  { %4720 = vrcp.f32 %v761_v57  ;;  %vm772_vm11 = vcmp.eq.f32.partialorder %v771_v53, 8.507059e+37  ;;  %v4508_v43 = vld [vmem:[#allocation11 + $0xa4] sm:$0xf] }
 0x121   :  { %v4717_v5 = vpop.eup %4716 }
 0x122   :  { %v741_v8 = vadd.f32 1.0, %v4717_v5  ;;  %v4518_v5 = vld [vmem:[#allocation11 + $0xec] sm:$0xf0] }
 0x123   :  { %v3689_v10 = vor.u32 %v4518_v5, %v3688_v4  ;;  %v4509_v4 = vld [vmem:[#allocation11 + $0xac] sm:$0xf]  ;;  %v3666_v5 = vld [vmem:[#allocation11 + $0xb8] sm:$0xf0] }
 0x124   :  { %4722 = vrcp.f32 %v741_v8  ;;  %v700_v12 = vpop.f32.mrf.mxu2  ;;  %v753_v28 = vand.u32 2147483648, %v741_v8  ;;  %v751_v35 = vand.u32 2147483647, %v741_v8  ;;  %vm747_vm5 = vweird.f32 %v741_v8 }
 0x125   :  { %v4719_v21 = vpop.eup %4718  ;;  %v4519_v12 = vld [vmem:[#allocation11 + $0xf4] sm:$0xf0]  ;;  %1308 = vmatpush.bf16.msra.mxu0 %v3689_v10  ;;  %v3640_v10 = vld [vmem:[#allocation11 + $0x80] sm:$0xf] }
 0x126   :  { %v778_v14 = vmul.f32 %v4719_v21, %v736_v13  ;;  %v4721_v15 = vpop.eup %4720  ;;  %v754_v44 = vor.u32 1.1754944e-38, %v753_v28  ;;  %vm752_vm7 = vcmp.eq.f32.partialorder %v751_v35, 8.507059e+37  ;;  %v3697_v13 = vor.u32 %v4519_v12, %v3696_v11  ;;  %v3680_v35 = vld [vmem:[#allocation11 + $0xc8] sm:$0xf]  ;;  %v4504_v11 = vld [vmem:[#allocation11 + $0x84] sm:$0xf] }
 0x127   :  { %v763_v24 = vmul.f32 %v4721_v15, %v761_v57  ;;  %vm768_vm8 = vweird.f32 %v4721_v15  ;;  %v3690_v57 = vld [vmem:[#allocation11 + $0xf0] sm:$0xf0] }
 0x128   :  { %vm769_vm10 = vmor %vm767_vm9, %vm768_vm8  ;;  %1334 = vmatpush.bf16.msra.mxu2 %v3697_v13  ;;  %v3648_v13 = vld [vmem:[#allocation11 + $0x88] sm:$0xf] }
 0x129   :  { %v764_v32 = vsub.f32 1.0, %v763_v24  ;;  %v4514_v24 = vld [vmem:[#allocation11 + $0xcc] sm:$0xf0] }
 0x12a   :  { %v4723_v18 = vpop.eup %4722 }
 0x12b   :  { %v743_v23 = vmul.f32 %v4723_v18, %v741_v8  ;;  %vm748_vm4 = vweird.f32 %v4723_v18  ;;  %v765_v49 = vmul.f32 %v4721_v15, %v764_v32  ;;  %v4516_v8 = vld [vmem:[#allocation11 + $0xe4] sm:$0xf]  ;;  %v4515_v32 = vld [vmem:[#allocation11 + $0xd4] sm:$0xf0] }
 0x12c   :  { %vm749_vm6 = vmor %vm747_vm5, %vm748_vm4  ;;  %v3693_v21 = vor.u32 %v4516_v8, %v3690_v57  ;;  %v3669_v8 = vor.u32 %v4509_v4, %v3666_v5  ;;  %v4506_v57 = vld [vmem:[#allocation11 + $0x8c] sm:$0xf0] }
 0x12d   :  { %v744_v63 = vsub.f32 1.0, %v743_v23  ;;  %v766_v41 = vadd.f32 %v4721_v15, %v765_v49  ;;  %v3672_v23 = vld [vmem:[#allocation11 + $0xc0] sm:$0xf]  ;;  %v3682_v49 = vld [vmem:[#allocation11 + $0xd8] sm:$0xf0]  ;;  %v3641_v12 = vor.u32 %v4506_v57, %v3640_v10 }
 0x12e   :  { %1321 = vmatpush.bf16.msra.mxu1 %v3693_v21  ;;  %v3673_v28 = vor.u32 %v4514_v24, %v3672_v23  ;;  %v3642_v21 = vld [vmem:[#allocation11 + $0x90] sm:$0xf0]  ;;  %v4505_v24 = vld [vmem:[#allocation11 + $0x8c] sm:$0xf]  ;;  %v4498_v4 = vld [vmem:[#allocation11 + $0x4c] sm:$0xf0] }
 0x12f   :  { %v745_v30 = vmul.f32 %v4723_v18, %v744_v63  ;;  %v770_v55 = vsel %vm769_vm10, %v4721_v15, %v766_v41  ;;  %v3698_v15 = vld [vmem:[#allocation11 + $0xf8] sm:$0xf0]  ;;  %v4512_v63 = vld [vmem:[#allocation11 + $0xc4] sm:$0xf]  ;;  %v4510_v41 = vld [vmem:[#allocation11 + $0xac] sm:$0xf0] }
 0x130   :  { %v775_v60 = vsel %vm772_vm11, %v774_v7, %v770_v55  ;;  %1309 = vmatpush.bf16.msra.mxu0 %v3673_v28  ;;  %v3658_v55 = vld [vmem:[#allocation11 + $0xb0] sm:$0xf0]  ;;  %v3664_v7 = vld [vmem:[#allocation11 + $0xa8] sm:$0xf] }
 0x131   :  { %v746_v27 = vadd.f32 %v4723_v18, %v745_v30  ;;  %v3674_v30 = vld [vmem:[#allocation11 + $0xd0] sm:$0xf0]  ;;  %v3616_v57 = vld [vmem:[#allocation11 + $0x48] sm:$0xf] }
 0x132   :  { %v3610_v10 = vld [vmem:[#allocation11 + $0x50] sm:$0xf0] }
 0x133   :  { %v750_v46 = vsel %vm749_vm6, %v4723_v18, %v746_v27  ;;  %v3677_v27 = vor.u32 %v4512_v63, %v3674_v30  ;;  %v3650_v63 = vld [vmem:[#allocation11 + $0x98] sm:$0xf0] }
 0x134   :  { %v755_v42 = vsel %vm752_vm7, %v754_v44, %v750_v46  ;;  %v3681_v44 = vor.u32 %v4515_v32, %v3680_v35  ;;  %v4513_v46 = vld [vmem:[#allocation11 + $0xcc] sm:$0xf]  ;;  %v3653_v35 = vor.u32 %v4505_v24, %v3650_v63  ;;  %v3592_v24 = vld [vmem:[#allocation11 + $0x20] sm:$0xf]  ;;  %v4494_v63 = vld [vmem:[#allocation11 + $0x2c] sm:$0xf0] }
 0x135   :  { %v777_v48 = vmul.f32 0.0, %v755_v42  ;;  %v3685_v42 = vor.u32 %v4513_v46, %v3682_v49  ;;  %1322 = vmatpush.bf16.msra.mxu1 %v3677_v27  ;;  %v4502_v46 = vld [vmem:[#allocation11 + $0x6c] sm:$0xf0]  ;;  %v4500_v49 = vld [vmem:[#allocation11 + $0x64] sm:$0xf] }
 0x136   :  { %1335 = vmatpush.bf16.msra.mxu2 %v3681_v44  ;;  %v3624_v44 = vld [vmem:[#allocation11 + $0x60] sm:$0xf] }
 0x137   :  { %v5201_v51 = vadd.f32 %v778_v14, %v777_v48  ;;  %v4517_v14 = vld [vmem:[#allocation11 + $0xec] sm:$0xf]  ;;  %v3656_v48 = vld [vmem:[#allocation11 + $0xa0] sm:$0xf] }
 0x138   :  { %v3701_v18 = vor.u32 %v4517_v14, %v3698_v15  ;;  %v3657_v53 = vor.u32 %v4510_v41, %v3656_v48  ;;  %v4507_v14 = vld [vmem:[#allocation11 + $0x94] sm:$0xf0]  ;;  %v326_v15 = vadd.f32 %v5092_v26, %v5084_v17  ;;  %v3626_v48 = vld [vmem:[#allocation11 + $0x70] sm:$0xf0]  ;;  %v3632_v26 = vld [vmem:[#allocation11 + $0x68] sm:$0xf] }
 0x139   :  { %4724 = vtanh.f32 %v5201_v51  ;;  %v3649_v23 = vor.u32 %v4507_v14, %v3648_v13  ;;  %v4503_v41 = vld [vmem:[#allocation11 + $0x74] sm:$0xf0]  ;;  %v3618_v13 = vld [vmem:[#allocation11 + $0x58] sm:$0xf0] }
 0x13a   :  { %1347 = vmatpush.bf16.msrb.mxu3 %v3701_v18  ;;  %1310 = vmatpush.bf16.msra.mxu0 %v3657_v53  ;;  %v3645_v18 = vor.u32 %v4504_v11, %v3642_v21  ;;  %v4497_v21 = vld [vmem:[#allocation11 + $0x4c] sm:$0xf] }
 0x13e   :  { %1348 = vmatpush.bf16.msrb.mxu3 %v3685_v42  ;;  %1311 = vmatpush.bf16.msra.mxu0 %v3641_v12  ;;  %v3625_v42 = vor.u32 %v4502_v46, %v3624_v44  ;;  %v4499_v12 = vld [vmem:[#allocation11 + $0x54] sm:$0xf0]  ;;  %v3594_v44 = vld [vmem:[#allocation11 + $0x30] sm:$0xf0]  ;;  %v3600_v46 = vld [vmem:[#allocation11 + $0x28] sm:$0xf] }
 0x13f   :  { %v4725_v59 = vpop.eup %4724 }
 0x140   :  { %v5204_v0 = vmul.f32 %v4725_v59, %v775_v60  ;;  %v4511_v59 = vld [vmem:[#allocation11 + $0xb4] sm:$0xf0]  ;;  %v3661_v60 = vor.u32 %v4508_v43, %v3658_v55  ;;  %v3629_v55 = vor.u32 %v4500_v49, %v3626_v48 }
 0x141   :  { %v4495_v49 = vld [vmem:[#allocation11 + $0x34] sm:$0xf0] }
 0x142   :  { %v792_v2 = vpack.c.bf16 %v5204_v0, %v5204_v0  ;;  %1323 = vmatpush.bf16.msra.mxu1 %v3661_v60  ;;  %1349 = vmatpush.bf16.msrb.mxu3 %v3669_v8  ;;  %v3634_v60 = vld [vmem:[#allocation11 + $0x78] sm:$0xf0]  ;;  %v4496_v8 = vld [vmem:[#allocation11 + $0x44] sm:$0xf]  ;;  %v3601_v48 = vor.u32 %v4495_v49, %v3600_v46 }
 0x143   :  { %1312 = vmatpush.bf16.msra.mxu0 %v3625_v42  ;;  %v3613_v11 = vor.u32 %v4496_v8, %v3610_v10  ;;  %v4489_v10 = vld [vmem:[#allocation11 + $0xc] sm:$0xf] }
 0x144   :  { %993 = vmatmul.bf16.vlgmr.msrb.gmra.mxu0 %v792_v2  ;;  %1006 = vmatmul.bf16.vlgmr.msrb.gmra.mxu1 %v792_v2 }
 0x145   :  { %1019 = vmatmul.bf16.vlgmr.msrb.gmra.mxu2 %v792_v2  ;;  %1032 = vmatmul.bf16.vlgmr.msra.gmra.mxu3 %v792_v2  ;;  %v3665_v2 = vor.u32 %v4511_v59, %v3664_v7  ;;  %v3633_v7 = vor.u32 %v4503_v41, %v3632_v26  ;;  %v4501_v59 = vld [vmem:[#allocation11 + $0x6c] sm:$0xf]  ;;  %v3602_v41 = vld [vmem:[#allocation11 + $0x38] sm:$0xf0] }
 0x146   :  { %1324 = vmatpush.bf16.msra.mxu1 %v3645_v18  ;;  %1350 = vmatpush.bf16.msrb.mxu3 %v3653_v35  ;;  %v3617_v18 = vor.u32 %v4499_v12, %v3616_v57  ;;  %v4493_v26 = vld [vmem:[#allocation11 + $0x2c] sm:$0xf]  ;;  %v3586_v57 = vld [vmem:[#allocation11 + $0x18] sm:$0xf0] }
 0x147   :  { %1336 = vmatpush.bf16.msra.mxu2 %v3665_v2  ;;  %v3608_v2 = vld [vmem:[#allocation11 + $0x40] sm:$0xf] }
 0x148   :  { %v3609_v5 = vor.u32 %v4498_v4, %v3608_v2  ;;  %v3584_v2 = vld [vmem:[#allocation11 + $0x8] sm:$0xf]  ;;  %v4491_v4 = vld [vmem:[#allocation11 + $0x14] sm:$0xf0] }
 0x14a   :  { %1325 = vmatpush.bf16.msra.mxu1 %v3629_v55  ;;  %1313 = vmatpush.bf16.msra.mxu0 %v3609_v5  ;;  %v4490_v55 = vld [vmem:[#allocation11 + $0xc] sm:$0xf0] }
 0x14b   :  { %1337 = vmatpush.bf16.msra.mxu2 %v3649_v23  ;;  %v3621_v23 = vor.u32 %v4497_v21, %v3618_v13  ;;  %v3585_v21 = vor.u32 %v4491_v4, %v3584_v2 }
 0x14e   :  { %1326 = vmatpush.bf16.msra.mxu1 %v3613_v11 }
 0x14f   :  { %1338 = vmatpush.bf16.msra.mxu2 %v3633_v7  ;;  %v4488_v7 = vld [vmem:[#allocation11 + $0x4] sm:$0xf] }
 0x153   :  { %1339 = vmatpush.bf16.msra.mxu2 %v3617_v18  ;;  %v3589_v18 = vor.u32 %v4489_v10, %v3586_v57 }
 0x157   :  { %1340 = vmatpush.bf16.msra.mxu2 %v3601_v48 }
 0x15b   :  { %1341 = vmatpush.bf16.msra.mxu2 %v3585_v21 }
 0x1c1   :  { %v994_v28 = vpop.f32.mrf.mxu0  ;;  %v1007_v30 = vpop.f32.mrf.mxu1 }
 0x1c2   :  { %v1037_v32 = vadd.f32 %v994_v28, %v326_v15  ;;  %v1038_v27 = vadd.f32 %v1007_v30, %v5127_v47  ;;  %v3637_v47 = vor.u32 %v4501_v59, %v3634_v60  ;;  %v4492_v28 = vld [vmem:[#allocation11 + $0x24] sm:$0xf]  ;;  %v3578_v60 = vld [vmem:[#allocation11 + $0x10] sm:$0xf0] }
 0x1c3   :  { %v3597_v42 = vor.u32 %v4492_v28, %v3594_v44  ;;  %v3581_v12 = vor.u32 %v4488_v7, %v3578_v60 }
 0x1c4   :  { %v3571_v43 = vmul.f32 -1.442695, %v1037_v32  ;;  %v3572_v53 = vmul.f32 -1.442695, %v1038_v27  ;;  %1351 = vmatpush.bf16.msrb.mxu3 %v3637_v47  ;;  %v3593_v27 = vor.u32 %v4494_v63, %v3592_v24 }
 0x1c5   :  { %1327 = vmatpush.bf16.msra.mxu1 %v3597_v42 }
 0x1c6   :  { %4726 = vpow2.f32 %v3571_v43  ;;  %v3576_v43 = vld [vmem:[#allocation11] sm:$0xf]  ;;  %1314 = vmatpush.bf16.msra.mxu0 %v3593_v27 }
 0x1c7   :  { %4728 = vpow2.f32 %v3572_v53  ;;  %v3577_v8 = vor.u32 %v4490_v55, %v3576_v43 }
 0x1c8   :  { %v1020_v14 = vpop.f32.mrf.mxu2  ;;  %v1033_v15 = vpop.f32.mrf.mxu3  ;;  %1352 = vmatpush.bf16.msrb.mxu3 %v3621_v23 }
 0x1c9   :  { %v1040_v30 = vadd.f32 %v1033_v15, %v5099_v29  ;;  %v996_v35 = vpop.f32.mrf.mxu0  ;;  %v1009_v32 = vpop.f32.mrf.mxu1  ;;  %v3605_v29 = vor.u32 %v4493_v26, %v3602_v41  ;;  %1328 = vmatpush.bf16.msra.mxu1 %v3581_v12  ;;  %v1039_v28 = vadd.f32 %v1020_v14, %v5132_v50 }
 0x1ca   :  { %1315 = vmatpush.bf16.msra.mxu0 %v3577_v8 }
 0x1cb   :  { %v3573_v53 = vmul.f32 -1.442695, %v1040_v30 }
 0x1cc   :  { %v4727_v59 = vpop.eup %4726  ;;  %1353 = vmatpush.bf16.msrb.mxu3 %v3605_v29 }
 0x1cd   :  { %v4729_v47 = vpop.eup %4728  ;;  %v1044_v5 = vadd.f32 1.0, %v4727_v59  ;;  %4730 = vpow2.f32 %v3573_v53 }
 0x1ce   :  { %v1063_v11 = vadd.f32 1.0, %v4729_v47 }
 0x1cf   :  { %4732 = vrcp.f32 %v1044_v5  ;;  %v1056_v46 = vand.u32 2147483648, %v1044_v5  ;;  %v1054_v48 = vand.u32 2147483647, %v1044_v5  ;;  %vm1050_vm14 = vweird.f32 %v1044_v5 }
 0x1d0   :  { %4734 = vrcp.f32 %v1063_v11  ;;  %v1022_v13 = vpop.f32.mrf.mxu2  ;;  %v1035_v15 = vpop.f32.mrf.mxu3  ;;  %1354 = vmatpush.bf16.msrb.mxu3 %v3589_v18  ;;  %v1075_v49 = vand.u32 2147483648, %v1063_v11  ;;  %v1073_v41 = vand.u32 2147483647, %v1063_v11  ;;  %vm1069_vm15 = vweird.f32 %v1063_v11 }
 0x1d1   :  { %v1057_v50 = vor.u32 1.1754944e-38, %v1056_v46  ;;  %vm1055_vm2 = vcmp.eq.f32.partialorder %v1054_v48, 8.507059e+37  ;;  %v3829_v48 = vld [vmem:[#allocation11 + $0xf8] sm:$0xf0] }
 0x1d2   :  { %v1076_v7 = vor.u32 1.1754944e-38, %v1075_v49  ;;  %vm1074_vm3 = vcmp.eq.f32.partialorder %v1073_v41, 8.507059e+37  ;;  %v3803_v41 = vld [vmem:[#allocation11 + $0xc0] sm:$0xf] }
 0x1d3   :  { %v4731_v23 = vpop.eup %4730 }
 0x1d4   :  { %v1083_v24 = vadd.f32 1.0, %v4731_v23 }
 0x1d5   :  { %v4733_v63 = vpop.eup %4732 }
 0x1d6   :  { %v4735_v30 = vpop.eup %4734  ;;  %v1046_v35 = vmul.f32 %v4733_v63, %v1044_v5  ;;  %4736 = vrcp.f32 %v1083_v24  ;;  %vm1051_vm12 = vweird.f32 %v4733_v63  ;;  %v1095_v12 = vand.u32 2147483648, %v1083_v24 }
 0x1d7   :  { %v1065_v32 = vmul.f32 %v4735_v30, %v1063_v11  ;;  %4738 = vtanh.f32 %v1039_v28  ;;  %vm1070_vm13 = vweird.f32 %v4735_v30  ;;  %vm1052_vm0 = vmor %vm1050_vm14, %vm1051_vm12  ;;  %vm1089_vm5 = vweird.f32 %v1083_v24  ;;  %v3819_v28 = vld [vmem:[#allocation11 + $0xe0] sm:$0xf] }
 0x1d8   :  { %v1047_v27 = vsub.f32 1.0, %v1046_v35  ;;  %vm1071_vm1 = vmor %vm1069_vm15, %vm1070_vm13  ;;  %v1093_v21 = vand.u32 2147483647, %v1083_v24  ;;  %v1096_v15 = vor.u32 1.1754944e-38, %v1095_v12  ;;  %v4548_v35 = vld [vmem:[#allocation11 + $0xe4] sm:$0xf] }
 0x1d9   :  { %v1066_v44 = vsub.f32 1.0, %v1065_v32  ;;  %v3795_v12 = vld [vmem:[#allocation11 + $0xa8] sm:$0xf] }
 0x1da   :  { %v1048_v42 = vmul.f32 %v4733_v63, %v1047_v27  ;;  %vm1094_vm7 = vcmp.eq.f32.partialorder %v1093_v21, 8.507059e+37  ;;  %v3827_v27 = vld [vmem:[#allocation11 + $0xe8] sm:$0xf]  ;;  %v4543_v21 = vld [vmem:[#allocation11 + $0xb4] sm:$0xf0] }
 0x1db   :  { %v1067_v26 = vmul.f32 %v4735_v30, %v1066_v44  ;;  %v4551_v44 = vld [vmem:[#allocation11 + $0xf4] sm:$0xf0] }
 0x1dc   :  { %v4737_v43 = vpop.eup %4736  ;;  %v1049_v53 = vadd.f32 %v4733_v63, %v1048_v42  ;;  %v3828_v49 = vor.u32 %v4551_v44, %v3827_v27  ;;  %v4549_v42 = vld [vmem:[#allocation11 + $0xec] sm:$0xf]  ;;  %v3779_v27 = vld [vmem:[#allocation11 + $0x88] sm:$0xf]  ;;  %v4539_v44 = vld [vmem:[#allocation11 + $0x94] sm:$0xf0] }
 0x1dd   :  { %v1068_v14 = vadd.f32 %v4735_v30, %v1067_v26  ;;  %v1085_v55 = vmul.f32 %v4737_v43, %v1083_v24  ;;  %v4739_v29 = vpop.eup %4738  ;;  %vm1090_vm4 = vweird.f32 %v4737_v43  ;;  %v3821_v24 = vld [vmem:[#allocation11 + $0xf0] sm:$0xf0]  ;;  %v3832_v26 = vor.u32 %v4549_v42, %v3829_v48  ;;  %v4537_v42 = vld [vmem:[#allocation11 + $0x8c] sm:$0xf]  ;;  %v3781_v48 = vld [vmem:[#allocation11 + $0x98] sm:$0xf0] }
 0x1de   :  { %v1053_v59 = vsel %vm1052_vm0, %v4733_v63, %v1049_v53  ;;  %vm1091_vm6 = vmor %vm1089_vm5, %vm1090_vm4  ;;  %v3824_v46 = vor.u32 %v4548_v35, %v3821_v24  ;;  %1657 = vmatpush.bf16.msrb.mxu2 %v3828_v49  ;;  %v4544_v53 = vld [vmem:[#allocation11 + $0xc4] sm:$0xf]  ;;  %v3773_v24 = vld [vmem:[#allocation11 + $0x90] sm:$0xf0]  ;;  %v3780_v49 = vor.u32 %v4539_v44, %v3779_v27 }
 0x1df   :  { %v1058_v60 = vsel %vm1055_vm2, %v1057_v50, %v1053_v59  ;;  %v1072_v2 = vsel %vm1071_vm1, %v4735_v30, %v1068_v14  ;;  %v1086_v4 = vsub.f32 1.0, %v1085_v55  ;;  %v4550_v30 = vld [vmem:[#allocation11 + $0xec] sm:$0xf0]  ;;  %1670 = vmatpush.bf16.msra.mxu3 %v3832_v26  ;;  %v3805_v14 = vld [vmem:[#allocation11 + $0xd0] sm:$0xf0]  ;;  %v3784_v26 = vor.u32 %v4537_v42, %v3781_v48 }
 0x1e0   :  { %v1077_v47 = vsel %vm1074_vm3, %v1076_v7, %v1072_v2  ;;  %v1100_v8 = vmul.f32 %v4739_v29, %v1058_v60  ;;  %v3820_v32 = vor.u32 %v4550_v30, %v3819_v28  ;;  %1644 = vmatpush.bf16.msrb.mxu1 %v3824_v46  ;;  %v3811_v55 = vld [vmem:[#allocation11 + $0xc8] sm:$0xf]  ;;  %v4547_v7 = vld [vmem:[#allocation11 + $0xd4] sm:$0xf0]  ;;  %v3808_v59 = vor.u32 %v4544_v53, %v3805_v14  ;;  %v4545_v60 = vld [vmem:[#allocation11 + $0xcc] sm:$0xf] }
 0x1e1   :  { %v1099_v10 = vmul.f32 %v1077_v47, %v5201_v51  ;;  %v1087_v57 = vmul.f32 %v4737_v43, %v1086_v4  ;;  %v3812_v29 = vor.u32 %v4547_v7, %v3811_v55  ;;  %v3813_v2 = vld [vmem:[#allocation11 + $0xd8] sm:$0xf0]  ;;  %v3787_v47 = vld [vmem:[#allocation11 + $0xa0] sm:$0xf]  ;;  %v4538_v30 = vld [vmem:[#allocation11 + $0x8c] sm:$0xf0] }
 0x1e2   :  { %1631 = vmatpush.bf16.msrb.mxu0 %v3820_v32  ;;  %v3816_v4 = vor.u32 %v4545_v60, %v3813_v2  ;;  %v3771_v28 = vld [vmem:[#allocation11 + $0x80] sm:$0xf]  ;;  %v4536_v35 = vld [vmem:[#allocation11 + $0x84] sm:$0xf]  ;;  %v3763_v60 = vld [vmem:[#allocation11 + $0x68] sm:$0xf] }
 0x1e3   :  { %v5214_v5 = vadd.f32 %v1100_v8, %v1099_v10  ;;  %v1088_v11 = vadd.f32 %v4737_v43, %v1087_v57  ;;  %1658 = vmatpush.bf16.msrb.mxu2 %v3812_v29  ;;  %v4542_v8 = vld [vmem:[#allocation11 + $0xac] sm:$0xf0]  ;;  %v4540_v10 = vld [vmem:[#allocation11 + $0xa4] sm:$0xf]  ;;  %v3772_v32 = vor.u32 %v4538_v30, %v3771_v28  ;;  %v3776_v46 = vor.u32 %v4536_v35, %v3773_v24  ;;  %v3755_v53 = vld [vmem:[#allocation11 + $0x60] sm:$0xf] }
 0x1e4   :  { %1645 = vmatpush.bf16.msrb.mxu1 %v3808_v59  ;;  %1671 = vmatpush.bf16.msra.mxu3 %v3816_v4  ;;  %v3788_v57 = vor.u32 %v4542_v8, %v3787_v47  ;;  %v4532_v14 = vld [vmem:[#allocation11 + $0x64] sm:$0xf]  ;;  %v3757_v29 = vld [vmem:[#allocation11 + $0x70] sm:$0xf0]  ;;  %v4535_v2 = vld [vmem:[#allocation11 + $0x74] sm:$0xf0] }
 0x1e5   :  { %4740 = vtanh.f32 %v5214_v5  ;;  %v1092_v13 = vsel %vm1091_vm6, %v4737_v43, %v1088_v11  ;;  %v4546_v43 = vld [vmem:[#allocation11 + $0xcc] sm:$0xf0]  ;;  %v3789_v11 = vld [vmem:[#allocation11 + $0xb0] sm:$0xf0]  ;;  %v3760_v4 = vor.u32 %v4532_v14, %v3757_v29  ;;  %v3764_v47 = vor.u32 %v4535_v2, %v3763_v60  ;;  %v4533_v8 = vld [vmem:[#allocation11 + $0x6c] sm:$0xf] }
 0x1e6   :  { %v1097_v23 = vsel %vm1094_vm7, %v1096_v15, %v1092_v13  ;;  %v3804_v50 = vor.u32 %v4546_v43, %v3803_v41  ;;  %v3792_v13 = vor.u32 %v4540_v10, %v3789_v11  ;;  %v3796_v15 = vor.u32 %v4543_v21, %v3795_v12  ;;  %v3765_v10 = vld [vmem:[#allocation11 + $0x78] sm:$0xf0]  ;;  %v3739_v21 = vld [vmem:[#allocation11 + $0x40] sm:$0xf]  ;;  %v4529_v30 = vld [vmem:[#allocation11 + $0x4c] sm:$0xf] }
 0x1e7   :  { %v3768_v12 = vor.u32 %v4533_v8, %v3765_v10  ;;  %v3749_v35 = vld [vmem:[#allocation11 + $0x58] sm:$0xf0]  ;;  %v3725_v42 = vld [vmem:[#allocation11 + $0x30] sm:$0xf0]  ;;  %v4525_v14 = vld [vmem:[#allocation11 + $0x2c] sm:$0xf] }
 0x1e8   :  { %1632 = vmatpush.bf16.msrb.mxu0 %v3804_v50  ;;  %1646 = vmatpush.bf16.msrb.mxu1 %v3792_v13  ;;  %v4534_v50 = vld [vmem:[#allocation11 + $0x6c] sm:$0xf0]  ;;  %v3752_v44 = vor.u32 %v4529_v30, %v3749_v35  ;;  %v3707_v29 = vld [vmem:[#allocation11] sm:$0xf]  ;;  %v3709_v8 = vld [vmem:[#allocation11 + $0x10] sm:$0xf0] }
 0x1e9   :  { %1659 = vmatpush.bf16.msrb.mxu2 %v3796_v15  ;;  %v3756_v59 = vor.u32 %v4534_v50, %v3755_v53  ;;  %v4530_v13 = vld [vmem:[#allocation11 + $0x4c] sm:$0xf0]  ;;  %v3741_v15 = vld [vmem:[#allocation11 + $0x50] sm:$0xf0]  ;;  %v3731_v53 = vld [vmem:[#allocation11 + $0x28] sm:$0xf] }
 0x1ea   :  { %v4527_v50 = vld [vmem:[#allocation11 + $0x34] sm:$0xf0]  ;;  %v4522_v60 = vld [vmem:[#allocation11 + $0xc] sm:$0xf0] }
 0x1eb   :  { %v4741_v18 = vpop.eup %4740 }
 0x1ec   :  { %v5217_v63 = vmul.f32 %v4741_v18, %v1097_v23  ;;  %v4541_v18 = vld [vmem:[#allocation11 + $0xac] sm:$0xf]  ;;  %v3797_v23 = vld [vmem:[#allocation11 + $0xb8] sm:$0xf0]  ;;  %1633 = vmatpush.bf16.msrb.mxu0 %v3788_v57  ;;  %1647 = vmatpush.bf16.msrb.mxu1 %v3776_v46  ;;  %v4526_v46 = vld [vmem:[#allocation11 + $0x2c] sm:$0xf0] }
 0x1ed   :  { %1660 = vmatpush.bf16.msrb.mxu2 %v3780_v49  ;;  %v4524_v49 = vld [vmem:[#allocation11 + $0x24] sm:$0xf] }
 0x1ee   :  { %v1115_v51 = vpack.c.bf16 %v5217_v63, %v5217_v63 }
 0x1f0   :  { %1316 = vmatmul.bf16.vlgmr.msra.gmra.mxu0 %v1115_v51  ;;  %1329 = vmatmul.bf16.vlgmr.msra.gmra.mxu1 %v1115_v51 }
 0x1f1   :  { %1342 = vmatmul.bf16.vlgmr.msra.gmra.mxu2 %v1115_v51  ;;  %1355 = vmatmul.bf16.vlgmr.msrb.gmra.mxu3 %v1115_v51  ;;  %v3800_v51 = vor.u32 %v4541_v18, %v3797_v23  ;;  %v3747_v18 = vld [vmem:[#allocation11 + $0x48] sm:$0xf]  ;;  %v4531_v23 = vld [vmem:[#allocation11 + $0x54] sm:$0xf0] }
 0x1f2   :  { %1634 = vmatpush.bf16.msrb.mxu0 %v3772_v32  ;;  %1648 = vmatpush.bf16.msrb.mxu1 %v3760_v4  ;;  %v3748_v28 = vor.u32 %v4531_v23, %v3747_v18  ;;  %v3723_v32 = vld [vmem:[#allocation11 + $0x20] sm:$0xf] }
 0x1f3   :  { %1672 = vmatpush.bf16.msra.mxu3 %v3800_v51  ;;  %1661 = vmatpush.bf16.msrb.mxu2 %v3764_v47  ;;  %v4520_v47 = vld [vmem:[#allocation11 + $0x4] sm:$0xf] }
 0x1f6   :  { %1635 = vmatpush.bf16.msrb.mxu0 %v3756_v59  ;;  %v3733_v59 = vld [vmem:[#allocation11 + $0x38] sm:$0xf0] }
 0x1f7   :  { %1673 = vmatpush.bf16.msra.mxu3 %v3784_v26  ;;  %1662 = vmatpush.bf16.msrb.mxu2 %v3748_v28  ;;  %v3736_v4 = vor.u32 %v4525_v14, %v3733_v59 }
 0x1fb   :  { %1674 = vmatpush.bf16.msra.mxu3 %v3768_v12  ;;  %v4521_v12 = vld [vmem:[#allocation11 + $0xc] sm:$0xf] }
 0x1ff   :  { %1675 = vmatpush.bf16.msra.mxu3 %v3752_v44 }
 0x203   :  { %1676 = vmatpush.bf16.msra.mxu3 %v3736_v4 }
 0x26d   :  { %v1317_v41 = vpop.f32.mrf.mxu0  ;;  %v1330_v43 = vpop.f32.mrf.mxu1 }
 0x26e   :  { %v1360_v55 = vadd.f32 %v1317_v41, %v5102_v31  ;;  %v1361_v7 = vadd.f32 %v1330_v43, %v5138_v54  ;;  %v4528_v31 = vld [vmem:[#allocation11 + $0x44] sm:$0xf]  ;;  %v3740_v54 = vor.u32 %v4530_v13, %v3739_v21  ;;  %v3724_v43 = vor.u32 %v4526_v46, %v3723_v32 }
 0x26f   :  { %v3744_v51 = vor.u32 %v4528_v31, %v3741_v15  ;;  %v3712_v31 = vor.u32 %v4520_v47, %v3709_v8  ;;  %v3717_v15 = vld [vmem:[#allocation11 + $0x18] sm:$0xf0] }
 0x270   :  { %v3702_v57 = vmul.f32 -1.442695, %v1360_v55  ;;  %v3703_v11 = vmul.f32 -1.442695, %v1361_v7  ;;  %1636 = vmatpush.bf16.msrb.mxu0 %v3740_v54  ;;  %v3728_v55 = vor.u32 %v4524_v49, %v3725_v42  ;;  %v3732_v7 = vor.u32 %v4527_v50, %v3731_v53 }
 0x271   :  { %1649 = vmatpush.bf16.msrb.mxu1 %v3744_v51  ;;  %v3720_v23 = vor.u32 %v4521_v12, %v3717_v15 }
 0x272   :  { %4742 = vpow2.f32 %v3702_v57  ;;  %v3715_v57 = vld [vmem:[#allocation11 + $0x8] sm:$0xf]  ;;  %1663 = vmatpush.bf16.msrb.mxu2 %v3732_v7 }
 0x273   :  { %4744 = vpow2.f32 %v3703_v11  ;;  %v4523_v11 = vld [vmem:[#allocation11 + $0x14] sm:$0xf0]  ;;  %1677 = vmatpush.bf16.msra.mxu3 %v3720_v23 }
 0x274   :  { %v1343_v24 = vpop.f32.mrf.mxu2  ;;  %v1356_v27 = vpop.f32.mrf.mxu3  ;;  %1637 = vmatpush.bf16.msrb.mxu0 %v3724_v43  ;;  %v3716_v54 = vor.u32 %v4523_v11, %v3715_v57 }
 0x275   :  { %v1363_v48 = vadd.f32 %v1356_v27, %v5108_v36  ;;  %v1319_v26 = vpop.f32.mrf.mxu0  ;;  %v1332_v41 = vpop.f32.mrf.mxu1  ;;  %v3708_v36 = vor.u32 %v4522_v60, %v3707_v29  ;;  %1650 = vmatpush.bf16.msrb.mxu1 %v3728_v55  ;;  %v1362_v27 = vadd.f32 %v1343_v24, %v5141_v56 }
 0x276   :  { %1664 = vmatpush.bf16.msrb.mxu2 %v3716_v54 }
 0x277   :  { %v3704_v2 = vmul.f32 -1.442695, %v1363_v48 }
 0x278   :  { %v4743_v10 = vpop.eup %4742  ;;  %1638 = vmatpush.bf16.msrb.mxu0 %v3708_v36 }
 0x279   :  { %v4745_v21 = vpop.eup %4744  ;;  %v1367_v13 = vadd.f32 1.0, %v4743_v10  ;;  %4746 = vpow2.f32 %v3704_v2  ;;  %1651 = vmatpush.bf16.msrb.mxu1 %v3712_v31 }
 0x27a   :  { %v1386_v18 = vadd.f32 1.0, %v4745_v21 }
 0x27b   :  { %4748 = vrcp.f32 %v1367_v13  ;;  %v1379_v26 = vand.u32 2147483648, %v1367_v13  ;;  %v1377_v53 = vand.u32 2147483647, %v1367_v13  ;;  %vm1373_vm10 = vweird.f32 %v1367_v13 }
 0x27c   :  { %4750 = vrcp.f32 %v1386_v18  ;;  %v1345_v51 = vpop.f32.mrf.mxu2  ;;  %v1358_v28 = vpop.f32.mrf.mxu3  ;;  %v1398_v41 = vand.u32 2147483648, %v1386_v18  ;;  %v1396_v14 = vand.u32 2147483647, %v1386_v18  ;;  %vm1392_vm11 = vweird.f32 %v1386_v18 }
 0x27d   :  { %v1380_v56 = vor.u32 1.1754944e-38, %v1379_v26  ;;  %vm1378_vm14 = vcmp.eq.f32.partialorder %v1377_v53, 8.507059e+37  ;;  %v3950_v28 = vld [vmem:[#allocation11 + $0xe0] sm:$0xf]  ;;  %v3960_v26 = vld [vmem:[#allocation11 + $0xf8] sm:$0xf0] }
 0x27e   :  { %v1399_v29 = vor.u32 1.1754944e-38, %v1398_v41  ;;  %vm1397_vm15 = vcmp.eq.f32.partialorder %v1396_v14, 8.507059e+37  ;;  %v4578_v53 = vld [vmem:[#allocation11 + $0xcc] sm:$0xf0] }
 0x27f   :  { %v4747_v30 = vpop.eup %4746 }
 0x280   :  { %v1406_v35 = vadd.f32 1.0, %v4747_v30  ;;  %v4582_v30 = vld [vmem:[#allocation11 + $0xec] sm:$0xf0] }
 0x281   :  { %v4749_v32 = vpop.eup %4748 }
 0x282   :  { %v4751_v44 = vpop.eup %4750  ;;  %v1369_v46 = vmul.f32 %v4749_v32, %v1367_v13  ;;  %4752 = vrcp.f32 %v1406_v35  ;;  %vm1374_vm8 = vweird.f32 %v4749_v32  ;;  %v1418_v13 = vand.u32 2147483648, %v1406_v35 }
 0x283   :  { %v1388_v49 = vmul.f32 %v4751_v44, %v1386_v18  ;;  %4754 = vtanh.f32 %v1362_v27  ;;  %vm1393_vm9 = vweird.f32 %v4751_v44  ;;  %vm1375_vm12 = vmor %vm1373_vm10, %vm1374_vm8  ;;  %vm1412_vm1 = vweird.f32 %v1406_v35 }
 0x284   :  { %v1370_v42 = vsub.f32 1.0, %v1369_v46  ;;  %vm1394_vm13 = vmor %vm1392_vm11, %vm1393_vm9  ;;  %v1416_v31 = vand.u32 2147483647, %v1406_v35  ;;  %v1419_v15 = vor.u32 1.1754944e-38, %v1418_v13  ;;  %v3951_v27 = vor.u32 %v4582_v30, %v3950_v28  ;;  %v4583_v46 = vld [vmem:[#allocation11 + $0xf4] sm:$0xf0] }
 0x285   :  { %v1389_v48 = vsub.f32 1.0, %v1388_v49  ;;  %v3904_v30 = vld [vmem:[#allocation11 + $0x90] sm:$0xf0] }
 0x286   :  { %v1371_v43 = vmul.f32 %v4749_v32, %v1370_v42  ;;  %vm1417_vm3 = vcmp.eq.f32.partialorder %v1416_v31, 8.507059e+37  ;;  %1954 = vmatpush.bf16.msra.mxu0 %v3951_v27  ;;  %v4573_v31 = vld [vmem:[#allocation11 + $0xac] sm:$0xf]  ;;  %v4571_v27 = vld [vmem:[#allocation11 + $0x94] sm:$0xf0] }
 0x287   :  { %v1390_v50 = vmul.f32 %v4751_v44, %v1389_v48  ;;  %v4581_v48 = vld [vmem:[#allocation11 + $0xec] sm:$0xf] }
 0x288   :  { %v4753_v55 = vpop.eup %4752  ;;  %v1372_v7 = vadd.f32 %v4749_v32, %v1371_v43  ;;  %v3963_v41 = vor.u32 %v4581_v48, %v3960_v26  ;;  %v3934_v43 = vld [vmem:[#allocation11 + $0xc0] sm:$0xf]  ;;  %v331_v48 = vadd.f32 %v5110_v37, %v5084_v17 }
 0x289   :  { %v1391_v24 = vadd.f32 %v4751_v44, %v1390_v50  ;;  %v1408_v59 = vmul.f32 %v4753_v55, %v1406_v35  ;;  %v4755_v2 = vpop.eup %4754  ;;  %vm1413_vm0 = vweird.f32 %v4753_v55  ;;  %v3952_v35 = vld [vmem:[#allocation11 + $0xf0] sm:$0xf0]  ;;  %v4576_v50 = vld [vmem:[#allocation11 + $0xc4] sm:$0xf]  ;;  %v3935_v14 = vor.u32 %v4578_v53, %v3934_v43  ;;  %v3886_v26 = vld [vmem:[#allocation11 + $0x60] sm:$0xf] }
 0x28a   :  { %v1376_v60 = vsel %vm1375_vm12, %v4749_v32, %v1372_v7  ;;  %vm1414_vm2 = vmor %vm1412_vm1, %vm1413_vm0  ;;  %v4580_v32 = vld [vmem:[#allocation11 + $0xe4] sm:$0xf]  ;;  %1993 = vmatpush.bf16.msrb.mxu3 %v3963_v41  ;;  %v3942_v7 = vld [vmem:[#allocation11 + $0xc8] sm:$0xf] }
 0x28b   :  { %v1381_v4 = vsel %vm1378_vm14, %v1380_v56, %v1376_v60  ;;  %v1395_v47 = vsel %vm1394_vm13, %v4751_v44, %v1391_v24  ;;  %v1409_v8 = vsub.f32 1.0, %v1408_v59  ;;  %v3958_v44 = vld [vmem:[#allocation11 + $0xe8] sm:$0xf]  ;;  %v3955_v49 = vor.u32 %v4580_v32, %v3952_v35  ;;  %v4579_v56 = vld [vmem:[#allocation11 + $0xd4] sm:$0xf0]  ;;  %1955 = vmatpush.bf16.msra.mxu0 %v3935_v14 }
 0x28c   :  { %v1400_v10 = vsel %vm1397_vm15, %v1399_v29, %v1395_v47  ;;  %v1423_v36 = vmul.f32 %v4755_v2, %v1381_v4  ;;  %v3959_v42 = vor.u32 %v4583_v46, %v3958_v44  ;;  %v3943_v59 = vor.u32 %v4579_v56, %v3942_v7  ;;  %v4577_v29 = vld [vmem:[#allocation11 + $0xcc] sm:$0xf]  ;;  %v3944_v60 = vld [vmem:[#allocation11 + $0xd8] sm:$0xf0]  ;;  %v3918_v4 = vld [vmem:[#allocation11 + $0xa0] sm:$0xf] }
 0x28d   :  { %v1422_v57 = vmul.f32 %v1400_v10, %v5214_v5  ;;  %v1410_v11 = vmul.f32 %v4753_v55, %v1409_v8  ;;  %1967 = vmatpush.bf16.msra.mxu1 %v3955_v49  ;;  %v3947_v2 = vor.u32 %v4577_v29, %v3944_v60  ;;  %v4574_v47 = vld [vmem:[#allocation11 + $0xac] sm:$0xf0]  ;;  %v4572_v8 = vld [vmem:[#allocation11 + $0xa4] sm:$0xf]  ;;  %v3910_v32 = vld [vmem:[#allocation11 + $0x88] sm:$0xf] }
 0x28e   :  { %1980 = vmatpush.bf16.msra.mxu2 %v3959_v42  ;;  %v3919_v10 = vor.u32 %v4574_v47, %v3918_v4  ;;  %v3911_v44 = vor.u32 %v4571_v27, %v3910_v32  ;;  %v4569_v46 = vld [vmem:[#allocation11 + $0x8c] sm:$0xf]  ;;  %v3912_v49 = vld [vmem:[#allocation11 + $0x98] sm:$0xf0]  ;;  %v4566_v41 = vld [vmem:[#allocation11 + $0x6c] sm:$0xf0] }
 0x28f   :  { %v5226_v12 = vadd.f32 %v1423_v36, %v1422_v57  ;;  %v1411_v21 = vadd.f32 %v4753_v55, %v1410_v11  ;;  %1994 = vmatpush.bf16.msrb.mxu3 %v3947_v2  ;;  %v3920_v36 = vld [vmem:[#allocation11 + $0xb0] sm:$0xf0]  ;;  %v3926_v57 = vld [vmem:[#allocation11 + $0xa8] sm:$0xf]  ;;  %v4575_v11 = vld [vmem:[#allocation11 + $0xb4] sm:$0xf0]  ;;  %v3915_v42 = vor.u32 %v4569_v46, %v3912_v49  ;;  %v3887_v14 = vor.u32 %v4566_v41, %v3886_v26 }
 0x290   :  { %v3927_v13 = vor.u32 %v4575_v11, %v3926_v57  ;;  %1956 = vmatpush.bf16.msra.mxu0 %v3919_v10  ;;  %v4564_v43 = vld [vmem:[#allocation11 + $0x64] sm:$0xf]  ;;  %v3894_v7 = vld [vmem:[#allocation11 + $0x68] sm:$0xf]  ;;  %v4567_v56 = vld [vmem:[#allocation11 + $0x74] sm:$0xf0] }
 0x291   :  { %4756 = vtanh.f32 %v5226_v12  ;;  %v1415_v54 = vsel %vm1414_vm2, %v4753_v55, %v1411_v21  ;;  %v3936_v55 = vld [vmem:[#allocation11 + $0xd0] sm:$0xf0]  ;;  %v3923_v21 = vor.u32 %v4572_v8, %v3920_v36  ;;  %v3895_v60 = vor.u32 %v4567_v56, %v3894_v7  ;;  %v4565_v2 = vld [vmem:[#allocation11 + $0x6c] sm:$0xf]  ;;  %v3896_v4 = vld [vmem:[#allocation11 + $0x78] sm:$0xf0] }
 0x292   :  { %v1420_v23 = vsel %vm1417_vm3, %v1419_v15, %v1415_v54  ;;  %v3939_v24 = vor.u32 %v4576_v50, %v3936_v55  ;;  %1981 = vmatpush.bf16.msra.mxu2 %v3943_v59  ;;  %v3928_v54 = vld [vmem:[#allocation11 + $0xb8] sm:$0xf0]  ;;  %v3888_v55 = vld [vmem:[#allocation11 + $0x70] sm:$0xf0]  ;;  %v3899_v37 = vor.u32 %v4565_v2, %v3896_v4  ;;  %v3870_v10 = vld [vmem:[#allocation11 + $0x40] sm:$0xf] }
 0x293   :  { %v3931_v15 = vor.u32 %v4573_v31, %v3928_v54  ;;  %v3891_v29 = vor.u32 %v4564_v43, %v3888_v55  ;;  %v4562_v36 = vld [vmem:[#allocation11 + $0x4c] sm:$0xf0]  ;;  %v4560_v57 = vld [vmem:[#allocation11 + $0x44] sm:$0xf]  ;;  %v3872_v11 = vld [vmem:[#allocation11 + $0x50] sm:$0xf0] }
 0x294   :  { %1968 = vmatpush.bf16.msra.mxu1 %v3939_v24  ;;  %v3878_v31 = vld [vmem:[#allocation11 + $0x48] sm:$0xf]  ;;  %v4561_v54 = vld [vmem:[#allocation11 + $0x4c] sm:$0xf]  ;;  %v4559_v41 = vld [vmem:[#allocation11 + $0x34] sm:$0xf0] }
 0x295   :  { %1995 = vmatpush.bf16.msrb.mxu3 %v3931_v15  ;;  %v3862_v46 = vld [vmem:[#allocation11 + $0x28] sm:$0xf]  ;;  %v4557_v43 = vld [vmem:[#allocation11 + $0x2c] sm:$0xf]  ;;  %v3838_v55 = vld [vmem:[#allocation11] sm:$0xf] }
 0x296   :  { %1982 = vmatpush.bf16.msra.mxu2 %v3927_v13  ;;  %v3875_v13 = vor.u32 %v4560_v57, %v3872_v11  ;;  %v4554_v7 = vld [vmem:[#allocation11 + $0xc] sm:$0xf0]  ;;  %v4552_v56 = vld [vmem:[#allocation11 + $0x4] sm:$0xf]  ;;  %v4555_v4 = vld [vmem:[#allocation11 + $0x14] sm:$0xf0] }
 0x297   :  { %v4757_v18 = vpop.eup %4756 }
 0x298   :  { %v5229_v51 = vmul.f32 %v4757_v18, %v1420_v23  ;;  %1969 = vmatpush.bf16.msra.mxu1 %v3923_v21  ;;  %v3902_v18 = vld [vmem:[#allocation11 + $0x80] sm:$0xf]  ;;  %v4570_v23 = vld [vmem:[#allocation11 + $0x8c] sm:$0xf0]  ;;  %v3871_v21 = vor.u32 %v4562_v36, %v3870_v10 }
 0x299   :  { %v3903_v28 = vor.u32 %v4570_v23, %v3902_v18  ;;  %1996 = vmatpush.bf16.msrb.mxu3 %v3915_v42  ;;  %v3880_v18 = vld [vmem:[#allocation11 + $0x58] sm:$0xf0]  ;;  %v3854_v23 = vld [vmem:[#allocation11 + $0x20] sm:$0xf] }
 0x29a   :  { %v1438_v5 = vpack.c.bf16 %v5229_v51, %v5229_v51  ;;  %1983 = vmatpush.bf16.msra.mxu2 %v3911_v44  ;;  %v3883_v32 = vor.u32 %v4561_v54, %v3880_v18  ;;  %v3856_v44 = vld [vmem:[#allocation11 + $0x30] sm:$0xf0] }
 0x29b   :  { %1957 = vmatpush.bf16.msra.mxu0 %v3903_v28 }
 0x29c   :  { %1639 = vmatmul.bf16.vlgmr.msrb.gmra.mxu0 %v1438_v5  ;;  %1652 = vmatmul.bf16.vlgmr.msrb.gmra.mxu1 %v1438_v5 }
 0x29d   :  { %1665 = vmatmul.bf16.vlgmr.msrb.gmra.mxu2 %v1438_v5  ;;  %1678 = vmatmul.bf16.vlgmr.msra.gmra.mxu3 %v1438_v5  ;;  %v4568_v5 = vld [vmem:[#allocation11 + $0x84] sm:$0xf] }
 0x29e   :  { %v3907_v35 = vor.u32 %v4568_v5, %v3904_v30  ;;  %1984 = vmatpush.bf16.msra.mxu2 %v3895_v60  ;;  %1997 = vmatpush.bf16.msrb.mxu3 %v3899_v37  ;;  %v4558_v5 = vld [vmem:[#allocation11 + $0x2c] sm:$0xf0]  ;;  %v4553_v37 = vld [vmem:[#allocation11 + $0xc] sm:$0xf] }
 0x29f   :  { %1958 = vmatpush.bf16.msra.mxu0 %v3887_v14  ;;  %v3855_v27 = vor.u32 %v4558_v5, %v3854_v23 }
 0x2a0   :  { %1970 = vmatpush.bf16.msra.mxu1 %v3907_v35  ;;  %v4556_v35 = vld [vmem:[#allocation11 + $0x24] sm:$0xf] }
 0x2a1   :  { %v3859_v26 = vor.u32 %v4556_v35, %v3856_v44 }
 0x2a2   :  { %1998 = vmatpush.bf16.msrb.mxu3 %v3883_v32 }
 0x2a3   :  { %1959 = vmatpush.bf16.msra.mxu0 %v3871_v21 }
 0x2a4   :  { %1971 = vmatpush.bf16.msra.mxu1 %v3891_v29  ;;  %v3846_v29 = vld [vmem:[#allocation11 + $0x8] sm:$0xf] }
 0x2a5   :  { %v3847_v36 = vor.u32 %v4555_v4, %v3846_v29 }
 0x2a7   :  { %1960 = vmatpush.bf16.msra.mxu0 %v3855_v27 }
 0x2a8   :  { %1972 = vmatpush.bf16.msra.mxu1 %v3875_v13 }
 0x2ac   :  { %1973 = vmatpush.bf16.msra.mxu1 %v3859_v26 }
 0x319   :  { %v1640_v53 = vpop.f32.mrf.mxu0  ;;  %v1653_v50 = vpop.f32.mrf.mxu1 }
 0x31a   :  { %v1683_v24 = vadd.f32 %v1640_v53, %v331_v48  ;;  %v1684_v59 = vadd.f32 %v1653_v50, %v5147_v19  ;;  %v4563_v19 = vld [vmem:[#allocation11 + $0x54] sm:$0xf0]  ;;  %v3864_v53 = vld [vmem:[#allocation11 + $0x38] sm:$0xf0]  ;;  %v3863_v50 = vor.u32 %v4559_v41, %v3862_v46 }
 0x31b   :  { %v3879_v15 = vor.u32 %v4563_v19, %v3878_v31  ;;  %v3867_v14 = vor.u32 %v4557_v43, %v3864_v53 }
 0x31c   :  { %v3833_v47 = vmul.f32 -1.442695, %v1683_v24  ;;  %v3834_v8 = vmul.f32 -1.442695, %v1684_v59  ;;  %v3840_v59 = vld [vmem:[#allocation11 + $0x10] sm:$0xf0] }
 0x31d   :  { %1985 = vmatpush.bf16.msra.mxu2 %v3879_v15  ;;  %v3843_v2 = vor.u32 %v4552_v56, %v3840_v59  ;;  %1999 = vmatpush.bf16.msrb.mxu3 %v3867_v14 }
 0x31e   :  { %4758 = vpow2.f32 %v3833_v47  ;;  %v3848_v47 = vld [vmem:[#allocation11 + $0x18] sm:$0xf0] }
 0x31f   :  { %4760 = vpow2.f32 %v3834_v8  ;;  %v3851_v11 = vor.u32 %v4553_v37, %v3848_v47  ;;  %1974 = vmatpush.bf16.msra.mxu1 %v3843_v2 }
 0x320   :  { %v1666_v28 = vpop.f32.mrf.mxu2  ;;  %v1679_v30 = vpop.f32.mrf.mxu3 }
 0x321   :  { %v1686_v49 = vadd.f32 %v1679_v30, %v5115_v40  ;;  %v1642_v42 = vpop.f32.mrf.mxu0  ;;  %v1655_v48 = vpop.f32.mrf.mxu1  ;;  %v3839_v40 = vor.u32 %v4554_v7, %v3838_v55  ;;  %1986 = vmatpush.bf16.msra.mxu2 %v3863_v50  ;;  %2000 = vmatpush.bf16.msrb.mxu3 %v3851_v11  ;;  %v1685_v15 = vadd.f32 %v1666_v28, %v5150_v61  ;;  %v4614_v11 = vld [vmem:[#allocation11 + $0xec] sm:$0xf0] }
 0x323   :  { %v3835_v24 = vmul.f32 -1.442695, %v1686_v49  ;;  %1961 = vmatpush.bf16.msra.mxu0 %v3839_v40 }
 0x324   :  { %v4759_v60 = vpop.eup %4758 }
 0x325   :  { %v4761_v8 = vpop.eup %4760  ;;  %v1690_v10 = vadd.f32 1.0, %v4759_v60  ;;  %4762 = vpow2.f32 %v3835_v24  ;;  %1987 = vmatpush.bf16.msra.mxu2 %v3847_v36 }
 0x326   :  { %v1709_v57 = vadd.f32 1.0, %v4761_v8 }
 0x327   :  { %4764 = vrcp.f32 %v1690_v10  ;;  %v1702_v27 = vand.u32 2147483648, %v1690_v10  ;;  %v1700_v46 = vand.u32 2147483647, %v1690_v10  ;;  %vm1696_vm6 = vweird.f32 %v1690_v10 }
 0x328   :  { %4766 = vrcp.f32 %v1709_v57  ;;  %v1668_v21 = vpop.f32.mrf.mxu2  ;;  %v1681_v13 = vpop.f32.mrf.mxu3  ;;  %v1721_v35 = vand.u32 2147483648, %v1709_v57  ;;  %v1719_v42 = vand.u32 2147483647, %v1709_v57  ;;  %vm1715_vm7 = vweird.f32 %v1709_v57 }
 0x329   :  { %v1703_v61 = vor.u32 1.1754944e-38, %v1702_v27  ;;  %vm1701_vm10 = vcmp.eq.f32.partialorder %v1700_v46, 8.507059e+37  ;;  %v4612_v21 = vld [vmem:[#allocation11 + $0xe4] sm:$0xf]  ;;  %v4610_v27 = vld [vmem:[#allocation11 + $0xcc] sm:$0xf0] }
 0x32a   :  { %v1722_v43 = vor.u32 1.1754944e-38, %v1721_v35  ;;  %vm1720_vm11 = vcmp.eq.f32.partialorder %v1719_v42, 8.507059e+37  ;;  %v4608_v35 = vld [vmem:[#allocation11 + $0xc4] sm:$0xf]  ;;  %v4067_v46 = vld [vmem:[#allocation11 + $0xd0] sm:$0xf0] }
 0x32b   :  { %v4763_v31 = vpop.eup %4762  ;;  %v4611_v42 = vld [vmem:[#allocation11 + $0xd4] sm:$0xf0] }
 0x32c   :  { %v1729_v19 = vadd.f32 1.0, %v4763_v31  ;;  %v4083_v31 = vld [vmem:[#allocation11 + $0xf0] sm:$0xf0] }
 0x32d   :  { %v4765_v54 = vpop.eup %4764 }
 0x32e   :  { %v4767_v18 = vpop.eup %4766  ;;  %v1692_v23 = vmul.f32 %v4765_v54, %v1690_v10  ;;  %4768 = vrcp.f32 %v1729_v19  ;;  %vm1697_vm4 = vweird.f32 %v4765_v54  ;;  %v1741_v2 = vand.u32 2147483648, %v1729_v19 }
 0x32f   :  { %v1711_v5 = vmul.f32 %v4767_v18, %v1709_v57  ;;  %4770 = vtanh.f32 %v1685_v15  ;;  %vm1716_vm5 = vweird.f32 %v4767_v18  ;;  %vm1698_vm8 = vmor %vm1696_vm6, %vm1697_vm4  ;;  %vm1735_vm13 = vweird.f32 %v1729_v19  ;;  %v4081_v57 = vld [vmem:[#allocation11 + $0xe0] sm:$0xf] }
 0x330   :  { %v1693_v30 = vsub.f32 1.0, %v1692_v23  ;;  %vm1717_vm9 = vmor %vm1715_vm7, %vm1716_vm5  ;;  %v1739_v4 = vand.u32 2147483647, %v1729_v19  ;;  %v1742_v47 = vor.u32 1.1754944e-38, %v1741_v2  ;;  %v4082_v13 = vor.u32 %v4614_v11, %v4081_v57  ;;  %v4613_v23 = vld [vmem:[#allocation11 + $0xec] sm:$0xf] }
 0x331   :  { %v1712_v32 = vsub.f32 1.0, %v1711_v5  ;;  %v4086_v15 = vor.u32 %v4612_v21, %v4083_v31  ;;  %v4091_v5 = vld [vmem:[#allocation11 + $0xf8] sm:$0xf0]  ;;  %v4603_v57 = vld [vmem:[#allocation11 + $0x94] sm:$0xf0] }
 0x332   :  { %v1694_v44 = vmul.f32 %v4765_v54, %v1693_v30  ;;  %vm1740_vm15 = vcmp.eq.f32.partialorder %v1739_v4, 8.507059e+37  ;;  %2277 = vmatpush.bf16.msrb.mxu0 %v4082_v13  ;;  %v4094_v30 = vor.u32 %v4613_v23, %v4091_v5  ;;  %v4033_v4 = vld [vmem:[#allocation11 + $0x80] sm:$0xf]  ;;  %v4601_v13 = vld [vmem:[#allocation11 + $0x8c] sm:$0xf] }
 0x333   :  { %v1713_v49 = vmul.f32 %v4767_v18, %v1712_v32  ;;  %2290 = vmatpush.bf16.msrb.mxu1 %v4086_v15  ;;  %v4065_v32 = vld [vmem:[#allocation11 + $0xc0] sm:$0xf]  ;;  %v4043_v31 = vld [vmem:[#allocation11 + $0x98] sm:$0xf0]  ;;  %v4598_v15 = vld [vmem:[#allocation11 + $0x6c] sm:$0xf0] }
 0x334   :  { %v4769_v48 = vpop.eup %4768  ;;  %v1695_v26 = vadd.f32 %v4765_v54, %v1694_v44  ;;  %2316 = vmatpush.bf16.msra.mxu3 %v4094_v30  ;;  %v4066_v44 = vor.u32 %v4610_v27, %v4065_v32  ;;  %v4019_v5 = vld [vmem:[#allocation11 + $0x70] sm:$0xf0]  ;;  %v4025_v30 = vld [vmem:[#allocation11 + $0x68] sm:$0xf]  ;;  %v4599_v32 = vld [vmem:[#allocation11 + $0x74] sm:$0xf0] }
 0x335   :  { %v1714_v28 = vadd.f32 %v4767_v18, %v1713_v49  ;;  %v1731_v41 = vmul.f32 %v4769_v48, %v1729_v19  ;;  %v4771_v50 = vpop.eup %4770  ;;  %vm1736_vm12 = vweird.f32 %v4769_v48  ;;  %v4089_v19 = vld [vmem:[#allocation11 + $0xe8] sm:$0xf] }
 0x336   :  { %v1699_v53 = vsel %vm1698_vm8, %v4765_v54, %v1695_v26  ;;  %vm1737_vm14 = vmor %vm1735_vm13, %vm1736_vm12  ;;  %v4615_v54 = vld [vmem:[#allocation11 + $0xf4] sm:$0xf0]  ;;  %v4073_v49 = vld [vmem:[#allocation11 + $0xc8] sm:$0xf]  ;;  %2278 = vmatpush.bf16.msrb.mxu0 %v4066_v44 }
 0x337   :  { %v1704_v14 = vsel %vm1701_vm10, %v1703_v61, %v1699_v53  ;;  %v1718_v55 = vsel %vm1717_vm9, %v4767_v18, %v1714_v28  ;;  %v1732_v7 = vsub.f32 1.0, %v1731_v41  ;;  %v4090_v18 = vor.u32 %v4615_v54, %v4089_v19  ;;  %v4609_v61 = vld [vmem:[#allocation11 + $0xcc] sm:$0xf]  ;;  %v4075_v28 = vld [vmem:[#allocation11 + $0xd8] sm:$0xf0] }
 0x338   :  { %v1723_v56 = vsel %vm1720_vm11, %v1722_v43, %v1718_v55  ;;  %v1746_v24 = vmul.f32 %v4771_v50, %v1704_v14  ;;  %v4074_v26 = vor.u32 %v4611_v42, %v4073_v49  ;;  %v4078_v41 = vor.u32 %v4609_v61, %v4075_v28  ;;  %v4049_v43 = vld [vmem:[#allocation11 + $0xa0] sm:$0xf]  ;;  %v4606_v53 = vld [vmem:[#allocation11 + $0xac] sm:$0xf0]  ;;  %v4604_v50 = vld [vmem:[#allocation11 + $0xa4] sm:$0xf] }
 0x339   :  { %v1745_v59 = vmul.f32 %v1723_v56, %v5226_v12  ;;  %v1733_v29 = vmul.f32 %v4769_v48, %v1732_v7  ;;  %2303 = vmatpush.bf16.msrb.mxu2 %v4090_v18  ;;  %v4050_v14 = vor.u32 %v4606_v53, %v4049_v43  ;;  %v4051_v55 = vld [vmem:[#allocation11 + $0xb0] sm:$0xf0]  ;;  %v4057_v7 = vld [vmem:[#allocation11 + $0xa8] sm:$0xf]  ;;  %v4607_v56 = vld [vmem:[#allocation11 + $0xb4] sm:$0xf0]  ;;  %v4046_v19 = vor.u32 %v4601_v13, %v4043_v31 }
 0x33a   :  { %2317 = vmatpush.bf16.msra.mxu3 %v4078_v41  ;;  %v4017_v54 = vld [vmem:[#allocation11 + $0x60] sm:$0xf]  ;;  %v4596_v18 = vld [vmem:[#allocation11 + $0x64] sm:$0xf]  ;;  %v4597_v49 = vld [vmem:[#allocation11 + $0x6c] sm:$0xf] }
 0x33b   :  { %v5239_v60 = vadd.f32 %v1746_v24, %v1745_v59  ;;  %v1734_v40 = vadd.f32 %v4769_v48, %v1733_v29  ;;  %v4054_v24 = vor.u32 %v4604_v50, %v4051_v55  ;;  %v4058_v59 = vor.u32 %v4607_v56, %v4057_v7  ;;  %v4605_v29 = vld [vmem:[#allocation11 + $0xac] sm:$0xf]  ;;  %2279 = vmatpush.bf16.msrb.mxu0 %v4050_v14  ;;  %v4027_v42 = vld [vmem:[#allocation11 + $0x78] sm:$0xf0]  ;;  %v4001_v28 = vld [vmem:[#allocation11 + $0x40] sm:$0xf] }
 0x33c   :  { %v4018_v23 = vor.u32 %v4598_v15, %v4017_v54  ;;  %v4022_v44 = vor.u32 %v4596_v18, %v4019_v5  ;;  %v4030_v61 = vor.u32 %v4597_v49, %v4027_v42  ;;  %v4594_v41 = vld [vmem:[#allocation11 + $0x4c] sm:$0xf0]  ;;  %v4592_v43 = vld [vmem:[#allocation11 + $0x44] sm:$0xf]  ;;  %v4003_v55 = vld [vmem:[#allocation11 + $0x50] sm:$0xf0] }
 0x33d   :  { %4772 = vtanh.f32 %v5239_v60  ;;  %v1738_v37 = vsel %vm1737_vm14, %v4769_v48, %v1734_v40  ;;  %v4070_v48 = vor.u32 %v4608_v35, %v4067_v46  ;;  %2304 = vmatpush.bf16.msrb.mxu2 %v4074_v26  ;;  %v4059_v40 = vld [vmem:[#allocation11 + $0xb8] sm:$0xf0]  ;;  %v4026_v46 = vor.u32 %v4599_v32, %v4025_v30  ;;  %v4009_v56 = vld [vmem:[#allocation11 + $0x48] sm:$0xf]  ;;  %v4586_v5 = vld [vmem:[#allocation11 + $0xc] sm:$0xf0] }
 0x33e   :  { %v1743_v10 = vsel %vm1740_vm15, %v1742_v47, %v1738_v37  ;;  %v4062_v2 = vor.u32 %v4605_v29, %v4059_v40  ;;  %v4602_v37 = vld [vmem:[#allocation11 + $0x8c] sm:$0xf0]  ;;  %v4600_v47 = vld [vmem:[#allocation11 + $0x84] sm:$0xf]  ;;  %v4002_v14 = vor.u32 %v4594_v41, %v4001_v28  ;;  %v4006_v7 = vor.u32 %v4592_v43, %v4003_v55  ;;  %v3985_v29 = vld [vmem:[#allocation11 + $0x20] sm:$0xf] }
 0x33f   :  { %2291 = vmatpush.bf16.msrb.mxu1 %v4070_v48  ;;  %v4590_v40 = vld [vmem:[#allocation11 + $0x2c] sm:$0xf0]  ;;  %v3995_v13 = vld [vmem:[#allocation11 + $0x38] sm:$0xf0]  ;;  %v4584_v30 = vld [vmem:[#allocation11 + $0x4] sm:$0xf] }
 0x340   :  { %2318 = vmatpush.bf16.msra.mxu3 %v4062_v2  ;;  %v4585_v42 = vld [vmem:[#allocation11 + $0xc] sm:$0xf] }
 0x341   :  { %2305 = vmatpush.bf16.msrb.mxu2 %v4058_v59  ;;  %v4593_v59 = vld [vmem:[#allocation11 + $0x4c] sm:$0xf] }
 0x343   :  { %v4773_v8 = vpop.eup %4772  ;;  %2292 = vmatpush.bf16.msrb.mxu1 %v4054_v24  ;;  %v4595_v24 = vld [vmem:[#allocation11 + $0x54] sm:$0xf0] }
 0x344   :  { %v5242_v36 = vmul.f32 %v4773_v8, %v1743_v10  ;;  %v4034_v8 = vor.u32 %v4602_v37, %v4033_v4  ;;  %v4035_v10 = vld [vmem:[#allocation11 + $0x90] sm:$0xf0]  ;;  %2319 = vmatpush.bf16.msra.mxu3 %v4046_v19  ;;  %v3986_v4 = vor.u32 %v4590_v40, %v3985_v29  ;;  %v4588_v37 = vld [vmem:[#allocation11 + $0x24] sm:$0xf] }
 0x345   :  { %v4038_v11 = vor.u32 %v4600_v47, %v4035_v10  ;;  %v3987_v47 = vld [vmem:[#allocation11 + $0x30] sm:$0xf0] }
 0x346   :  { %v1761_v12 = vpack.c.bf16 %v5242_v36, %v5242_v36  ;;  %2280 = vmatpush.bf16.msrb.mxu0 %v4034_v8  ;;  %v3993_v8 = vld [vmem:[#allocation11 + $0x28] sm:$0xf] }
 0x347   :  { %2293 = vmatpush.bf16.msrb.mxu1 %v4038_v11  ;;  %v4591_v11 = vld [vmem:[#allocation11 + $0x34] sm:$0xf0] }
 0x348   :  { %1962 = vmatmul.bf16.vlgmr.msra.gmra.mxu0 %v1761_v12  ;;  %1975 = vmatmul.bf16.vlgmr.msra.gmra.mxu1 %v1761_v12  ;;  %v3994_v15 = vor.u32 %v4591_v11, %v3993_v8 }
 0x349   :  { %1988 = vmatmul.bf16.vlgmr.msra.gmra.mxu2 %v1761_v12  ;;  %2001 = vmatmul.bf16.vlgmr.msrb.gmra.mxu3 %v1761_v12  ;;  %v4041_v12 = vld [vmem:[#allocation11 + $0x88] sm:$0xf] }
 0x34a   :  { %v4042_v21 = vor.u32 %v4603_v57, %v4041_v12  ;;  %2281 = vmatpush.bf16.msrb.mxu0 %v4018_v23  ;;  %2320 = vmatpush.bf16.msra.mxu3 %v4030_v61  ;;  %v3990_v57 = vor.u32 %v4588_v37, %v3987_v47  ;;  %v3969_v23 = vld [vmem:[#allocation11] sm:$0xf] }
 0x34b   :  { %2294 = vmatpush.bf16.msrb.mxu1 %v4022_v44  ;;  %v3970_v32 = vor.u32 %v4586_v5, %v3969_v23  ;;  %v4587_v44 = vld [vmem:[#allocation11 + $0x14] sm:$0xf0] }
 0x34c   :  { %2306 = vmatpush.bf16.msrb.mxu2 %v4042_v21  ;;  %v4589_v21 = vld [vmem:[#allocation11 + $0x2c] sm:$0xf] }
 0x34d   :  { %v3998_v18 = vor.u32 %v4589_v21, %v3995_v13 }
 0x34e   :  { %2282 = vmatpush.bf16.msrb.mxu0 %v4002_v14 }
 0x34f   :  { %2295 = vmatpush.bf16.msrb.mxu1 %v4006_v7 }
 0x350   :  { %2307 = vmatpush.bf16.msrb.mxu2 %v4026_v46 }
 0x352   :  { %2283 = vmatpush.bf16.msrb.mxu0 %v3986_v4 }
 0x353   :  { %2296 = vmatpush.bf16.msrb.mxu1 %v3990_v57 }
 0x356   :  { %2284 = vmatpush.bf16.msrb.mxu0 %v3970_v32 }
 0x3c5   :  { %v1963_v27 = vpop.f32.mrf.mxu0  ;;  %v1976_v35 = vpop.f32.mrf.mxu1 }
 0x3c6   :  { %v2006_v48 = vadd.f32 %v1963_v27, %v5088_v20  ;;  %v2007_v26 = vadd.f32 %v1976_v35, %v5156_v3  ;;  %v4010_v20 = vor.u32 %v4595_v24, %v4009_v56  ;;  %v4011_v3 = vld [vmem:[#allocation11 + $0x58] sm:$0xf0]  ;;  %v3971_v27 = vld [vmem:[#allocation11 + $0x10] sm:$0xf0]  ;;  %v3977_v35 = vld [vmem:[#allocation11 + $0x8] sm:$0xf] }
 0x3c7   :  { %v4014_v2 = vor.u32 %v4593_v59, %v4011_v3  ;;  %v3974_v49 = vor.u32 %v4584_v30, %v3971_v27 }
 0x3c8   :  { %v3964_v53 = vmul.f32 -1.442695, %v2006_v48  ;;  %v3965_v50 = vmul.f32 -1.442695, %v2007_v26  ;;  %2308 = vmatpush.bf16.msrb.mxu2 %v4010_v20  ;;  %v3979_v48 = vld [vmem:[#allocation11 + $0x18] sm:$0xf0] }
 0x3c9   :  { %2321 = vmatpush.bf16.msra.mxu3 %v4014_v2  ;;  %v3982_v41 = vor.u32 %v4585_v42, %v3979_v48  ;;  %2297 = vmatpush.bf16.msrb.mxu1 %v3974_v49 }
 0x3ca   :  { %4774 = vpow2.f32 %v3964_v53 }
 0x3cb   :  { %4776 = vpow2.f32 %v3965_v50 }
 0x3cc   :  { %v1989_v10 = vpop.f32.mrf.mxu2  ;;  %v2002_v12 = vpop.f32.mrf.mxu3  ;;  %2309 = vmatpush.bf16.msrb.mxu2 %v3994_v15 }
 0x3cd   :  { %v2009_v31 = vadd.f32 %v2002_v12, %v5124_v45  ;;  %v1965_v19 = vpop.f32.mrf.mxu0  ;;  %v1978_v54 = vpop.f32.mrf.mxu1  ;;  %v3978_v45 = vor.u32 %v4587_v44, %v3977_v35  ;;  %2322 = vmatpush.bf16.msra.mxu3 %v3998_v18  ;;  %v2008_v56 = vadd.f32 %v1989_v10, %v5159_v6 }
 0x3cf   :  { %v3966_v46 = vmul.f32 -1.442695, %v2009_v31 }
 0x3d0   :  { %v4775_v26 = vpop.eup %4774  ;;  %2310 = vmatpush.bf16.msrb.mxu2 %v3978_v45  ;;  %v4212_v45 = vld [vmem:[#allocation11 + $0xe0] sm:$0xf] }
 0x3d1   :  { %v4777_v61 = vpop.eup %4776  ;;  %v2013_v28 = vadd.f32 1.0, %v4775_v26  ;;  %4778 = vpow2.f32 %v3966_v46  ;;  %2323 = vmatpush.bf16.msra.mxu3 %v3982_v41 }
 0x3d2   :  { %v2032_v43 = vadd.f32 1.0, %v4777_v61  ;;  %v4646_v61 = vld [vmem:[#allocation11 + $0xec] sm:$0xf0] }
 0x3d3   :  { %4780 = vrcp.f32 %v2013_v28  ;;  %v2025_v40 = vand.u32 2147483648, %v2013_v28  ;;  %v2023_v37 = vand.u32 2147483647, %v2013_v28  ;;  %vm2019_vm2 = vweird.f32 %v2013_v28 }
 0x3d4   :  { %4782 = vrcp.f32 %v2032_v43  ;;  %v1991_v53 = vpop.f32.mrf.mxu2  ;;  %v2004_v50 = vpop.f32.mrf.mxu3  ;;  %v2044_v2 = vand.u32 2147483648, %v2032_v43  ;;  %v2042_v8 = vand.u32 2147483647, %v2032_v43  ;;  %vm2038_vm3 = vweird.f32 %v2032_v43 }
 0x3d5   :  { %v2026_v6 = vor.u32 1.1754944e-38, %v2025_v40  ;;  %vm2024_vm6 = vcmp.eq.f32.partialorder %v2023_v37, 8.507059e+37  ;;  %v4213_v41 = vor.u32 %v4646_v61, %v4212_v45  ;;  %v4220_v53 = vld [vmem:[#allocation11 + $0xe8] sm:$0xf]  ;;  %v4647_v50 = vld [vmem:[#allocation11 + $0xf4] sm:$0xf0] }
 0x3d6   :  { %v2045_v21 = vor.u32 1.1754944e-38, %v2044_v2  ;;  %vm2043_vm7 = vcmp.eq.f32.partialorder %v2042_v8, 8.507059e+37  ;;  %v4198_v40 = vld [vmem:[#allocation11 + $0xd0] sm:$0xf0]  ;;  %v4204_v2 = vld [vmem:[#allocation11 + $0xc8] sm:$0xf] }
 0x3d7   :  { %v4779_v14 = vpop.eup %4778  ;;  %2600 = vmatpush.bf16.msra.mxu0 %v4213_v41  ;;  %v4641_v8 = vld [vmem:[#allocation11 + $0xcc] sm:$0xf]  ;;  %v4174_v61 = vld [vmem:[#allocation11 + $0x98] sm:$0xf0]  ;;  %v4148_v41 = vld [vmem:[#allocation11 + $0x60] sm:$0xf] }
 0x3d8   :  { %v2052_v55 = vadd.f32 1.0, %v4779_v14  ;;  %v4633_v45 = vld [vmem:[#allocation11 + $0x8c] sm:$0xf] }
 0x3d9   :  { %v4781_v7 = vpop.eup %4780 }
 0x3da   :  { %v4783_v24 = vpop.eup %4782  ;;  %v2015_v59 = vmul.f32 %v4781_v7, %v2013_v28  ;;  %4784 = vrcp.f32 %v2052_v55  ;;  %vm2020_vm0 = vweird.f32 %v4781_v7  ;;  %v2064_v35 = vand.u32 2147483648, %v2052_v55  ;;  %v4644_v28 = vld [vmem:[#allocation11 + $0xe4] sm:$0xf] }
 0x3db   :  { %v2034_v20 = vmul.f32 %v4783_v24, %v2032_v43  ;;  %4786 = vtanh.f32 %v2008_v56  ;;  %vm2039_vm1 = vweird.f32 %v4783_v24  ;;  %vm2021_vm4 = vmor %vm2019_vm2, %vm2020_vm0  ;;  %vm2058_vm9 = vweird.f32 %v2052_v55  ;;  %v4214_v43 = vld [vmem:[#allocation11 + $0xf0] sm:$0xf0]  ;;  %v4222_v56 = vld [vmem:[#allocation11 + $0xf8] sm:$0xf0] }
 0x3dc   :  { %v2016_v3 = vsub.f32 1.0, %v2015_v59  ;;  %vm2040_vm5 = vmor %vm2038_vm3, %vm2039_vm1  ;;  %v2062_v44 = vand.u32 2147483647, %v2052_v55  ;;  %v2065_v49 = vor.u32 1.1754944e-38, %v2064_v35  ;;  %v4217_v14 = vor.u32 %v4644_v28, %v4214_v43  ;;  %v4196_v59 = vld [vmem:[#allocation11 + $0xc0] sm:$0xf] }
 0x3dd   :  { %v2035_v29 = vsub.f32 1.0, %v2034_v20  ;;  %v4642_v20 = vld [vmem:[#allocation11 + $0xcc] sm:$0xf0]  ;;  %v4632_v35 = vld [vmem:[#allocation11 + $0x84] sm:$0xf]  ;;  %v4177_v28 = vor.u32 %v4633_v45, %v4174_v61 }
 0x3de   :  { %v2017_v4 = vmul.f32 %v4781_v7, %v2016_v3  ;;  %vm2063_vm11 = vcmp.eq.f32.partialorder %v2062_v44, 8.507059e+37  ;;  %2613 = vmatpush.bf16.msra.mxu1 %v4217_v14  ;;  %v4640_v3 = vld [vmem:[#allocation11 + $0xc4] sm:$0xf]  ;;  %v4630_v43 = vld [vmem:[#allocation11 + $0x6c] sm:$0xf0] }
 0x3df   :  { %v2036_v47 = vmul.f32 %v4783_v24, %v2035_v29  ;;  %v4197_v29 = vor.u32 %v4642_v20, %v4196_v59  ;;  %v4201_v37 = vor.u32 %v4640_v3, %v4198_v40  ;;  %v4150_v14 = vld [vmem:[#allocation11 + $0x70] sm:$0xf0]  ;;  %v4629_v20 = vld [vmem:[#allocation11 + $0x6c] sm:$0xf]  ;;  %v4158_v3 = vld [vmem:[#allocation11 + $0x78] sm:$0xf0] }
 0x3e0   :  { %v4785_v12 = vpop.eup %4784  ;;  %v2018_v57 = vadd.f32 %v4781_v7, %v2017_v4  ;;  %v4643_v4 = vld [vmem:[#allocation11 + $0xd4] sm:$0xf0]  ;;  %v4100_v61 = vld [vmem:[#allocation11] sm:$0xf] }
 0x3e1   :  { %v2037_v10 = vadd.f32 %v4783_v24, %v2036_v47  ;;  %v2054_v11 = vmul.f32 %v4785_v12, %v2052_v55  ;;  %v4787_v31 = vpop.eup %4786  ;;  %vm2059_vm8 = vweird.f32 %v4785_v12  ;;  %v4221_v55 = vor.u32 %v4647_v50, %v4220_v53  ;;  %2601 = vmatpush.bf16.msra.mxu0 %v4197_v29  ;;  %v4628_v53 = vld [vmem:[#allocation11 + $0x64] sm:$0xf] }
 0x3e2   :  { %v2022_v13 = vsel %vm2021_vm4, %v4781_v7, %v2018_v57  ;;  %vm2060_vm10 = vmor %vm2058_vm9, %vm2059_vm8  ;;  %v4645_v7 = vld [vmem:[#allocation11 + $0xec] sm:$0xf]  ;;  %v4205_v47 = vor.u32 %v4643_v4, %v4204_v2  ;;  %2614 = vmatpush.bf16.msra.mxu1 %v4201_v37  ;;  %v4149_v50 = vor.u32 %v4630_v43, %v4148_v41  ;;  %v4161_v2 = vor.u32 %v4629_v20, %v4158_v3  ;;  %v4616_v41 = vld [vmem:[#allocation11 + $0x4] sm:$0xf] }
 0x3e3   :  { %v2027_v19 = vsel %vm2024_vm6, %v2026_v6, %v2022_v13  ;;  %v2041_v54 = vsel %vm2040_vm5, %v4783_v24, %v2037_v10  ;;  %v2055_v15 = vsub.f32 1.0, %v2054_v11  ;;  %v4225_v24 = vor.u32 %v4645_v7, %v4222_v56  ;;  %2626 = vmatpush.bf16.msra.mxu2 %v4221_v55  ;;  %v4180_v6 = vld [vmem:[#allocation11 + $0xa0] sm:$0xf]  ;;  %v4638_v10 = vld [vmem:[#allocation11 + $0xac] sm:$0xf0] }
 0x3e4   :  { %v2046_v18 = vsel %vm2043_vm7, %v2045_v21, %v2041_v54  ;;  %v2069_v23 = vmul.f32 %v4787_v31, %v2027_v19  ;;  %v4636_v11 = vld [vmem:[#allocation11 + $0xa4] sm:$0xf]  ;;  %v4181_v21 = vor.u32 %v4638_v10, %v4180_v6  ;;  %v4182_v13 = vld [vmem:[#allocation11 + $0xb0] sm:$0xf0]  ;;  %v4188_v31 = vld [vmem:[#allocation11 + $0xa8] sm:$0xf]  ;;  %v336_v56 = vadd.f32 %v5096_v33, %v5084_v17 }
 0x3e5   :  { %v2068_v5 = vmul.f32 %v2046_v18, %v5239_v60  ;;  %v2056_v30 = vmul.f32 %v4785_v12, %v2055_v15  ;;  %2639 = vmatpush.bf16.msrb.mxu3 %v4225_v24  ;;  %v4639_v19 = vld [vmem:[#allocation11 + $0xb4] sm:$0xf0]  ;;  %v4185_v54 = vor.u32 %v4636_v11, %v4182_v13  ;;  %v4637_v18 = vld [vmem:[#allocation11 + $0xac] sm:$0xf]  ;;  %v4156_v55 = vld [vmem:[#allocation11 + $0x68] sm:$0xf]  ;;  %v4153_v24 = vor.u32 %v4628_v53, %v4150_v14 }
 0x3e6   :  { %v4189_v15 = vor.u32 %v4639_v19, %v4188_v31  ;;  %2602 = vmatpush.bf16.msra.mxu0 %v4181_v21  ;;  %v4631_v7 = vld [vmem:[#allocation11 + $0x74] sm:$0xf0]  ;;  %v4134_v6 = vld [vmem:[#allocation11 + $0x50] sm:$0xf0]  ;;  %v4140_v33 = vld [vmem:[#allocation11 + $0x48] sm:$0xf] }
 0x3e7   :  { %v5251_v32 = vadd.f32 %v2069_v23, %v2068_v5  ;;  %v2057_v27 = vadd.f32 %v4785_v12, %v2056_v30  ;;  %2627 = vmatpush.bf16.msra.mxu2 %v4205_v47  ;;  %v4190_v23 = vld [vmem:[#allocation11 + $0xb8] sm:$0xf0]  ;;  %2615 = vmatpush.bf16.msra.mxu1 %v4185_v54  ;;  %v4164_v30 = vld [vmem:[#allocation11 + $0x80] sm:$0xf]  ;;  %v4157_v59 = vor.u32 %v4631_v7, %v4156_v55  ;;  %v4627_v10 = vld [vmem:[#allocation11 + $0x54] sm:$0xf0] }
 0x3e8   :  { %v4193_v5 = vor.u32 %v4637_v18, %v4190_v23  ;;  %v4132_v47 = vld [vmem:[#allocation11 + $0x40] sm:$0xf]  ;;  %v4141_v31 = vor.u32 %v4627_v10, %v4140_v33  ;;  %v4625_v19 = vld [vmem:[#allocation11 + $0x4c] sm:$0xf]  ;;  %v4142_v54 = vld [vmem:[#allocation11 + $0x58] sm:$0xf0] }
 0x3e9   :  { %4788 = vtanh.f32 %v5251_v32  ;;  %v2061_v46 = vsel %vm2060_vm10, %v4785_v12, %v2057_v27  ;;  %v4206_v12 = vld [vmem:[#allocation11 + $0xd8] sm:$0xf0]  ;;  %v4634_v27 = vld [vmem:[#allocation11 + $0x8c] sm:$0xf0]  ;;  %v4102_v55 = vld [vmem:[#allocation11 + $0x10] sm:$0xf0] }
 0x3ea   :  { %v2066_v48 = vsel %vm2063_vm11, %v2065_v49, %v2061_v46  ;;  %v4209_v57 = vor.u32 %v4641_v8, %v4206_v12  ;;  %v4165_v44 = vor.u32 %v4634_v27, %v4164_v30  ;;  %v4166_v46 = vld [vmem:[#allocation11 + $0x90] sm:$0xf0]  ;;  %v4172_v49 = vld [vmem:[#allocation11 + $0x88] sm:$0xf]  ;;  %v4626_v8 = vld [vmem:[#allocation11 + $0x4c] sm:$0xf0] }
 0x3eb   :  { %2628 = vmatpush.bf16.msra.mxu2 %v4189_v15  ;;  %v4624_v12 = vld [vmem:[#allocation11 + $0x44] sm:$0xf]  ;;  %v4116_v15 = vld [vmem:[#allocation11 + $0x20] sm:$0xf]  ;;  %v4622_v18 = vld [vmem:[#allocation11 + $0x2c] sm:$0xf0] }
 0x3ec   :  { %2640 = vmatpush.bf16.msrb.mxu3 %v4209_v57  ;;  %2603 = vmatpush.bf16.msra.mxu0 %v4165_v44  ;;  %v4133_v57 = vor.u32 %v4626_v8, %v4132_v47  ;;  %v4137_v13 = vor.u32 %v4624_v12, %v4134_v6  ;;  %v4117_v23 = vor.u32 %v4622_v18, %v4116_v15  ;;  %v4118_v30 = vld [vmem:[#allocation11 + $0x30] sm:$0xf0]  ;;  %v4124_v27 = vld [vmem:[#allocation11 + $0x28] sm:$0xf]  ;;  %v4623_v44 = vld [vmem:[#allocation11 + $0x34] sm:$0xf0] }
 0x3ed   :  { %v4108_v7 = vld [vmem:[#allocation11 + $0x8] sm:$0xf]  ;;  %v4617_v20 = vld [vmem:[#allocation11 + $0xc] sm:$0xf]  ;;  %v4110_v3 = vld [vmem:[#allocation11 + $0x18] sm:$0xf0] }
 0x3ef   :  { %v4789_v42 = vpop.eup %4788 }
 0x3f0   :  { %v5254_v26 = vmul.f32 %v4789_v42, %v2066_v48  ;;  %2641 = vmatpush.bf16.msrb.mxu3 %v4193_v5  ;;  %v4635_v42 = vld [vmem:[#allocation11 + $0x94] sm:$0xf0]  ;;  %v4169_v48 = vor.u32 %v4632_v35, %v4166_v46  ;;  %2604 = vmatpush.bf16.msra.mxu0 %v4149_v50  ;;  %v4620_v5 = vld [vmem:[#allocation11 + $0x24] sm:$0xf]  ;;  %v4621_v46 = vld [vmem:[#allocation11 + $0x2c] sm:$0xf] }
 0x3f1   :  { %v4121_v35 = vor.u32 %v4620_v5, %v4118_v30 }
 0x3f2   :  { %v2084_v60 = vpack.c.bf16 %v5254_v26, %v5254_v26  ;;  %2616 = vmatpush.bf16.msra.mxu1 %v4169_v48 }
 0x3f4   :  { %2285 = vmatmul.bf16.vlgmr.msrb.gmra.mxu0 %v2084_v60  ;;  %2298 = vmatmul.bf16.vlgmr.msrb.gmra.mxu1 %v2084_v60 }
 0x3f5   :  { %2311 = vmatmul.bf16.vlgmr.msrb.gmra.mxu2 %v2084_v60  ;;  %2324 = vmatmul.bf16.vlgmr.msra.gmra.mxu3 %v2084_v60  ;;  %v4173_v60 = vor.u32 %v4635_v42, %v4172_v49  ;;  %v4126_v49 = vld [vmem:[#allocation11 + $0x38] sm:$0xf0] }
 0x3f6   :  { %2642 = vmatpush.bf16.msrb.mxu3 %v4177_v28  ;;  %2617 = vmatpush.bf16.msra.mxu1 %v4153_v24  ;;  %v4129_v45 = vor.u32 %v4621_v46, %v4126_v49  ;;  %v4618_v28 = vld [vmem:[#allocation11 + $0xc] sm:$0xf0]  ;;  %v4105_v24 = vor.u32 %v4616_v41, %v4102_v55 }
 0x3f7   :  { %2629 = vmatpush.bf16.msra.mxu2 %v4173_v60  ;;  %2605 = vmatpush.bf16.msra.mxu0 %v4133_v57  ;;  %v4125_v60 = vor.u32 %v4623_v44, %v4124_v27  ;;  %v4101_v14 = vor.u32 %v4618_v28, %v4100_v61 }
 0x3fa   :  { %2643 = vmatpush.bf16.msrb.mxu3 %v4161_v2  ;;  %2618 = vmatpush.bf16.msra.mxu1 %v4137_v13  ;;  %v4113_v2 = vor.u32 %v4617_v20, %v4110_v3  ;;  %v4343_v20 = vld [vmem:[#allocation11 + $0xe0] sm:$0xf]  ;;  %v4678_v3 = vld [vmem:[#allocation11 + $0xec] sm:$0xf0] }
 0x3fb   :  { %2630 = vmatpush.bf16.msra.mxu2 %v4157_v59  ;;  %2606 = vmatpush.bf16.msra.mxu0 %v4117_v23 }
 0x3fe   :  { %2619 = vmatpush.bf16.msra.mxu1 %v4121_v35 }
 0x3ff   :  { %2631 = vmatpush.bf16.msra.mxu2 %v4141_v31  ;;  %2607 = vmatpush.bf16.msra.mxu0 %v4101_v14 }
 0x402   :  { %2620 = vmatpush.bf16.msra.mxu1 %v4105_v24 }
 0x403   :  { %2632 = vmatpush.bf16.msra.mxu2 %v4125_v60 }
 0x471   :  { %v2286_v29 = vpop.f32.mrf.mxu0  ;;  %v2299_v40 = vpop.f32.mrf.mxu1 }
 0x472   :  { %v2329_v4 = vadd.f32 %v2286_v29, %v336_v56  ;;  %v2330_v37 = vadd.f32 %v2299_v40, %v5162_v9  ;;  %v4145_v9 = vor.u32 %v4625_v19, %v4142_v54  ;;  %v4619_v56 = vld [vmem:[#allocation11 + $0x14] sm:$0xf0] }
 0x473   :  { %v4109_v59 = vor.u32 %v4619_v56, %v4108_v7 }
 0x474   :  { %v4095_v11 = vmul.f32 -1.442695, %v2329_v4  ;;  %v4096_v21 = vmul.f32 -1.442695, %v2330_v37  ;;  %2644 = vmatpush.bf16.msrb.mxu3 %v4145_v9 }
 0x475   :  { %2633 = vmatpush.bf16.msra.mxu2 %v4109_v59 }
 0x476   :  { %4790 = vpow2.f32 %v4095_v11 }
 0x477   :  { %4792 = vpow2.f32 %v4096_v21 }
 0x478   :  { %v2312_v42 = vpop.f32.mrf.mxu2  ;;  %v2325_v48 = vpop.f32.mrf.mxu3  ;;  %2645 = vmatpush.bf16.msrb.mxu3 %v4129_v45 }
 0x479   :  { %v2332_v43 = vadd.f32 %v2325_v48, %v5135_v52  ;;  %v2288_v53 = vpop.f32.mrf.mxu0  ;;  %v2301_v50 = vpop.f32.mrf.mxu1  ;;  %v2331_v33 = vadd.f32 %v2312_v42, %v5167_v22 }
 0x47b   :  { %v4097_v29 = vmul.f32 -1.442695, %v2332_v43 }
 0x47c   :  { %v4791_v40 = vpop.eup %4790  ;;  %2646 = vmatpush.bf16.msrb.mxu3 %v4113_v2  ;;  %v4674_v2 = vld [vmem:[#allocation11 + $0xcc] sm:$0xf0] }
 0x47d   :  { %v4793_v4 = vpop.eup %4792  ;;  %v2336_v37 = vadd.f32 1.0, %v4791_v40  ;;  %4794 = vpow2.f32 %v4097_v29  ;;  %v4344_v29 = vor.u32 %v4678_v3, %v4343_v20  ;;  %v4327_v40 = vld [vmem:[#allocation11 + $0xc0] sm:$0xf]  ;;  %v4664_v20 = vld [vmem:[#allocation11 + $0x84] sm:$0xf] }
 0x47e   :  { %v2355_v52 = vadd.f32 1.0, %v4793_v4  ;;  %v4328_v4 = vor.u32 %v4674_v2, %v4327_v40  ;;  %v4297_v3 = vld [vmem:[#allocation11 + $0x90] sm:$0xf0]  ;;  %v4667_v2 = vld [vmem:[#allocation11 + $0x94] sm:$0xf0] }
 0x47f   :  { %4796 = vrcp.f32 %v2336_v37  ;;  %v2348_v19 = vand.u32 2147483648, %v2336_v37  ;;  %v2346_v18 = vand.u32 2147483647, %v2336_v37  ;;  %vm2342_vm14 = vweird.f32 %v2336_v37  ;;  %2923 = vmatpush.bf16.msrb.mxu0 %v4344_v29  ;;  %v4303_v29 = vld [vmem:[#allocation11 + $0x88] sm:$0xf] }
 0x480   :  { %4798 = vrcp.f32 %v2355_v52  ;;  %v2314_v47 = vpop.f32.mrf.mxu2  ;;  %v2327_v8 = vpop.f32.mrf.mxu3  ;;  %v2367_v54 = vand.u32 2147483648, %v2355_v52  ;;  %v2365_v23 = vand.u32 2147483647, %v2355_v52  ;;  %vm2361_vm15 = vweird.f32 %v2355_v52 }
 0x481   :  { %v2349_v22 = vor.u32 1.1754944e-38, %v2348_v19  ;;  %vm2347_vm2 = vcmp.eq.f32.partialorder %v2346_v18, 8.507059e+37  ;;  %v4295_v8 = vld [vmem:[#allocation11 + $0x80] sm:$0xf]  ;;  %v4662_v18 = vld [vmem:[#allocation11 + $0x6c] sm:$0xf0]  ;;  %v4300_v40 = vor.u32 %v4664_v20, %v4297_v3 }
 0x482   :  { %v2368_v44 = vor.u32 1.1754944e-38, %v2367_v54  ;;  %vm2366_vm3 = vcmp.eq.f32.partialorder %v2365_v23, 8.507059e+37  ;;  %v4672_v23 = vld [vmem:[#allocation11 + $0xc4] sm:$0xf] }
 0x483   :  { %v4795_v12 = vpop.eup %4794  ;;  %2924 = vmatpush.bf16.msrb.mxu0 %v4328_v4  ;;  %v4665_v4 = vld [vmem:[#allocation11 + $0x8c] sm:$0xf] }
 0x484   :  { %v2375_v57 = vadd.f32 1.0, %v4795_v12  ;;  %v4666_v12 = vld [vmem:[#allocation11 + $0x8c] sm:$0xf0] }
 0x485   :  { %v4797_v6 = vpop.eup %4796 }
 0x486   :  { %v4799_v10 = vpop.eup %4798  ;;  %v2338_v11 = vmul.f32 %v4797_v6, %v2336_v37  ;;  %4800 = vrcp.f32 %v2375_v57  ;;  %vm2343_vm12 = vweird.f32 %v4797_v6  ;;  %v2387_v50 = vand.u32 2147483648, %v2375_v57  ;;  %v4311_v37 = vld [vmem:[#allocation11 + $0xa0] sm:$0xf] }
 0x487   :  { %v2357_v21 = vmul.f32 %v4799_v10, %v2355_v52  ;;  %4802 = vtanh.f32 %v2331_v33  ;;  %vm2362_vm13 = vweird.f32 %v4799_v10  ;;  %vm2344_vm0 = vmor %vm2342_vm14, %vm2343_vm12  ;;  %vm2381_vm5 = vweird.f32 %v2375_v57  ;;  %v4670_v52 = vld [vmem:[#allocation11 + $0xac] sm:$0xf0]  ;;  %v4345_v33 = vld [vmem:[#allocation11 + $0xf0] sm:$0xf0] }
 0x488   :  { %v2339_v13 = vsub.f32 1.0, %v2338_v11  ;;  %vm2363_vm1 = vmor %vm2361_vm15, %vm2362_vm13  ;;  %v2385_v14 = vand.u32 2147483647, %v2375_v57  ;;  %v2388_v7 = vor.u32 1.1754944e-38, %v2387_v50  ;;  %v4312_v47 = vor.u32 %v4670_v52, %v4311_v37  ;;  %v4669_v50 = vld [vmem:[#allocation11 + $0xac] sm:$0xf] }
 0x489   :  { %v2358_v31 = vsub.f32 1.0, %v2357_v21  ;;  %v4679_v21 = vld [vmem:[#allocation11 + $0xf4] sm:$0xf0]  ;;  %v4305_v37 = vld [vmem:[#allocation11 + $0x98] sm:$0xf0]  ;;  %v4304_v52 = vor.u32 %v4667_v2, %v4303_v29 }
 0x48a   :  { %v2340_v15 = vmul.f32 %v4797_v6, %v2339_v13  ;;  %vm2386_vm7 = vcmp.eq.f32.partialorder %v2385_v14, 8.507059e+37  ;;  %2925 = vmatpush.bf16.msrb.mxu0 %v4312_v47  ;;  %v4677_v13 = vld [vmem:[#allocation11 + $0xec] sm:$0xf]  ;;  %v4321_v14 = vld [vmem:[#allocation11 + $0xb8] sm:$0xf0]  ;;  %v4308_v47 = vor.u32 %v4665_v4, %v4305_v37 }
 0x48b   :  { %v2359_v9 = vmul.f32 %v4799_v10, %v2358_v31  ;;  %v4353_v31 = vld [vmem:[#allocation11 + $0xf8] sm:$0xf0]  ;;  %v4239_v29 = vld [vmem:[#allocation11 + $0x8] sm:$0xf]  ;;  %v4649_v2 = vld [vmem:[#allocation11 + $0xc] sm:$0xf] }
 0x48c   :  { %v4801_v5 = vpop.eup %4800  ;;  %v2341_v30 = vadd.f32 %v4797_v6, %v2340_v15  ;;  %v4356_v54 = vor.u32 %v4677_v13, %v4353_v31  ;;  %v4279_v15 = vld [vmem:[#allocation11 + $0x60] sm:$0xf]  ;;  %v4661_v13 = vld [vmem:[#allocation11 + $0x6c] sm:$0xf]  ;;  %v4289_v31 = vld [vmem:[#allocation11 + $0x78] sm:$0xf0] }
 0x48d   :  { %v2360_v27 = vadd.f32 %v4799_v10, %v2359_v9  ;;  %v2377_v35 = vmul.f32 %v4801_v5, %v2375_v57  ;;  %v4803_v49 = vpop.eup %4802  ;;  %vm2382_vm4 = vweird.f32 %v4801_v5  ;;  %v4296_v57 = vor.u32 %v4666_v12, %v4295_v8  ;;  %v4231_v8 = vld [vmem:[#allocation11] sm:$0xf]  ;;  %v4650_v12 = vld [vmem:[#allocation11 + $0xc] sm:$0xf0] }
 0x48e   :  { %v2345_v46 = vsel %vm2344_vm0, %v4797_v6, %v2341_v30  ;;  %vm2383_vm6 = vmor %vm2381_vm5, %vm2382_vm4  ;;  %v4676_v6 = vld [vmem:[#allocation11 + $0xe4] sm:$0xf]  ;;  %2962 = vmatpush.bf16.msra.mxu3 %v4356_v54  ;;  %v4280_v9 = vor.u32 %v4662_v18, %v4279_v15  ;;  %v4335_v30 = vld [vmem:[#allocation11 + $0xc8] sm:$0xf]  ;;  %v4292_v54 = vor.u32 %v4661_v13, %v4289_v31 }
 0x48f   :  { %v2350_v42 = vsel %vm2347_vm2, %v2349_v22, %v2345_v46  ;;  %v2364_v48 = vsel %vm2363_vm1, %v4799_v10, %v2360_v27  ;;  %v2378_v60 = vsub.f32 1.0, %v2377_v35  ;;  %v4351_v10 = vld [vmem:[#allocation11 + $0xe8] sm:$0xf]  ;;  %v4348_v11 = vor.u32 %v4676_v6, %v4345_v33  ;;  %2926 = vmatpush.bf16.msrb.mxu0 %v4296_v57  ;;  %v4675_v27 = vld [vmem:[#allocation11 + $0xd4] sm:$0xf0]  ;;  %v4687_v15 = vld [vmem:[#allocation14 + $0x38] sm:$0xff] }
 0x490   :  { %v2369_v45 = vsel %vm2366_vm3, %v2368_v44, %v2364_v48  ;;  %v2392_v61 = vmul.f32 %v4803_v49, %v2350_v42  ;;  %v4352_v19 = vor.u32 %v4679_v21, %v4351_v10  ;;  %v4673_v35 = vld [vmem:[#allocation11 + $0xcc] sm:$0xf]  ;;  %v4337_v44 = vld [vmem:[#allocation11 + $0xd8] sm:$0xf0]  ;;  %v4336_v46 = vor.u32 %v4675_v27, %v4335_v30  ;;  %v4263_v42 = vld [vmem:[#allocation11 + $0x40] sm:$0xf] }
 0x491   :  { %v2391_v28 = vmul.f32 %v2369_v45, %v5251_v32  ;;  %v2379_v41 = vmul.f32 %v4801_v5, %v2378_v60  ;;  %2936 = vmatpush.bf16.msrb.mxu1 %v4348_v11  ;;  %v4340_v49 = vor.u32 %v4673_v35, %v4337_v44  ;;  %v4658_v48 = vld [vmem:[#allocation11 + $0x4c] sm:$0xf0]  ;;  %v4668_v45 = vld [vmem:[#allocation11 + $0xa4] sm:$0xf]  ;;  %v4232_v57 = vor.u32 %v4650_v12, %v4231_v8  ;;  %v4281_v33 = vld [vmem:[#allocation11 + $0x70] sm:$0xf0] }
 0x492   :  { %2949 = vmatpush.bf16.msrb.mxu2 %v4352_v19  ;;  %v4264_v60 = vor.u32 %v4658_v48, %v4263_v42  ;;  %v4660_v6 = vld [vmem:[#allocation11 + $0x64] sm:$0xf]  ;;  %v4287_v10 = vld [vmem:[#allocation11 + $0x68] sm:$0xf]  ;;  %v4663_v21 = vld [vmem:[#allocation11 + $0x74] sm:$0xf0] }
 0x493   :  { %v5264_v43 = vadd.f32 %v2392_v61, %v2391_v28  ;;  %v2380_v53 = vadd.f32 %v4801_v5, %v2379_v41  ;;  %2927 = vmatpush.bf16.msrb.mxu0 %v4280_v9  ;;  %2963 = vmatpush.bf16.msra.mxu3 %v4340_v49  ;;  %v4313_v61 = vld [vmem:[#allocation11 + $0xb0] sm:$0xf0]  ;;  %v4319_v28 = vld [vmem:[#allocation11 + $0xa8] sm:$0xf]  ;;  %v4284_v11 = vor.u32 %v4660_v6, %v4281_v33  ;;  %v4656_v30 = vld [vmem:[#allocation11 + $0x44] sm:$0xf] }
 0x494   :  { %v4316_v41 = vor.u32 %v4668_v45, %v4313_v61  ;;  %v4288_v19 = vor.u32 %v4663_v21, %v4287_v10  ;;  %v4271_v27 = vld [vmem:[#allocation11 + $0x48] sm:$0xf]  ;;  %v4659_v44 = vld [vmem:[#allocation11 + $0x54] sm:$0xf0]  ;;  %v4273_v49 = vld [vmem:[#allocation11 + $0x58] sm:$0xf0] }
 0x495   :  { %4804 = vtanh.f32 %v5264_v43  ;;  %v2384_v55 = vsel %vm2383_vm6, %v4801_v5, %v2380_v53  ;;  %v4329_v5 = vld [vmem:[#allocation11 + $0xd0] sm:$0xf0]  ;;  %v4671_v53 = vld [vmem:[#allocation11 + $0xb4] sm:$0xf0]  ;;  %v4241_v8 = vld [vmem:[#allocation11 + $0x18] sm:$0xf0] }
 0x496   :  { %v2389_v24 = vsel %vm2386_vm7, %v2388_v7, %v2384_v55  ;;  %v4332_v22 = vor.u32 %v4672_v23, %v4329_v5  ;;  %2950 = vmatpush.bf16.msrb.mxu2 %v4336_v46  ;;  %v4320_v55 = vor.u32 %v4671_v53, %v4319_v28  ;;  %v4324_v7 = vor.u32 %v4669_v50, %v4321_v14  ;;  %v4657_v46 = vld [vmem:[#allocation11 + $0x4c] sm:$0xf]  ;;  %v4686_v61 = vld [vmem:[#allocation14 + $0x30] sm:$0xff]  ;;  %v4652_v28 = vld [vmem:[#allocation11 + $0x24] sm:$0xf] }
 0x497   :  { %2928 = vmatpush.bf16.msrb.mxu0 %v4264_v60  ;;  %v4272_v60 = vor.u32 %v4659_v44, %v4271_v27  ;;  %v4276_v45 = vor.u32 %v4657_v46, %v4273_v49  ;;  %v4655_v53 = vld [vmem:[#allocation11 + $0x34] sm:$0xf0]  ;;  %v4653_v50 = vld [vmem:[#allocation11 + $0x2c] sm:$0xf]  ;;  %v4257_v14 = vld [vmem:[#allocation11 + $0x38] sm:$0xf0] }
 0x498   :  { %2937 = vmatpush.bf16.msrb.mxu1 %v4332_v22  ;;  %2964 = vmatpush.bf16.msra.mxu3 %v4324_v7  ;;  %v4265_v22 = vld [vmem:[#allocation11 + $0x50] sm:$0xf0]  ;;  %v4260_v7 = vor.u32 %v4653_v50, %v4257_v14  ;;  %v4684_v33 = vld [vmem:[#allocation14 + $0x20] sm:$0xff]  ;;  %v4681_v27 = vld [vmem:[#allocation14 + $0x8] sm:$0xff] }
 0x499   :  { %v4268_v35 = vor.u32 %v4656_v30, %v4265_v22 }
 0x49a   :  { %2951 = vmatpush.bf16.msrb.mxu2 %v4320_v55 }
 0x49b   :  { %v4805_v56 = vpop.eup %4804 }
 0x49c   :  { %v5267_v59 = vmul.f32 %v4805_v56, %v2389_v24  ;;  %2938 = vmatpush.bf16.msrb.mxu1 %v4316_v41  ;;  %v4247_v56 = vld [vmem:[#allocation11 + $0x20] sm:$0xf]  ;;  %v4654_v24 = vld [vmem:[#allocation11 + $0x2c] sm:$0xf0]  ;;  %2965 = vmatpush.bf16.msra.mxu3 %v4308_v47  ;;  %v4255_v41 = vld [vmem:[#allocation11 + $0x28] sm:$0xf] }
 0x49d   :  { %v4256_v55 = vor.u32 %v4655_v53, %v4255_v41 }
 0x49e   :  { %v2407_v32 = vpack.c.bf16 %v5267_v59, %v5267_v59  ;;  %2952 = vmatpush.bf16.msrb.mxu2 %v4304_v52 }
 0x4a0   :  { %2608 = vmatmul.bf16.vlgmr.msra.gmra.mxu0 %v2407_v32  ;;  %2621 = vmatmul.bf16.vlgmr.msra.gmra.mxu1 %v2407_v32 }
 0x4a1   :  { %2634 = vmatmul.bf16.vlgmr.msra.gmra.mxu2 %v2407_v32  ;;  %2647 = vmatmul.bf16.vlgmr.msrb.gmra.mxu3 %v2407_v32  ;;  %v4248_v32 = vor.u32 %v4654_v24, %v4247_v56  ;;  %v4685_v56 = vld [vmem:[#allocation14 + $0x28] sm:$0xff]  ;;  %v4648_v24 = vld [vmem:[#allocation11 + $0x4] sm:$0xf] }
 0x4a2   :  { %2939 = vmatpush.bf16.msrb.mxu1 %v4300_v40  ;;  %2953 = vmatpush.bf16.msrb.mxu2 %v4288_v19  ;;  %v4651_v40 = vld [vmem:[#allocation11 + $0x14] sm:$0xf0]  ;;  %v4683_v19 = vld [vmem:[#allocation14 + $0x18] sm:$0xff] }
 0x4a3   :  { %2929 = vmatpush.bf16.msrb.mxu0 %v4248_v32  ;;  %2966 = vmatpush.bf16.msra.mxu3 %v4292_v54  ;;  %v4233_v32 = vld [vmem:[#allocation11 + $0x10] sm:$0xf0]  ;;  %v4240_v12 = vor.u32 %v4651_v40, %v4239_v29 }
 0x4a4   :  { %v4236_v47 = vor.u32 %v4648_v24, %v4233_v32 }
 0x4a6   :  { %2940 = vmatpush.bf16.msrb.mxu1 %v4284_v11  ;;  %2954 = vmatpush.bf16.msrb.mxu2 %v4272_v60 }
 0x4a7   :  { %2930 = vmatpush.bf16.msrb.mxu0 %v4232_v57  ;;  %2967 = vmatpush.bf16.msra.mxu3 %v4276_v45  ;;  %v4244_v57 = vor.u32 %v4649_v2, %v4241_v8 }
 0x4aa   :  { %2941 = vmatpush.bf16.msrb.mxu1 %v4268_v35  ;;  %2955 = vmatpush.bf16.msrb.mxu2 %v4256_v55 }
 0x4ab   :  { %3126 = vmatpush.bf16.msra.mxu0 %v4687_v15  ;;  %2968 = vmatpush.bf16.msra.mxu3 %v4260_v7  ;;  %v4682_v15 = vld [vmem:[#allocation14 + $0x10] sm:$0xff] }
 0x4ae   :  { %2956 = vmatpush.bf16.msrb.mxu2 %v4240_v12 }
 0x4af   :  { %3127 = vmatpush.bf16.msra.mxu0 %v4686_v61  ;;  %2969 = vmatpush.bf16.msra.mxu3 %v4244_v57  ;;  %v4680_v61 = vld [vmem:[#allocation14] sm:$0xff]  ;;  %v3054_v57 = vpack.c.bf16 %v5217_v63, %v5204_v0 }
 0x4b3   :  { %3128 = vmatpush.bf16.msra.mxu0 %v4685_v56 }
 0x4b7   :  { %3129 = vmatpush.bf16.msra.mxu0 %v4684_v33  ;;  %v3056_v33 = vpack.c.bf16 %v5267_v59, %v5254_v26 }
 0x4bb   :  { %3130 = vmatpush.bf16.msra.mxu0 %v4683_v19 }
 0x4bf   :  { %3131 = vmatpush.bf16.msra.mxu0 %v4682_v15 }
 0x4c3   :  { %3132 = vmatpush.bf16.msra.mxu0 %v4681_v27 }
 0x4c7   :  { %3133 = vmatpush.bf16.msra.mxu0 %v4680_v61 }
 0x51d   :  { %v2609_v18 = vpop.f32.mrf.mxu0  ;;  %v2622_v9 = vpop.f32.mrf.mxu1 }
 0x51e   :  { %v2652_v23 = vadd.f32 %v2609_v18, %v5105_v34  ;;  %v2653_v5 = vadd.f32 %v2622_v9, %v5170_v39  ;;  %v4249_v34 = vld [vmem:[#allocation11 + $0x30] sm:$0xf0] }
 0x51f   :  { %v4252_v39 = vor.u32 %v4652_v28, %v4249_v34 }
 0x520   :  { %v4226_v42 = vmul.f32 -1.442695, %v2652_v23  ;;  %v4227_v48 = vmul.f32 -1.442695, %v2653_v5 }
 0x521   :  { %2942 = vmatpush.bf16.msrb.mxu1 %v4252_v39 }
 0x522   :  { %4806 = vpow2.f32 %v4226_v42 }
 0x523   :  { %4808 = vpow2.f32 %v4227_v48 }
 0x524   :  { %v2635_v20 = vpop.f32.mrf.mxu2  ;;  %v2648_v3 = vpop.f32.mrf.mxu3 }
 0x525   :  { %v2655_v4 = vadd.f32 %v2648_v3, %v5144_v58  ;;  %v2611_v37 = vpop.f32.mrf.mxu0  ;;  %v2624_v52 = vpop.f32.mrf.mxu1  ;;  %2943 = vmatpush.bf16.msrb.mxu1 %v4236_v47  ;;  %v2654_v23 = vadd.f32 %v2635_v20, %v5176_v16 }
 0x527   :  { %v4228_v6 = vmul.f32 -1.442695, %v2655_v4 }
 0x528   :  { %v4807_v10 = vpop.eup %4806 }
 0x529   :  { %v4809_v11 = vpop.eup %4808  ;;  %v2659_v21 = vadd.f32 1.0, %v4807_v10  ;;  %4810 = vpow2.f32 %v4228_v6  ;;  %v3055_v6 = vpack.c.bf16 %v5242_v36, %v5229_v51  ;;  %v341_v10 = vadd.f32 %v5112_v38, %v5084_v17  ;;  %v5296_v38 = vld [vmem:[%s5320_s5] ss:$0 sm:$0xff]  ;;  %s5002_s5 = smov [#allocation15]  }
 0x52a   :  { %v2678_v13 = vadd.f32 1.0, %v4809_v11  ;;  %s3167_s25 = sshll.u32 %s5002_s5, 4  ;;  %s3168_s25 = int_to_ptr.vmem [resolvable:$true] %s3167_s25 }
 0x52b   :  { %4812 = vrcp.f32 %v2659_v21  ;;  %v2671_v46 = vand.u32 2147483648, %v2659_v21  ;;  %v2669_v48 = vand.u32 2147483647, %v2659_v21  ;;  %vm2665_vm10 = vweird.f32 %v2659_v21 }
 0x52c   :  { %4814 = vrcp.f32 %v2678_v13  ;;  %v2637_v58 = vpop.f32.mrf.mxu2  ;;  %v2650_v31 = vpop.f32.mrf.mxu3  ;;  %v2690_v49 = vand.u32 2147483648, %v2678_v13  ;;  %v2688_v45 = vand.u32 2147483647, %v2678_v13  ;;  %vm2684_vm11 = vweird.f32 %v2678_v13 }
 0x52d   :  { %v2672_v34 = vor.u32 1.1754944e-38, %v2671_v46  ;;  %vm2670_vm14 = vcmp.eq.f32.partialorder %v2669_v48, 8.507059e+37 }
 0x52e   :  { %v2691_v53 = vor.u32 1.1754944e-38, %v2690_v49  ;;  %vm2689_vm15 = vcmp.eq.f32.partialorder %v2688_v45, 8.507059e+37 }
 0x52f   :  { %v4811_v54 = vpop.eup %4810 }
 0x530   :  { %v2698_v18 = vadd.f32 1.0, %v4811_v54 }
 0x531   :  { %v4813_v9 = vpop.eup %4812 }
 0x532   :  { %v4815_v5 = vpop.eup %4814  ;;  %v2661_v30 = vmul.f32 %v4813_v9, %v2659_v21  ;;  %4816 = vrcp.f32 %v2698_v18  ;;  %vm2666_vm8 = vweird.f32 %v4813_v9  ;;  %v2710_v2 = vand.u32 2147483648, %v2698_v18 }
 0x533   :  { %v2680_v22 = vmul.f32 %v4815_v5, %v2678_v13  ;;  %4818 = vtanh.f32 %v2654_v23  ;;  %vm2685_vm9 = vweird.f32 %v4815_v5  ;;  %vm2667_vm12 = vmor %vm2665_vm10, %vm2666_vm8  ;;  %vm2704_vm1 = vweird.f32 %v2698_v18 }
 0x534   :  { %v2662_v35 = vsub.f32 1.0, %v2661_v30  ;;  %vm2686_vm13 = vmor %vm2684_vm11, %vm2685_vm9  ;;  %v2708_v4 = vand.u32 2147483647, %v2698_v18  ;;  %v2711_v52 = vor.u32 1.1754944e-38, %v2710_v2 }
 0x535   :  { %v2681_v44 = vsub.f32 1.0, %v2680_v22 }
 0x536   :  { %v2663_v42 = vmul.f32 %v4813_v9, %v2662_v35  ;;  %vm2709_vm3 = vcmp.eq.f32.partialorder %v2708_v4, 8.507059e+37 }
 0x537   :  { %v2682_v60 = vmul.f32 %v4815_v5, %v2681_v44 }
 0x538   :  { %v4817_v16 = vpop.eup %4816  ;;  %v2664_v28 = vadd.f32 %v4813_v9, %v2663_v42 }
 0x539   :  { %v2683_v41 = vadd.f32 %v4815_v5, %v2682_v60  ;;  %v2700_v39 = vmul.f32 %v4817_v16, %v2698_v18  ;;  %v4819_v14 = vpop.eup %4818  ;;  %vm2705_vm0 = vweird.f32 %v4817_v16 }
 0x53a   :  { %v2668_v50 = vsel %vm2667_vm12, %v4813_v9, %v2664_v28  ;;  %vm2706_vm2 = vmor %vm2704_vm1, %vm2705_vm0 }
 0x53b   :  { %v2673_v55 = vsel %vm2670_vm14, %v2672_v34, %v2668_v50  ;;  %v2687_v7 = vsel %vm2686_vm13, %v4815_v5, %v2683_v41  ;;  %v2701_v56 = vsub.f32 1.0, %v2700_v39 }
 0x53c   :  { %v2692_v24 = vsel %vm2689_vm15, %v2691_v53, %v2687_v7  ;;  %v2715_v32 = vmul.f32 %v4819_v14, %v2673_v55 }
 0x53d   :  { %v2714_v20 = vmul.f32 %v2692_v24, %v5264_v43  ;;  %v2702_v3 = vmul.f32 %v4817_v16, %v2701_v56 }
 0x53f   :  { %v5276_v29 = vadd.f32 %v2715_v32, %v2714_v20  ;;  %v2703_v40 = vadd.f32 %v4817_v16, %v2702_v3 }
 0x541   :  { %4820 = vtanh.f32 %v5276_v29  ;;  %v2707_v37 = vsel %vm2706_vm2, %v4817_v16, %v2703_v40 }
 0x542   :  { %v2712_v8 = vsel %vm2709_vm3, %v2711_v52, %v2707_v37 }
 0x547   :  { %v4821_v47 = vpop.eup %4820 }
 0x548   :  { %v5279_v12 = vmul.f32 %v4821_v47, %v2712_v8 }
 0x54a   :  { %v2730_v43 = vpack.c.bf16 %v5279_v12, %v5279_v12 }
 0x54c   :  { %2931 = vmatmul.bf16.vlgmr.msrb.gmra.mxu0 %v2730_v43  ;;  %2944 = vmatmul.bf16.vlgmr.msrb.gmra.mxu1 %v2730_v43 }
 0x54d   :  { %2957 = vmatmul.bf16.vlgmr.msrb.gmra.mxu2 %v2730_v43  ;;  %2970 = vmatmul.bf16.vlgmr.msra.gmra.mxu3 %v2730_v43 }
 0x55c   :  { %3134 = vmatmul.bf16.vlgmr.msra.gmra.mxu0 %v3054_v57 }
 0x56c   :  { %3139 = vmatmul.bf16.gmra.mxu0 %v3055_v6 }
 0x57c   :  { %3144 = vmatmul.bf16.gmra.mxu0 %v3056_v33 }
 0x5c9   :  { %v2932_v11 = vpop.f32.mrf.mxu0  ;;  %v2945_v21 = vpop.f32.mrf.mxu1 }
 0x5ca   :  { %v2975_v13 = vadd.f32 %v2932_v11, %v341_v10  ;;  %v2976_v58 = vadd.f32 %v2945_v21, %v5181_v25 }
 0x5cc   :  { %v4357_v31 = vmul.f32 -1.442695, %v2975_v13  ;;  %v4358_v19 = vmul.f32 -1.442695, %v2976_v58 }
 0x5ce   :  { %4822 = vpow2.f32 %v4357_v31 }
 0x5cf   :  { %4824 = vpow2.f32 %v4358_v19 }
 0x5d0   :  { %v2958_v0 = vpop.f32.mrf.mxu2  ;;  %v2971_v63 = vpop.f32.mrf.mxu3 }
 0x5d1   :  { %v2978_v51 = vadd.f32 %v2971_v63, %v5153_v1  ;;  %v2934_v36 = vpop.f32.mrf.mxu0  ;;  %v2947_v54 = vpop.f32.mrf.mxu1  ;;  %v2977_v27 = vadd.f32 %v2958_v0, %v5188_v62 }
 0x5d3   :  { %v4359_v26 = vmul.f32 -1.442695, %v2978_v51 }
 0x5d4   :  { %v4823_v59 = vpop.eup %4822 }
 0x5d5   :  { %v4825_v15 = vpop.eup %4824  ;;  %v2982_v18 = vadd.f32 1.0, %v4823_v59  ;;  %4826 = vpow2.f32 %v4359_v26 }
 0x5d6   :  { %v3001_v17 = vadd.f32 1.0, %v4825_v15 }
 0x5d7   :  { %4828 = vrcp.f32 %v2982_v18  ;;  %v2992_v48 = vand.u32 2147483647, %v2982_v18  ;;  %v2994_v60 = vand.u32 2147483648, %v2982_v18  ;;  %vm2988_vm6 = vweird.f32 %v2982_v18 }
 0x5d8   :  { %4830 = vrcp.f32 %v3001_v17  ;;  %v2960_v25 = vpop.f32.mrf.mxu2  ;;  %v2973_v9 = vpop.f32.mrf.mxu3  ;;  %v3013_v61 = vand.u32 2147483648, %v3001_v17  ;;  %v3011_v41 = vand.u32 2147483647, %v3001_v17  ;;  %vm3007_vm7 = vweird.f32 %v3001_v17 }
 0x5d9   :  { %v3135_v23 = vpop.f32.mrf.mxu0  ;;  %v2995_v53 = vor.u32 1.1754944e-38, %v2994_v60  ;;  %vm2993_vm10 = vcmp.eq.f32.partialorder %v2992_v48, 8.507059e+37 }
 0x5da   :  { %v3136_v1 = vadd.f32 %v5296_v38, %v3135_v23  ;;  %v3014_v55 = vor.u32 1.1754944e-38, %v3013_v61  ;;  %vm3012_vm11 = vcmp.eq.f32.partialorder %v3011_v41, 8.507059e+37 }
 0x5db   :  { %v4827_v5 = vpop.eup %4826 }
 0x5dc   :  { %v3021_v30 = vadd.f32 1.0, %v4827_v5  ;;  %3155 = vst [vmem:[#allocation15] sm:$0xff] %v3136_v1 }
 0x5dd   :  { %v4829_v22 = vpop.eup %4828 }
 0x5de   :  { %v4831_v35 = vpop.eup %4830  ;;  %v2984_v44 = vmul.f32 %v4829_v22, %v2982_v18  ;;  %4832 = vrcp.f32 %v3021_v30  ;;  %vm2989_vm4 = vweird.f32 %v4829_v22  ;;  %v3033_v43 = vand.u32 2147483648, %v3021_v30 }
 0x5df   :  { %v3003_v46 = vmul.f32 %v4831_v35, %v3001_v17  ;;  %4834 = vtanh.f32 %v2977_v27  ;;  %vm3008_vm5 = vweird.f32 %v4831_v35  ;;  %vm2990_vm8 = vmor %vm2988_vm6, %vm2989_vm4  ;;  %vm3027_vm13 = vweird.f32 %v3021_v30 }
 0x5e0   :  { %v2985_v49 = vsub.f32 1.0, %v2984_v44  ;;  %vm3009_vm9 = vmor %vm3007_vm7, %vm3008_vm5  ;;  %v3031_v57 = vand.u32 2147483647, %v3021_v30  ;;  %v3034_v10 = vor.u32 1.1754944e-38, %v3033_v43 }
 0x5e1   :  { %v3004_v42 = vsub.f32 1.0, %v3003_v46  ;;  %v3137_v45 = vpop.f32.mrf.mxu0 }
 0x5e2   :  { %v2986_v16 = vmul.f32 %v4829_v22, %v2985_v49  ;;  %v3138_v28 = vadd.f32 %v5296_v38, %v3137_v45  ;;  %vm3032_vm15 = vcmp.eq.f32.partialorder %v3031_v57, 8.507059e+37 }
 0x5e3   :  { %v3005_v34 = vmul.f32 %v4831_v35, %v3004_v42 }
 0x5e4   :  { %v4833_v39 = vpop.eup %4832  ;;  %v2987_v62 = vadd.f32 %v4829_v22, %v2986_v16  ;;  %3156 = vst [vmem:[#allocation15 + $0x8] sm:$0xff] %v3138_v28 }
 0x5e5   :  { %v3006_v50 = vadd.f32 %v4831_v35, %v3005_v34  ;;  %v3023_v14 = vmul.f32 %v4833_v39, %v3021_v30  ;;  %v4835_v56 = vpop.eup %4834  ;;  %vm3028_vm12 = vweird.f32 %v4833_v39 }
 0x5e6   :  { %v2991_v7 = vsel %vm2990_vm8, %v4829_v22, %v2987_v62  ;;  %vm3029_vm14 = vmor %vm3027_vm13, %vm3028_vm12 }
 0x5e7   :  { %v2996_v24 = vsel %vm2993_vm10, %v2995_v53, %v2991_v7  ;;  %v3010_v32 = vsel %vm3009_vm9, %v4831_v35, %v3006_v50  ;;  %v3024_v20 = vsub.f32 1.0, %v3023_v14 }
 0x5e8   :  { %v3015_v3 = vsel %vm3012_vm11, %v3014_v55, %v3010_v32  ;;  %v3038_v40 = vmul.f32 %v4835_v56, %v2996_v24 }
 0x5e9   :  { %v3037_v2 = vmul.f32 %v3015_v3, %v5276_v29  ;;  %v3140_v4 = vpop.f32.mrf.mxu0  ;;  %v3025_v37 = vmul.f32 %v4833_v39, %v3024_v20 }
 0x5ea   :  { %v3141_v52 = vadd.f32 %v5296_v38, %v3140_v4 }
 0x5eb   :  { %v3039_v47 = vadd.f32 %v3038_v40, %v3037_v2  ;;  %v3026_v8 = vadd.f32 %v4833_v39, %v3025_v37 }
 0x5ec   :  { %3157 = vst [vmem:[#allocation15 + $0x10] sm:$0xff] %v3141_v52 }
 0x5ed   :  { %4836 = vtanh.f32 %v3039_v47  ;;  %v3030_v6 = vsel %vm3029_vm14, %v4833_v39, %v3026_v8 }
 0x5ee   :  { %v3035_v21 = vsel %vm3032_vm15, %v3034_v10, %v3030_v6 }
 0x5f1   :  { %v3142_v33 = vpop.f32.mrf.mxu0 }
 0x5f2   :  { %v3143_v11 = vadd.f32 %v5296_v38, %v3142_v33 }
 0x5f3   :  { %v4837_v29 = vpop.eup %4836 }
 0x5f4   :  { %3158 = vst [vmem:[#allocation15 + $0x18] sm:$0xff] %v3143_v11  ;;  %v3041_v13 = vmul.f32 %v4837_v29, %v3035_v21 }
 0x5f6   :  { %v3057_v58 = vpack.c.bf16 %v3041_v13, %v5279_v12 }
 0x5f8   :  { %3149 = vmatmul.bf16.gmra.mxu0 %v3057_v58 }
 0x5f9   :  { %v3145_v31 = vpop.f32.mrf.mxu0 }
 0x5fa   :  { %v3146_v19 = vadd.f32 %v5296_v38, %v3145_v31 }
 0x5fc   :  { %3159 = vst [vmem:[#allocation15 + $0x20] sm:$0xff] %v3146_v19 }
 0x601   :  { %v3147_v0 = vpop.f32.mrf.mxu0 }
 0x602   :  { %v3148_v63 = vadd.f32 %v5296_v38, %v3147_v0 }
 0x604   :  { %3160 = vst [vmem:[#allocation15 + $0x28] sm:$0xff] %v3148_v63 }
 0x675   :  { %v3150_v51 = vpop.f32.mrf.mxu0 }
 0x676   :  { %v3151_v36 = vadd.f32 %v5296_v38, %v3150_v51 }
 0x678   :  { %3161 = vst [vmem:[#allocation15 + $0x30] sm:$0xff] %v3151_v36 }
 0x67d   :  { %v3152_v12 = vpop.f32.mrf.mxu0 }
 0x67e   :  { %v3153_v54 = vadd.f32 %v5296_v38, %v3152_v12 }
 0x680   :  { %3162 = vst [vmem:[#allocation15 + $0x38] sm:$0xff] %v3153_v54 }
 0x681   :  { %3175 = dma.vmem_to_hbm [thread:$0]  %s3168_s25, 1024, %s3170_s28, [#allocation8], %s4995_s15, %s4995_s15, %s4996_s16  }
 0x682   :  { %4988 = dma.done.wait [#allocation8], 1024  }
 0x683   :  { %4989 = vsyncadd [#allocation8], 4294966272 }
 0x684   :  { %3180 = vsyncpa [#allocation7], 1 }
 0x685   :  { %3181 = vsyncpa [#allocation10], 1 }
 0x686   :  { %3182 = vsyncpa [#allocation13], 1 }
 0x687   :  { %3183 = vsyncpa [#allocation8], 1 }

</bundles_post_ra>
